<compile_context>
chip_gen: v6e
topology: v6e:2x2x1
jax: 0.10.0
libtpu: 0.0.40
codegen_flags: <defaults>
</compile_context>

<pallas_src>
import math
import numpy as np
import jax
import jax.numpy as jnp
from jax.experimental import pallas as pl
from jax.experimental.pallas import tpu as pltpu  # noqa: F401  (TPU backend; no special params needed)

# ------------------------------ config -------------------------------------
HIDDEN = 32
ANGLE_FEAT_SIZE = 4
POS_DIM = ANGLE_FEAT_SIZE + 3           # angle_feat_size + 3
MAX_ACTION_STEPS = 20
NUM_HEADS = 4
HEAD_DIM = HIDDEN // NUM_HEADS
INTERMEDIATE = 64
NUM_X_LAYERS = 2
LN_EPS = 1e-12
NEG_MASK = -10000.0


# ------------------------------ in-kernel helpers ---------------------------
def _layer_norm(x, gamma, beta):
    u = jnp.mean(x, axis=-1, keepdims=True)
    s = jnp.mean((x - u) ** 2, axis=-1, keepdims=True)
    return (x - u) * jax.lax.rsqrt(s + LN_EPS) * gamma + beta


def _mh_attention(q, k, v, bias, wo, bo, x_res, g, be):
    """Multi-head attention + output proj + residual + LayerNorm.

    q: (Sq, H), already scaled by 1/sqrt(head_dim); k, v: (Sk, H);
    bias: additive, broadcastable to (Sq, Sk); wo: (H, H); bo/g/be: (1, H).
    Per-head outputs are folded through row-slices of wo and summed, so no
    lane-axis concatenate / relayout is needed.
    """
    acc = None
    for h in range(NUM_HEADS):
        lo = h * HEAD_DIM
        hi = lo + HEAD_DIM
        s = jax.lax.dot_general(q[:, lo:hi], k[:, lo:hi],
                                (((1,), (1,)), ((), ())),
                                preferred_element_type=jnp.float32) + bias
        s = s - jnp.max(s, axis=-1, keepdims=True)
        e = jnp.exp(s)
        p = e * pl.reciprocal(jnp.sum(e, axis=-1, keepdims=True), approx=True)
        ctx_h = jnp.dot(p, v[:, lo:hi], preferred_element_type=jnp.float32)          # (Sq, HD)
        contrib = jnp.dot(ctx_h, wo[lo:hi, :], preferred_element_type=jnp.float32)   # (Sq, H)
        acc = contrib if acc is None else acc + contrib
    return _layer_norm(acc + bo + x_res, g, be)


# ------------------------------ the fused kernel -----------------------------
def _encoder_kernel(traj_ref, agg_ref, step_ref, pos_ref, txt_ref,
                    bias_cross_ref, bias_self_ref,
                    pos_w_ref, pos_b_ref, pos_g_ref, pos_be_ref,
                    c_wq_ref, c_bq_ref, c_wkv_ref, c_bkv_ref,
                    c_wo_ref, c_bo_ref, c_g_ref, c_be_ref,
                    s_wqkv_ref, s_bqkv_ref, s_wo_ref, s_bo_ref,
                    s_g_ref, s_be_ref,
                    f_w1_ref, f_b1_ref, f_w2_ref, f_b2_ref,
                    f_g_ref, f_be_ref,
                    out_ref):
    B = out_ref.shape[0]

    # Shared (layer-independent) weights, loaded once.
    pos_w = pos_w_ref[...]
    pos_b = pos_b_ref[...]
    pos_g = pos_g_ref[...]
    pos_be = pos_be_ref[...]

    # ---- gmap_input_embedding (tiny batch, unrolled) ----
    xs, txts, bcs, bss = [], [], [], []
    for b in range(B):
        # aggregation matmul replaces the whole _aggregate_gmap_features numerics
        img = jnp.dot(agg_ref[b], traj_ref[b], preferred_element_type=jnp.float32)   # (L, H)
        pos = jnp.dot(pos_ref[b], pos_w, preferred_element_type=jnp.float32) + pos_b
        pos = _layer_norm(pos, pos_g, pos_be)
        xs.append(img + step_ref[b] + pos)                 # (L, H)
        txts.append(txt_ref[b])                            # (Lt, H)
        bcs.append(bias_cross_ref[b])                      # (1, Lt) broadcast over rows
        bss.append(bias_self_ref[b])                       # (L, L) (mask + sprels)

    # ---- crossmodal encoder layers: layer outer, batch inner so each layer's
    #      weights are loaded from VMEM once and batch elements interleave ----
    for l in range(NUM_X_LAYERS):
        c_wq, c_bq = c_wq_ref[l], c_bq_ref[l]              # scale pre-folded on host
        c_wkv, c_bkv = c_wkv_ref[l], c_bkv_ref[l]
        c_wo, c_bo, c_g, c_be = c_wo_ref[l], c_bo_ref[l], c_g_ref[l], c_be_ref[l]
        s_wqkv, s_bqkv = s_wqkv_ref[l], s_bqkv_ref[l]      # Q-slice scale pre-folded
        s_wo, s_bo, s_g, s_be = s_wo_ref[l], s_bo_ref[l], s_g_ref[l], s_be_ref[l]
        f_w1, f_b1 = f_w1_ref[l], f_b1_ref[l]
        f_w2, f_b2 = f_w2_ref[l], f_b2_ref[l]
        f_g, f_be = f_g_ref[l], f_be_ref[l]

        for b in range(B):
            x = xs[b]
            # cross attention: queries from gmap, keys/values from text (packed K|V)
            q = jnp.dot(x, c_wq, preferred_element_type=jnp.float32) + c_bq
            kv = jnp.dot(txts[b], c_wkv, preferred_element_type=jnp.float32) + c_bkv
            x = _mh_attention(q, kv[:, :HIDDEN], kv[:, HIDDEN:], bcs[b],
                              c_wo, c_bo, x, c_g, c_be)

            # graph self attention with sprel bias (packed Q|K|V)
            qkv = jnp.dot(x, s_wqkv, preferred_element_type=jnp.float32) + s_bqkv
            x = _mh_attention(qkv[:, :HIDDEN],
                              qkv[:, HIDDEN:2 * HIDDEN],
                              qkv[:, 2 * HIDDEN:],
                              bss[b], s_wo, s_bo, x, s_g, s_be)

            # FFN (BertIntermediate + BertOutput)
            h = jnp.dot(x, f_w1, preferred_element_type=jnp.float32) + f_b1
            # TODO(synk): BERT uses exact erf-based GELU; tanh-approx GELU used here (Pallas-safe).
            h = jax.nn.gelu(h, approximate=True)
            o = jnp.dot(h, f_w2, preferred_element_type=jnp.float32) + f_b2
            xs[b] = _layer_norm(o + x, f_g, f_be)

    for b in range(B):
        out_ref[b] = xs[b]


# ------------------------------ host-side aggregation bookkeeping ------------
def gen_seq_masks(lens, max_len):
    lens = np.asarray(lens)
    return (np.arange(max_len)[None, :] < lens[:, None]).astype(np.float32)


def build_gmap_aggregation_weights(split_traj_embeds, split_traj_vp_lens, traj_vpids,
                                   traj_cand_vpids, gmap_vpids, max_gmap_len):
    """Pure numpy / Python-string bookkeeping (no device ops, no syncs).

    Produces agg[i] of shape (L, T_max*V_max) such that
        gmap_img_fts[i] = agg[i] @ traj_embeds_flat[i]
    reproduces _aggregate_gmap_features: masked mean of the last visiting step for
    visited viewpoints, mean over candidate occurrences for unvisited viewpoints,
    zeros for the [stop] slot (row 0) and for padded gmap rows.
    """
    B = len(split_traj_embeds)
    T_max = max(int(e.shape[0]) for e in split_traj_embeds)
    V_max = max(int(e.shape[1]) for e in split_traj_embeds)
    agg = np.zeros((B, max_gmap_len, T_max * V_max), np.float32)

    for i in range(B):
        T = int(split_traj_embeds[i].shape[0])
        vp_lens = [int(v) for v in split_traj_vp_lens[i]]
        visited, unvisited = {}, {}
        for t in range(T):
            visited[traj_vpids[i][t]] = t            # later visits overwrite (dict semantics)
            for j, vp in enumerate(traj_cand_vpids[i][t]):
                if vp not in visited:
                    unvisited.setdefault(vp, []).append((t, j))
        for r, vp in enumerate(gmap_vpids[i][1:], start=1):
            if vp in visited:
                t = visited[vp]
                n = vp_lens[t]
                denom = max(n, 1)                    # guard zero-length steps (avoid inf/NaN)
                agg[i, r, t * V_max: t * V_max + n] = 1.0 / denom
            else:
                occ = unvisited[vp]
                m = max(len(occ), 1)
                for (t, j) in occ:
                    # PyTorch appends the *masked* feature; out-of-range views contribute 0
                    w = (1.0 / m) if j < vp_lens[t] else 0.0
                    agg[i, r, t * V_max + j] += w
    return agg, T_max, V_max


# ------------------------------ device-side forward (single jit) -------------
@jax.jit
def _device_forward(params, split_traj_embeds, agg_w, gmap_step_ids, gmap_pos_fts,
                    txt_embeds, txt_masks, gmap_masks, graph_sprels):
    B, L, _ = gmap_pos_fts.shape
    T_max = max(int(e.shape[0]) for e in split_traj_embeds)
    V_max = max(int(e.shape[1]) for e in split_traj_embeds)

    # Pad & flatten trajectory view features: (B, T_max*V_max, H)
    traj = []
    for e in split_traj_embeds:
        e = e.astype(jnp.float32)
        e = jnp.pad(e, ((0, T_max - e.shape[0]), (0, V_max - e.shape[1]), (0, 0)))
        traj.append(e.reshape(T_max * V_max, HIDDEN))
    traj_flat = jnp.stack(traj, 0)

    # Step embedding gather (tiny XLA gather; fused into the same jit program).
    step_emb = jnp.take(params['step_table'], gmap_step_ids, axis=0)

    # Additive attention biases (extend_neg_masks + sprel_linear folded in, plain jnp).
    bias_cross = ((1.0 - txt_masks.astype(jnp.float32)) * NEG_MASK)[:, None, :]      # (B, 1, Lt)
    sprel = graph_sprels.astype(jnp.float32) * params['sprel_w'][0, 0] + params['sprel_b'][0, 0]
    bias_self = ((1.0 - gmap_masks) * NEG_MASK)[:, None, :] + sprel                   # (B, L, L)

    # Fold the 1/sqrt(head_dim) attention scale into the Q projections (no in-kernel cost).
    scale = 1.0 / math.sqrt(HEAD_DIM)
    c_wq = params['c_wq'] * scale
    c_bq = params['c_bq'] * scale
    s_wqkv = params['s_wqkv'].at[:, :, :HIDDEN].multiply(scale)
    s_bqkv = params['s_bqkv'].at[:, :, :HIDDEN].multiply(scale)

    return pl.pallas_call(
        _encoder_kernel,
        out_shape=jax.ShapeDtypeStruct((B, L, HIDDEN), jnp.float32),
    )(traj_flat, agg_w, step_emb, gmap_pos_fts, txt_embeds, bias_cross, bias_self,
      params['pos_w'], params['pos_b'], params['pos_ln_g'], params['pos_ln_b'],
      c_wq, c_bq, params['c_wkv'], params['c_bkv'],
      params['c_wo'], params['c_bo'], params['c_g'], params['c_be'],
      s_wqkv, s_bqkv, params['s_wo'], params['s_bo'],
      params['s_g'], params['s_be'],
      params['f_w1'], params['f_b1'], params['f_w2'], params['f_b2'],
      params['f_g'], params['f_be'])


def global_map_encoder_forward(params, txt_embeds, txt_masks,
                               split_traj_embeds, split_traj_vp_lens,
                               traj_vpids, traj_cand_vpids, gmap_vpids,
                               gmap_step_ids, gmap_pos_fts, gmap_lens,
                               graph_sprels):
    B, L, _ = gmap_pos_fts.shape
    agg_w, _, _ = build_gmap_aggregation_weights(
        split_traj_embeds, split_traj_vp_lens, traj_vpids, traj_cand_vpids, gmap_vpids, L)
    gmap_masks = jnp.asarray(gen_seq_masks(gmap_lens, L))
    return _device_forward(params, split_traj_embeds, jnp.asarray(agg_w),
                           gmap_step_ids, gmap_pos_fts, txt_embeds, txt_masks,
                           gmap_masks, graph_sprels)


# ------------------------------ params --------------------------------------
def init_params(key):
    keys = iter(jax.random.split(key, 64))

    def dense(din, dout):
        w = jax.random.normal(next(keys), (din, dout), jnp.float32) * 0.02
        return w, jnp.zeros((1, dout), jnp.float32)

    def ln():
        return jnp.ones((1, HIDDEN), jnp.float32), jnp.zeros((1, HIDDEN), jnp.float32)

    pos_w, pos_b = dense(POS_DIM, HIDDEN)
    pos_ln_g, pos_ln_b = ln()
    step_table = jax.random.normal(next(keys), (MAX_ACTION_STEPS, HIDDEN), jnp.float32) * 0.02
    sprel_w = 1.0 + 0.02 * jax.random.normal(next(keys), (1, 1), jnp.float32)
    sprel_b = jnp.zeros((1, 1), jnp.float32)

    c_wq, c_bq, c_wkv, c_bkv, c_wo, c_bo, c_g, c_be = ([] for _ in range(8))
    s_wqkv, s_bqkv, s_wo, s_bo, s_g, s_be = ([] for _ in range(6))
    f_w1, f_b1, f_w2, f_b2, f_g, f_be = ([] for _ in range(6))

    for _ in range(NUM_X_LAYERS):
        # cross attention (K|V packed)
        wq, bq = dense(HIDDEN, HIDDEN)
        wk, bk = dense(HIDDEN, HIDDEN)
        wv, bv = dense(HIDDEN, HIDDEN)
        wo, bo = dense(HIDDEN, HIDDEN)
        g, be = ln()
        c_wq.append(wq); c_bq.append(bq)
        c_wkv.append(jnp.concatenate([wk, wv], axis=1))
        c_bkv.append(jnp.concatenate([bk, bv], axis=1))
        c_wo.append(wo); c_bo.append(bo); c_g.append(g); c_be.append(be)
        # self attention (Q|K|V packed)
        wq2, bq2 = dense(HIDDEN, HIDDEN)
        wk2, bk2 = dense(HIDDEN, HIDDEN)
        wv2, bv2 = dense(HIDDEN, HIDDEN)
        wo2, bo2 = dense(HIDDEN, HIDDEN)
        g2, be2 = ln()
        s_wqkv.append(jnp.concatenate([wq2, wk2, wv2], axis=1))
        s_bqkv.append(jnp.concatenate([bq2, bk2, bv2], axis=1))
        s_wo.append(wo2); s_bo.append(bo2); s_g.append(g2); s_be.append(be2)
        # FFN
        w1, b1 = dense(HIDDEN, INTERMEDIATE)
        w2, b2 = dense(INTERMEDIATE, HIDDEN)
        g3, be3 = ln()
        f_w1.append(w1); f_b1.append(b1); f_w2.append(w2); f_b2.append(b2)
        f_g.append(g3); f_be.append(be3)

    stack = lambda xs: jnp.stack(xs, axis=0)
    return dict(
        pos_w=pos_w, pos_b=pos_b, pos_ln_g=pos_ln_g, pos_ln_b=pos_ln_b,
        step_table=step_table, sprel_w=sprel_w, sprel_b=sprel_b,
        c_wq=stack(c_wq), c_bq=stack(c_bq), c_wkv=stack(c_wkv), c_bkv=stack(c_bkv),
        c_wo=stack(c_wo), c_bo=stack(c_bo), c_g=stack(c_g), c_be=stack(c_be),
        s_wqkv=stack(s_wqkv), s_bqkv=stack(s_bqkv), s_wo=stack(s_wo), s_bo=stack(s_bo),
        s_g=stack(s_g), s_be=stack(s_be),
        f_w1=stack(f_w1), f_b1=stack(f_b1), f_w2=stack(f_w2), f_b2=stack(f_b2),
        f_g=stack(f_g), f_be=stack(f_be))


# ------------------------------ main -----------------------------------------
if __name__ == "__main__":
    key = jax.random.PRNGKey(0)
    k_param, k_data = jax.random.split(key)
    params = init_params(k_param)
    dk = jax.random.split(k_data, 8)

    B = 2
    L_TXT = 6

    txt_embeds = jax.random.normal(dk[0], (B, L_TXT, HIDDEN), jnp.float32)
    txt_masks = jnp.array([[1, 1, 1, 1, 1, 1],
                           [1, 1, 1, 1, 0, 0]], jnp.int32)

    split_traj_embeds = [
        jax.random.normal(dk[1], (3, 6, HIDDEN), jnp.float32),
        jax.random.normal(dk[2], (2, 6, HIDDEN), jnp.float32),
    ]
    split_traj_vp_lens = [[4, 5, 3], [6, 2]]
    traj_vpids = [['a', 'b', 'c'], ['p', 'q']]
    traj_cand_vpids = [
        [['b', 'u1', 'u2', 'c'], ['a', 'c', 'u1', 'u2', 'b'], ['u2', 'b', 'a']],
        [['q', 'u3', 'p', 'u3', 'q', 'u3'], ['p', 'u3']],
    ]
    gmap_vpids = [
        [None, 'a', 'b', 'c', 'u1', 'u2'],
        [None, 'p', 'q', 'u3'],
    ]
    gmap_lens = [6, 4]
    L_GMAP = max(gmap_lens)
    gmap_step_ids = jnp.array([[0, 1, 2, 3, 0, 0],
                               [0, 1, 2, 0, 0, 0]], jnp.int32)
    gmap_pos_fts = jax.random.normal(dk[3], (B, L_GMAP, POS_DIM), jnp.float32)
    graph_sprels = jax.random.normal(dk[4], (B, L_GMAP, L_GMAP), jnp.float32)

    out = global_map_encoder_forward(params, txt_embeds, txt_masks,
                                     split_traj_embeds, split_traj_vp_lens,
                                     traj_vpids, traj_cand_vpids, gmap_vpids,
                                     gmap_step_ids, gmap_pos_fts, gmap_lens,
                                     graph_sprels)
    out = jax.block_until_ready(out)
    assert out.shape == (B, L_GMAP, HIDDEN)
    assert bool(jnp.all(jnp.isfinite(out)))
    print("KERNEL_OK")
</pallas_src>

<mosaic_0001>
module attributes {stable_mosaic.version = 11 : i64} {
  func.func @_encoder_kernel(%arg0: memref<2x18x32xf32, #tpu.memory_space<vmem>>, %arg1: memref<2x6x18xf32, #tpu.memory_space<vmem>>, %arg2: memref<2x6x32xf32, #tpu.memory_space<vmem>>, %arg3: memref<2x6x7xf32, #tpu.memory_space<vmem>>, %arg4: memref<2x6x32xf32, #tpu.memory_space<vmem>>, %arg5: memref<2x1x6xf32, #tpu.memory_space<vmem>>, %arg6: memref<2x6x6xf32, #tpu.memory_space<vmem>>, %arg7: memref<7x32xf32, #tpu.memory_space<vmem>>, %arg8: memref<1x32xf32, #tpu.memory_space<vmem>>, %arg9: memref<1x32xf32, #tpu.memory_space<vmem>>, %arg10: memref<1x32xf32, #tpu.memory_space<vmem>>, %arg11: memref<2x32x32xf32, #tpu.memory_space<vmem>>, %arg12: memref<2x1x32xf32, #tpu.memory_space<vmem>>, %arg13: memref<2x32x64xf32, #tpu.memory_space<vmem>>, %arg14: memref<2x1x64xf32, #tpu.memory_space<vmem>>, %arg15: memref<2x32x32xf32, #tpu.memory_space<vmem>>, %arg16: memref<2x1x32xf32, #tpu.memory_space<vmem>>, %arg17: memref<2x1x32xf32, #tpu.memory_space<vmem>>, %arg18: memref<2x1x32xf32, #tpu.memory_space<vmem>>, %arg19: memref<2x32x96xf32, #tpu.memory_space<vmem>>, %arg20: memref<2x1x96xf32, #tpu.memory_space<vmem>>, %arg21: memref<2x32x32xf32, #tpu.memory_space<vmem>>, %arg22: memref<2x1x32xf32, #tpu.memory_space<vmem>>, %arg23: memref<2x1x32xf32, #tpu.memory_space<vmem>>, %arg24: memref<2x1x32xf32, #tpu.memory_space<vmem>>, %arg25: memref<2x32x64xf32, #tpu.memory_space<vmem>>, %arg26: memref<2x1x64xf32, #tpu.memory_space<vmem>>, %arg27: memref<2x64x32xf32, #tpu.memory_space<vmem>>, %arg28: memref<2x1x32xf32, #tpu.memory_space<vmem>>, %arg29: memref<2x1x32xf32, #tpu.memory_space<vmem>>, %arg30: memref<2x1x32xf32, #tpu.memory_space<vmem>>, %arg31: memref<2x6x32xf32, #tpu.memory_space<vmem>>) attributes {dimension_semantics = [], scalar_prefetch = 0 : i64, scratch_operands = 0 : i64, tpu.core_type = #tpu.core_type<tc>} {
    %c0 = arith.constant 0 : index
    %c0_0 = arith.constant 0 : index
    %0 = vector.load %arg7[%c0, %c0_0] : memref<7x32xf32, #tpu.memory_space<vmem>>, vector<7x32xf32>
    %c0_1 = arith.constant 0 : index
    %c0_2 = arith.constant 0 : index
    %1 = vector.load %arg8[%c0_1, %c0_2] : memref<1x32xf32, #tpu.memory_space<vmem>>, vector<1x32xf32>
    %c0_3 = arith.constant 0 : index
    %c0_4 = arith.constant 0 : index
    %2 = vector.load %arg9[%c0_3, %c0_4] : memref<1x32xf32, #tpu.memory_space<vmem>>, vector<1x32xf32>
    %c0_5 = arith.constant 0 : index
    %c0_6 = arith.constant 0 : index
    %3 = vector.load %arg10[%c0_5, %c0_6] : memref<1x32xf32, #tpu.memory_space<vmem>>, vector<1x32xf32>
    %c0_7 = arith.constant 0 : index
    %c0_8 = arith.constant 0 : index
    %c0_9 = arith.constant 0 : index
    %4 = vector.load %arg1[%c0_7, %c0_8, %c0_9] : memref<2x6x18xf32, #tpu.memory_space<vmem>>, vector<1x6x18xf32>
    %5 = vector.shape_cast %4 : vector<1x6x18xf32> to vector<6x18xf32>
    %c0_10 = arith.constant 0 : index
    %c0_11 = arith.constant 0 : index
    %c0_12 = arith.constant 0 : index
    %6 = vector.load %arg0[%c0_10, %c0_11, %c0_12] : memref<2x18x32xf32, #tpu.memory_space<vmem>>, vector<1x18x32xf32>
    %7 = vector.shape_cast %6 : vector<1x18x32xf32> to vector<18x32xf32>
    %cst = arith.constant dense<0.000000e+00> : vector<6x32xf32>
    %8 = tpu.matmul %5, %7, %cst {dimension_numbers = #tpu.dot_dimension_numbers<[1], [0], [0], [1], [0, 0, 1, 1], [], []>} : vector<6x18xf32>, vector<18x32xf32>, vector<6x32xf32> -> vector<6x32xf32>
    %c0_13 = arith.constant 0 : index
    %c0_14 = arith.constant 0 : index
    %c0_15 = arith.constant 0 : index
    %9 = vector.load %arg3[%c0_13, %c0_14, %c0_15] : memref<2x6x7xf32, #tpu.memory_space<vmem>>, vector<1x6x7xf32>
    %10 = vector.shape_cast %9 : vector<1x6x7xf32> to vector<6x7xf32>
    %cst_16 = arith.constant dense<0.000000e+00> : vector<6x32xf32>
    %11 = tpu.matmul %10, %0, %cst_16 {dimension_numbers = #tpu.dot_dimension_numbers<[1], [0], [0], [1], [0, 0, 1, 1], [], []>} : vector<6x7xf32>, vector<7x32xf32>, vector<6x32xf32> -> vector<6x32xf32>
    %12 = vector.broadcast %1 : vector<1x32xf32> to vector<6x32xf32>
    %13 = arith.addf %11, %12 : vector<6x32xf32>
    %cst_17 = arith.constant dense<0.000000e+00> : vector<6xf32>
    %14 = vector.multi_reduction <add>, %13, %cst_17 [1] : vector<6x32xf32> to vector<6xf32>
    %15 = vector.shape_cast %14 : vector<6xf32> to vector<6x1xf32>
    %cst_18 = arith.constant 3.200000e+01 : f32
    %16 = vector.broadcast %cst_18 : f32 to vector<6x1xf32>
    %17 = arith.divf %15, %16 : vector<6x1xf32>
    %18 = vector.broadcast %17 : vector<6x1xf32> to vector<6x32xf32>
    %19 = arith.subf %13, %18 : vector<6x32xf32>
    %20 = arith.mulf %19, %19 : vector<6x32xf32>
    %cst_19 = arith.constant dense<0.000000e+00> : vector<6xf32>
    %21 = vector.multi_reduction <add>, %20, %cst_19 [1] : vector<6x32xf32> to vector<6xf32>
    %22 = vector.shape_cast %21 : vector<6xf32> to vector<6x1xf32>
    %cst_20 = arith.constant 3.200000e+01 : f32
    %23 = vector.broadcast %cst_20 : f32 to vector<6x1xf32>
    %24 = arith.divf %22, %23 : vector<6x1xf32>
    %25 = vector.broadcast %17 : vector<6x1xf32> to vector<6x32xf32>
    %26 = arith.subf %13, %25 : vector<6x32xf32>
    %cst_21 = arith.constant 9.99999996E-13 : f32
    %27 = vector.broadcast %cst_21 : f32 to vector<6x1xf32>
    %28 = arith.addf %24, %27 : vector<6x1xf32>
    %29 = math.rsqrt %28 : vector<6x1xf32>
    %30 = vector.broadcast %29 : vector<6x1xf32> to vector<6x32xf32>
    %31 = arith.mulf %26, %30 : vector<6x32xf32>
    %32 = vector.broadcast %2 : vector<1x32xf32> to vector<6x32xf32>
    %33 = arith.mulf %31, %32 : vector<6x32xf32>
    %34 = vector.broadcast %3 : vector<1x32xf32> to vector<6x32xf32>
    %35 = arith.addf %33, %34 : vector<6x32xf32>
    %c0_22 = arith.constant 0 : index
    %c0_23 = arith.constant 0 : index
    %c0_24 = arith.constant 0 : index
    %36 = vector.load %arg2[%c0_22, %c0_23, %c0_24] : memref<2x6x32xf32, #tpu.memory_space<vmem>>, vector<1x6x32xf32>
    %37 = vector.shape_cast %36 : vector<1x6x32xf32> to vector<6x32xf32>
    %38 = arith.addf %8, %37 : vector<6x32xf32>
    %39 = arith.addf %38, %35 : vector<6x32xf32>
    %c0_25 = arith.constant 0 : index
    %c0_26 = arith.constant 0 : index
    %c0_27 = arith.constant 0 : index
    %40 = vector.load %arg4[%c0_25, %c0_26, %c0_27] : memref<2x6x32xf32, #tpu.memory_space<vmem>>, vector<1x6x32xf32>
    %41 = vector.shape_cast %40 : vector<1x6x32xf32> to vector<6x32xf32>
    %c0_28 = arith.constant 0 : index
    %c0_29 = arith.constant 0 : index
    %c0_30 = arith.constant 0 : index
    %42 = vector.load %arg5[%c0_28, %c0_29, %c0_30] : memref<2x1x6xf32, #tpu.memory_space<vmem>>, vector<1x1x6xf32>
    %43 = vector.shape_cast %42 : vector<1x1x6xf32> to vector<1x6xf32>
    %c0_31 = arith.constant 0 : index
    %c0_32 = arith.constant 0 : index
    %c0_33 = arith.constant 0 : index
    %44 = vector.load %arg6[%c0_31, %c0_32, %c0_33] : memref<2x6x6xf32, #tpu.memory_space<vmem>>, vector<1x6x6xf32>
    %45 = vector.shape_cast %44 : vector<1x6x6xf32> to vector<6x6xf32>
    %c1 = arith.constant 1 : index
    %c0_34 = arith.constant 0 : index
    %c0_35 = arith.constant 0 : index
    %46 = vector.load %arg1[%c1, %c0_34, %c0_35] : memref<2x6x18xf32, #tpu.memory_space<vmem>>, vector<1x6x18xf32>
    %47 = vector.shape_cast %46 : vector<1x6x18xf32> to vector<6x18xf32>
    %c1_36 = arith.constant 1 : index
    %c0_37 = arith.constant 0 : index
    %c0_38 = arith.constant 0 : index
    %48 = vector.load %arg0[%c1_36, %c0_37, %c0_38] : memref<2x18x32xf32, #tpu.memory_space<vmem>>, vector<1x18x32xf32>
    %49 = vector.shape_cast %48 : vector<1x18x32xf32> to vector<18x32xf32>
    %cst_39 = arith.constant dense<0.000000e+00> : vector<6x32xf32>
    %50 = tpu.matmul %47, %49, %cst_39 {dimension_numbers = #tpu.dot_dimension_numbers<[1], [0], [0], [1], [0, 0, 1, 1], [], []>} : vector<6x18xf32>, vector<18x32xf32>, vector<6x32xf32> -> vector<6x32xf32>
    %c1_40 = arith.constant 1 : index
    %c0_41 = arith.constant 0 : index
    %c0_42 = arith.constant 0 : index
    %51 = vector.load %arg3[%c1_40, %c0_41, %c0_42] : memref<2x6x7xf32, #tpu.memory_space<vmem>>, vector<1x6x7xf32>
    %52 = vector.shape_cast %51 : vector<1x6x7xf32> to vector<6x7xf32>
    %cst_43 = arith.constant dense<0.000000e+00> : vector<6x32xf32>
    %53 = tpu.matmul %52, %0, %cst_43 {dimension_numbers = #tpu.dot_dimension_numbers<[1], [0], [0], [1], [0, 0, 1, 1], [], []>} : vector<6x7xf32>, vector<7x32xf32>, vector<6x32xf32> -> vector<6x32xf32>
    %54 = vector.broadcast %1 : vector<1x32xf32> to vector<6x32xf32>
    %55 = arith.addf %53, %54 : vector<6x32xf32>
    %cst_44 = arith.constant dense<0.000000e+00> : vector<6xf32>
    %56 = vector.multi_reduction <add>, %55, %cst_44 [1] : vector<6x32xf32> to vector<6xf32>
    %57 = vector.shape_cast %56 : vector<6xf32> to vector<6x1xf32>
    %cst_45 = arith.constant 3.200000e+01 : f32
    %58 = vector.broadcast %cst_45 : f32 to vector<6x1xf32>
    %59 = arith.divf %57, %58 : vector<6x1xf32>
    %60 = vector.broadcast %59 : vector<6x1xf32> to vector<6x32xf32>
    %61 = arith.subf %55, %60 : vector<6x32xf32>
    %62 = arith.mulf %61, %61 : vector<6x32xf32>
    %cst_46 = arith.constant dense<0.000000e+00> : vector<6xf32>
    %63 = vector.multi_reduction <add>, %62, %cst_46 [1] : vector<6x32xf32> to vector<6xf32>
    %64 = vector.shape_cast %63 : vector<6xf32> to vector<6x1xf32>
    %cst_47 = arith.constant 3.200000e+01 : f32
    %65 = vector.broadcast %cst_47 : f32 to vector<6x1xf32>
    %66 = arith.divf %64, %65 : vector<6x1xf32>
    %67 = vector.broadcast %59 : vector<6x1xf32> to vector<6x32xf32>
    %68 = arith.subf %55, %67 : vector<6x32xf32>
    %cst_48 = arith.constant 9.99999996E-13 : f32
    %69 = vector.broadcast %cst_48 : f32 to vector<6x1xf32>
    %70 = arith.addf %66, %69 : vector<6x1xf32>
    %71 = math.rsqrt %70 : vector<6x1xf32>
    %72 = vector.broadcast %71 : vector<6x1xf32> to vector<6x32xf32>
    %73 = arith.mulf %68, %72 : vector<6x32xf32>
    %74 = vector.broadcast %2 : vector<1x32xf32> to vector<6x32xf32>
    %75 = arith.mulf %73, %74 : vector<6x32xf32>
    %76 = vector.broadcast %3 : vector<1x32xf32> to vector<6x32xf32>
    %77 = arith.addf %75, %76 : vector<6x32xf32>
    %c1_49 = arith.constant 1 : index
    %c0_50 = arith.constant 0 : index
    %c0_51 = arith.constant 0 : index
    %78 = vector.load %arg2[%c1_49, %c0_50, %c0_51] : memref<2x6x32xf32, #tpu.memory_space<vmem>>, vector<1x6x32xf32>
    %79 = vector.shape_cast %78 : vector<1x6x32xf32> to vector<6x32xf32>
    %80 = arith.addf %50, %79 : vector<6x32xf32>
    %81 = arith.addf %80, %77 : vector<6x32xf32>
    %c1_52 = arith.constant 1 : index
    %c0_53 = arith.constant 0 : index
    %c0_54 = arith.constant 0 : index
    %82 = vector.load %arg4[%c1_52, %c0_53, %c0_54] : memref<2x6x32xf32, #tpu.memory_space<vmem>>, vector<1x6x32xf32>
    %83 = vector.shape_cast %82 : vector<1x6x32xf32> to vector<6x32xf32>
    %c1_55 = arith.constant 1 : index
    %c0_56 = arith.constant 0 : index
    %c0_57 = arith.constant 0 : index
    %84 = vector.load %arg5[%c1_55, %c0_56, %c0_57] : memref<2x1x6xf32, #tpu.memory_space<vmem>>, vector<1x1x6xf32>
    %85 = vector.shape_cast %84 : vector<1x1x6xf32> to vector<1x6xf32>
    %c1_58 = arith.constant 1 : index
    %c0_59 = arith.constant 0 : index
    %c0_60 = arith.constant 0 : index
    %86 = vector.load %arg6[%c1_58, %c0_59, %c0_60] : memref<2x6x6xf32, #tpu.memory_space<vmem>>, vector<1x6x6xf32>
    %87 = vector.shape_cast %86 : vector<1x6x6xf32> to vector<6x6xf32>
    %c0_61 = arith.constant 0 : index
    %c0_62 = arith.constant 0 : index
    %c0_63 = arith.constant 0 : index
    %88 = vector.load %arg11[%c0_61, %c0_62, %c0_63] : memref<2x32x32xf32, #tpu.memory_space<vmem>>, vector<1x32x32xf32>
    %89 = vector.shape_cast %88 : vector<1x32x32xf32> to vector<32x32xf32>
    %c0_64 = arith.constant 0 : index
    %c0_65 = arith.constant 0 : index
    %c0_66 = arith.constant 0 : index
    %90 = vector.load %arg12[%c0_64, %c0_65, %c0_66] : memref<2x1x32xf32, #tpu.memory_space<vmem>>, vector<1x1x32xf32>
    %91 = vector.shape_cast %90 : vector<1x1x32xf32> to vector<1x32xf32>
    %c0_67 = arith.constant 0 : index
    %c0_68 = arith.constant 0 : index
    %c0_69 = arith.constant 0 : index
    %92 = vector.load %arg13[%c0_67, %c0_68, %c0_69] : memref<2x32x64xf32, #tpu.memory_space<vmem>>, vector<1x32x64xf32>
    %93 = vector.shape_cast %92 : vector<1x32x64xf32> to vector<32x64xf32>
    %c0_70 = arith.constant 0 : index
    %c0_71 = arith.constant 0 : index
    %c0_72 = arith.constant 0 : index
    %94 = vector.load %arg14[%c0_70, %c0_71, %c0_72] : memref<2x1x64xf32, #tpu.memory_space<vmem>>, vector<1x1x64xf32>
    %95 = vector.shape_cast %94 : vector<1x1x64xf32> to vector<1x64xf32>
    %c0_73 = arith.constant 0 : index
    %c0_74 = arith.constant 0 : index
    %c0_75 = arith.constant 0 : index
    %96 = vector.load %arg15[%c0_73, %c0_74, %c0_75] : memref<2x32x32xf32, #tpu.memory_space<vmem>>, vector<1x32x32xf32>
    %97 = vector.shape_cast %96 : vector<1x32x32xf32> to vector<32x32xf32>
    %c0_76 = arith.constant 0 : index
    %c0_77 = arith.constant 0 : index
    %c0_78 = arith.constant 0 : index
    %98 = vector.load %arg16[%c0_76, %c0_77, %c0_78] : memref<2x1x32xf32, #tpu.memory_space<vmem>>, vector<1x1x32xf32>
    %99 = vector.shape_cast %98 : vector<1x1x32xf32> to vector<1x32xf32>
    %c0_79 = arith.constant 0 : index
    %c0_80 = arith.constant 0 : index
    %c0_81 = arith.constant 0 : index
    %100 = vector.load %arg17[%c0_79, %c0_80, %c0_81] : memref<2x1x32xf32, #tpu.memory_space<vmem>>, vector<1x1x32xf32>
    %101 = vector.shape_cast %100 : vector<1x1x32xf32> to vector<1x32xf32>
    %c0_82 = arith.constant 0 : index
    %c0_83 = arith.constant 0 : index
    %c0_84 = arith.constant 0 : index
    %102 = vector.load %arg18[%c0_82, %c0_83, %c0_84] : memref<2x1x32xf32, #tpu.memory_space<vmem>>, vector<1x1x32xf32>
    %103 = vector.shape_cast %102 : vector<1x1x32xf32> to vector<1x32xf32>
    %c0_85 = arith.constant 0 : index
    %c0_86 = arith.constant 0 : index
    %c0_87 = arith.constant 0 : index
    %104 = vector.load %arg19[%c0_85, %c0_86, %c0_87] : memref<2x32x96xf32, #tpu.memory_space<vmem>>, vector<1x32x96xf32>
    %105 = vector.shape_cast %104 : vector<1x32x96xf32> to vector<32x96xf32>
    %c0_88 = arith.constant 0 : index
    %c0_89 = arith.constant 0 : index
    %c0_90 = arith.constant 0 : index
    %106 = vector.load %arg20[%c0_88, %c0_89, %c0_90] : memref<2x1x96xf32, #tpu.memory_space<vmem>>, vector<1x1x96xf32>
    %107 = vector.shape_cast %106 : vector<1x1x96xf32> to vector<1x96xf32>
    %c0_91 = arith.constant 0 : index
    %c0_92 = arith.constant 0 : index
    %c0_93 = arith.constant 0 : index
    %108 = vector.load %arg21[%c0_91, %c0_92, %c0_93] : memref<2x32x32xf32, #tpu.memory_space<vmem>>, vector<1x32x32xf32>
    %109 = vector.shape_cast %108 : vector<1x32x32xf32> to vector<32x32xf32>
    %c0_94 = arith.constant 0 : index
    %c0_95 = arith.constant 0 : index
    %c0_96 = arith.constant 0 : index
    %110 = vector.load %arg22[%c0_94, %c0_95, %c0_96] : memref<2x1x32xf32, #tpu.memory_space<vmem>>, vector<1x1x32xf32>
    %111 = vector.shape_cast %110 : vector<1x1x32xf32> to vector<1x32xf32>
    %c0_97 = arith.constant 0 : index
    %c0_98 = arith.constant 0 : index
    %c0_99 = arith.constant 0 : index
    %112 = vector.load %arg23[%c0_97, %c0_98, %c0_99] : memref<2x1x32xf32, #tpu.memory_space<vmem>>, vector<1x1x32xf32>
    %113 = vector.shape_cast %112 : vector<1x1x32xf32> to vector<1x32xf32>
    %c0_100 = arith.constant 0 : index
    %c0_101 = arith.constant 0 : index
    %c0_102 = arith.constant 0 : index
    %114 = vector.load %arg24[%c0_100, %c0_101, %c0_102] : memref<2x1x32xf32, #tpu.memory_space<vmem>>, vector<1x1x32xf32>
    %115 = vector.shape_cast %114 : vector<1x1x32xf32> to vector<1x32xf32>
    %c0_103 = arith.constant 0 : index
    %c0_104 = arith.constant 0 : index
    %c0_105 = arith.constant 0 : index
    %116 = vector.load %arg25[%c0_103, %c0_104, %c0_105] : memref<2x32x64xf32, #tpu.memory_space<vmem>>, vector<1x32x64xf32>
    %117 = vector.shape_cast %116 : vector<1x32x64xf32> to vector<32x64xf32>
    %c0_106 = arith.constant 0 : index
    %c0_107 = arith.constant 0 : index
    %c0_108 = arith.constant 0 : index
    %118 = vector.load %arg26[%c0_106, %c0_107, %c0_108] : memref<2x1x64xf32, #tpu.memory_space<vmem>>, vector<1x1x64xf32>
    %119 = vector.shape_cast %118 : vector<1x1x64xf32> to vector<1x64xf32>
    %c0_109 = arith.constant 0 : index
    %c0_110 = arith.constant 0 : index
    %c0_111 = arith.constant 0 : index
    %120 = vector.load %arg27[%c0_109, %c0_110, %c0_111] : memref<2x64x32xf32, #tpu.memory_space<vmem>>, vector<1x64x32xf32>
    %121 = vector.shape_cast %120 : vector<1x64x32xf32> to vector<64x32xf32>
    %c0_112 = arith.constant 0 : index
    %c0_113 = arith.constant 0 : index
    %c0_114 = arith.constant 0 : index
    %122 = vector.load %arg28[%c0_112, %c0_113, %c0_114] : memref<2x1x32xf32, #tpu.memory_space<vmem>>, vector<1x1x32xf32>
    %123 = vector.shape_cast %122 : vector<1x1x32xf32> to vector<1x32xf32>
    %c0_115 = arith.constant 0 : index
    %c0_116 = arith.constant 0 : index
    %c0_117 = arith.constant 0 : index
    %124 = vector.load %arg29[%c0_115, %c0_116, %c0_117] : memref<2x1x32xf32, #tpu.memory_space<vmem>>, vector<1x1x32xf32>
    %125 = vector.shape_cast %124 : vector<1x1x32xf32> to vector<1x32xf32>
    %c0_118 = arith.constant 0 : index
    %c0_119 = arith.constant 0 : index
    %c0_120 = arith.constant 0 : index
    %126 = vector.load %arg30[%c0_118, %c0_119, %c0_120] : memref<2x1x32xf32, #tpu.memory_space<vmem>>, vector<1x1x32xf32>
    %127 = vector.shape_cast %126 : vector<1x1x32xf32> to vector<1x32xf32>
    %cst_121 = arith.constant dense<0.000000e+00> : vector<6x32xf32>
    %128 = tpu.matmul %39, %89, %cst_121 {dimension_numbers = #tpu.dot_dimension_numbers<[1], [0], [0], [1], [0, 0, 1, 1], [], []>} : vector<6x32xf32>, vector<32x32xf32>, vector<6x32xf32> -> vector<6x32xf32>
    %129 = vector.broadcast %91 : vector<1x32xf32> to vector<6x32xf32>
    %130 = arith.addf %128, %129 : vector<6x32xf32>
    %cst_122 = arith.constant dense<0.000000e+00> : vector<6x64xf32>
    %131 = tpu.matmul %41, %93, %cst_122 {dimension_numbers = #tpu.dot_dimension_numbers<[1], [0], [0], [1], [0, 0, 1, 1], [], []>} : vector<6x32xf32>, vector<32x64xf32>, vector<6x64xf32> -> vector<6x64xf32>
    %132 = vector.broadcast %95 : vector<1x64xf32> to vector<6x64xf32>
    %133 = arith.addf %131, %132 : vector<6x64xf32>
    %134 = vector.extract_strided_slice %133 {offsets = [0, 0], sizes = [6, 32], strides = [1, 1]} : vector<6x64xf32> to vector<6x32xf32>
    %135 = vector.extract_strided_slice %133 {offsets = [0, 32], sizes = [6, 32], strides = [1, 1]} : vector<6x64xf32> to vector<6x32xf32>
    %136 = vector.extract_strided_slice %130 {offsets = [0, 0], sizes = [6, 8], strides = [1, 1]} : vector<6x32xf32> to vector<6x8xf32>
    %137 = vector.extract_strided_slice %134 {offsets = [0, 0], sizes = [6, 8], strides = [1, 1]} : vector<6x32xf32> to vector<6x8xf32>
    %cst_123 = arith.constant dense<0.000000e+00> : vector<6x6xf32>
    %138 = tpu.matmul %136, %137, %cst_123 {dimension_numbers = #tpu.dot_dimension_numbers<[1], [1], [0], [0], [0, 0, 1, 0], [], []>} : vector<6x8xf32>, vector<6x8xf32>, vector<6x6xf32> -> vector<6x6xf32>
    %139 = vector.broadcast %43 : vector<1x6xf32> to vector<6x6xf32>
    %140 = arith.addf %138, %139 : vector<6x6xf32>
    %cst_124 = arith.constant dense<0xFF800000> : vector<6xf32>
    %141 = vector.multi_reduction <maximumf>, %140, %cst_124 [1] : vector<6x6xf32> to vector<6xf32>
    %142 = vector.shape_cast %141 : vector<6xf32> to vector<6x1xf32>
    %143 = vector.broadcast %142 : vector<6x1xf32> to vector<6x6xf32>
    %144 = arith.subf %140, %143 : vector<6x6xf32>
    %145 = math.exp %144 : vector<6x6xf32>
    %cst_125 = arith.constant dense<0.000000e+00> : vector<6xf32>
    %146 = vector.multi_reduction <add>, %145, %cst_125 [1] : vector<6x6xf32> to vector<6xf32>
    %147 = vector.shape_cast %146 : vector<6xf32> to vector<6x1xf32>
    %148 = tpu.reciprocal %147 {approx = true} : vector<6x1xf32> -> vector<6x1xf32>
    %149 = vector.broadcast %148 : vector<6x1xf32> to vector<6x6xf32>
    %150 = arith.mulf %145, %149 : vector<6x6xf32>
    %151 = vector.extract_strided_slice %135 {offsets = [0, 0], sizes = [6, 8], strides = [1, 1]} : vector<6x32xf32> to vector<6x8xf32>
    %cst_126 = arith.constant dense<0.000000e+00> : vector<6x8xf32>
    %152 = tpu.matmul %150, %151, %cst_126 {dimension_numbers = #tpu.dot_dimension_numbers<[1], [0], [0], [1], [0, 0, 1, 1], [], []>} : vector<6x6xf32>, vector<6x8xf32>, vector<6x8xf32> -> vector<6x8xf32>
    %153 = vector.extract_strided_slice %97 {offsets = [0, 0], sizes = [8, 32], strides = [1, 1]} : vector<32x32xf32> to vector<8x32xf32>
    %cst_127 = arith.constant dense<0.000000e+00> : vector<6x32xf32>
    %154 = tpu.matmul %152, %153, %cst_127 {dimension_numbers = #tpu.dot_dimension_numbers<[1], [0], [0], [1], [0, 0, 1, 1], [], []>} : vector<6x8xf32>, vector<8x32xf32>, vector<6x32xf32> -> vector<6x32xf32>
    %155 = vector.extract_strided_slice %130 {offsets = [0, 8], sizes = [6, 8], strides = [1, 1]} : vector<6x32xf32> to vector<6x8xf32>
    %156 = vector.extract_strided_slice %134 {offsets = [0, 8], sizes = [6, 8], strides = [1, 1]} : vector<6x32xf32> to vector<6x8xf32>
    %cst_128 = arith.constant dense<0.000000e+00> : vector<6x6xf32>
    %157 = tpu.matmul %155, %156, %cst_128 {dimension_numbers = #tpu.dot_dimension_numbers<[1], [1], [0], [0], [0, 0, 1, 0], [], []>} : vector<6x8xf32>, vector<6x8xf32>, vector<6x6xf32> -> vector<6x6xf32>
    %158 = vector.broadcast %43 : vector<1x6xf32> to vector<6x6xf32>
    %159 = arith.addf %157, %158 : vector<6x6xf32>
    %cst_129 = arith.constant dense<0xFF800000> : vector<6xf32>
    %160 = vector.multi_reduction <maximumf>, %159, %cst_129 [1] : vector<6x6xf32> to vector<6xf32>
    %161 = vector.shape_cast %160 : vector<6xf32> to vector<6x1xf32>
    %162 = vector.broadcast %161 : vector<6x1xf32> to vector<6x6xf32>
    %163 = arith.subf %159, %162 : vector<6x6xf32>
    %164 = math.exp %163 : vector<6x6xf32>
    %cst_130 = arith.constant dense<0.000000e+00> : vector<6xf32>
    %165 = vector.multi_reduction <add>, %164, %cst_130 [1] : vector<6x6xf32> to vector<6xf32>
    %166 = vector.shape_cast %165 : vector<6xf32> to vector<6x1xf32>
    %167 = tpu.reciprocal %166 {approx = true} : vector<6x1xf32> -> vector<6x1xf32>
    %168 = vector.broadcast %167 : vector<6x1xf32> to vector<6x6xf32>
    %169 = arith.mulf %164, %168 : vector<6x6xf32>
    %170 = vector.extract_strided_slice %135 {offsets = [0, 8], sizes = [6, 8], strides = [1, 1]} : vector<6x32xf32> to vector<6x8xf32>
    %cst_131 = arith.constant dense<0.000000e+00> : vector<6x8xf32>
    %171 = tpu.matmul %169, %170, %cst_131 {dimension_numbers = #tpu.dot_dimension_numbers<[1], [0], [0], [1], [0, 0, 1, 1], [], []>} : vector<6x6xf32>, vector<6x8xf32>, vector<6x8xf32> -> vector<6x8xf32>
    %172 = vector.extract_strided_slice %97 {offsets = [8, 0], sizes = [8, 32], strides = [1, 1]} : vector<32x32xf32> to vector<8x32xf32>
    %cst_132 = arith.constant dense<0.000000e+00> : vector<6x32xf32>
    %173 = tpu.matmul %171, %172, %cst_132 {dimension_numbers = #tpu.dot_dimension_numbers<[1], [0], [0], [1], [0, 0, 1, 1], [], []>} : vector<6x8xf32>, vector<8x32xf32>, vector<6x32xf32> -> vector<6x32xf32>
    %174 = arith.addf %154, %173 : vector<6x32xf32>
    %175 = vector.extract_strided_slice %130 {offsets = [0, 16], sizes = [6, 8], strides = [1, 1]} : vector<6x32xf32> to vector<6x8xf32>
    %176 = vector.extract_strided_slice %134 {offsets = [0, 16], sizes = [6, 8], strides = [1, 1]} : vector<6x32xf32> to vector<6x8xf32>
    %cst_133 = arith.constant dense<0.000000e+00> : vector<6x6xf32>
    %177 = tpu.matmul %175, %176, %cst_133 {dimension_numbers = #tpu.dot_dimension_numbers<[1], [1], [0], [0], [0, 0, 1, 0], [], []>} : vector<6x8xf32>, vector<6x8xf32>, vector<6x6xf32> -> vector<6x6xf32>
    %178 = vector.broadcast %43 : vector<1x6xf32> to vector<6x6xf32>
    %179 = arith.addf %177, %178 : vector<6x6xf32>
    %cst_134 = arith.constant dense<0xFF800000> : vector<6xf32>
    %180 = vector.multi_reduction <maximumf>, %179, %cst_134 [1] : vector<6x6xf32> to vector<6xf32>
    %181 = vector.shape_cast %180 : vector<6xf32> to vector<6x1xf32>
    %182 = vector.broadcast %181 : vector<6x1xf32> to vector<6x6xf32>
    %183 = arith.subf %179, %182 : vector<6x6xf32>
    %184 = math.exp %183 : vector<6x6xf32>
    %cst_135 = arith.constant dense<0.000000e+00> : vector<6xf32>
    %185 = vector.multi_reduction <add>, %184, %cst_135 [1] : vector<6x6xf32> to vector<6xf32>
    %186 = vector.shape_cast %185 : vector<6xf32> to vector<6x1xf32>
    %187 = tpu.reciprocal %186 {approx = true} : vector<6x1xf32> -> vector<6x1xf32>
    %188 = vector.broadcast %187 : vector<6x1xf32> to vector<6x6xf32>
    %189 = arith.mulf %184, %188 : vector<6x6xf32>
    %190 = vector.extract_strided_slice %135 {offsets = [0, 16], sizes = [6, 8], strides = [1, 1]} : vector<6x32xf32> to vector<6x8xf32>
    %cst_136 = arith.constant dense<0.000000e+00> : vector<6x8xf32>
    %191 = tpu.matmul %189, %190, %cst_136 {dimension_numbers = #tpu.dot_dimension_numbers<[1], [0], [0], [1], [0, 0, 1, 1], [], []>} : vector<6x6xf32>, vector<6x8xf32>, vector<6x8xf32> -> vector<6x8xf32>
    %192 = vector.extract_strided_slice %97 {offsets = [16, 0], sizes = [8, 32], strides = [1, 1]} : vector<32x32xf32> to vector<8x32xf32>
    %cst_137 = arith.constant dense<0.000000e+00> : vector<6x32xf32>
    %193 = tpu.matmul %191, %192, %cst_137 {dimension_numbers = #tpu.dot_dimension_numbers<[1], [0], [0], [1], [0, 0, 1, 1], [], []>} : vector<6x8xf32>, vector<8x32xf32>, vector<6x32xf32> -> vector<6x32xf32>
    %194 = arith.addf %174, %193 : vector<6x32xf32>
    %195 = vector.extract_strided_slice %130 {offsets = [0, 24], sizes = [6, 8], strides = [1, 1]} : vector<6x32xf32> to vector<6x8xf32>
    %196 = vector.extract_strided_slice %134 {offsets = [0, 24], sizes = [6, 8], strides = [1, 1]} : vector<6x32xf32> to vector<6x8xf32>
    %cst_138 = arith.constant dense<0.000000e+00> : vector<6x6xf32>
    %197 = tpu.matmul %195, %196, %cst_138 {dimension_numbers = #tpu.dot_dimension_numbers<[1], [1], [0], [0], [0, 0, 1, 0], [], []>} : vector<6x8xf32>, vector<6x8xf32>, vector<6x6xf32> -> vector<6x6xf32>
    %198 = vector.broadcast %43 : vector<1x6xf32> to vector<6x6xf32>
    %199 = arith.addf %197, %198 : vector<6x6xf32>
    %cst_139 = arith.constant dense<0xFF800000> : vector<6xf32>
    %200 = vector.multi_reduction <maximumf>, %199, %cst_139 [1] : vector<6x6xf32> to vector<6xf32>
    %201 = vector.shape_cast %200 : vector<6xf32> to vector<6x1xf32>
    %202 = vector.broadcast %201 : vector<6x1xf32> to vector<6x6xf32>
    %203 = arith.subf %199, %202 : vector<6x6xf32>
    %204 = math.exp %203 : vector<6x6xf32>
    %cst_140 = arith.constant dense<0.000000e+00> : vector<6xf32>
    %205 = vector.multi_reduction <add>, %204, %cst_140 [1] : vector<6x6xf32> to vector<6xf32>
    %206 = vector.shape_cast %205 : vector<6xf32> to vector<6x1xf32>
    %207 = tpu.reciprocal %206 {approx = true} : vector<6x1xf32> -> vector<6x1xf32>
    %208 = vector.broadcast %207 : vector<6x1xf32> to vector<6x6xf32>
    %209 = arith.mulf %204, %208 : vector<6x6xf32>
    %210 = vector.extract_strided_slice %135 {offsets = [0, 24], sizes = [6, 8], strides = [1, 1]} : vector<6x32xf32> to vector<6x8xf32>
    %cst_141 = arith.constant dense<0.000000e+00> : vector<6x8xf32>
    %211 = tpu.matmul %209, %210, %cst_141 {dimension_numbers = #tpu.dot_dimension_numbers<[1], [0], [0], [1], [0, 0, 1, 1], [], []>} : vector<6x6xf32>, vector<6x8xf32>, vector<6x8xf32> -> vector<6x8xf32>
    %212 = vector.extract_strided_slice %97 {offsets = [24, 0], sizes = [8, 32], strides = [1, 1]} : vector<32x32xf32> to vector<8x32xf32>
    %cst_142 = arith.constant dense<0.000000e+00> : vector<6x32xf32>
    %213 = tpu.matmul %211, %212, %cst_142 {dimension_numbers = #tpu.dot_dimension_numbers<[1], [0], [0], [1], [0, 0, 1, 1], [], []>} : vector<6x8xf32>, vector<8x32xf32>, vector<6x32xf32> -> vector<6x32xf32>
    %214 = arith.addf %194, %213 : vector<6x32xf32>
    %215 = vector.broadcast %99 : vector<1x32xf32> to vector<6x32xf32>
    %216 = arith.addf %214, %215 : vector<6x32xf32>
    %217 = arith.addf %216, %39 : vector<6x32xf32>
    %cst_143 = arith.constant dense<0.000000e+00> : vector<6xf32>
    %218 = vector.multi_reduction <add>, %217, %cst_143 [1] : vector<6x32xf32> to vector<6xf32>
    %219 = vector.shape_cast %218 : vector<6xf32> to vector<6x1xf32>
    %cst_144 = arith.constant 3.200000e+01 : f32
    %220 = vector.broadcast %cst_144 : f32 to vector<6x1xf32>
    %221 = arith.divf %219, %220 : vector<6x1xf32>
    %222 = vector.broadcast %221 : vector<6x1xf32> to vector<6x32xf32>
    %223 = arith.subf %217, %222 : vector<6x32xf32>
    %224 = arith.mulf %223, %223 : vector<6x32xf32>
    %cst_145 = arith.constant dense<0.000000e+00> : vector<6xf32>
    %225 = vector.multi_reduction <add>, %224, %cst_145 [1] : vector<6x32xf32> to vector<6xf32>
    %226 = vector.shape_cast %225 : vector<6xf32> to vector<6x1xf32>
    %cst_146 = arith.constant 3.200000e+01 : f32
    %227 = vector.broadcast %cst_146 : f32 to vector<6x1xf32>
    %228 = arith.divf %226, %227 : vector<6x1xf32>
    %229 = vector.broadcast %221 : vector<6x1xf32> to vector<6x32xf32>
    %230 = arith.subf %217, %229 : vector<6x32xf32>
    %cst_147 = arith.constant 9.99999996E-13 : f32
    %231 = vector.broadcast %cst_147 : f32 to vector<6x1xf32>
    %232 = arith.addf %228, %231 : vector<6x1xf32>
    %233 = math.rsqrt %232 : vector<6x1xf32>
    %234 = vector.broadcast %233 : vector<6x1xf32> to vector<6x32xf32>
    %235 = arith.mulf %230, %234 : vector<6x32xf32>
    %236 = vector.broadcast %101 : vector<1x32xf32> to vector<6x32xf32>
    %237 = arith.mulf %235, %236 : vector<6x32xf32>
    %238 = vector.broadcast %103 : vector<1x32xf32> to vector<6x32xf32>
    %239 = arith.addf %237, %238 : vector<6x32xf32>
    %cst_148 = arith.constant dense<0.000000e+00> : vector<6x96xf32>
    %240 = tpu.matmul %239, %105, %cst_148 {dimension_numbers = #tpu.dot_dimension_numbers<[1], [0], [0], [1], [0, 0, 1, 1], [], []>} : vector<6x32xf32>, vector<32x96xf32>, vector<6x96xf32> -> vector<6x96xf32>
    %241 = vector.broadcast %107 : vector<1x96xf32> to vector<6x96xf32>
    %242 = arith.addf %240, %241 : vector<6x96xf32>
    %243 = vector.extract_strided_slice %242 {offsets = [0, 0], sizes = [6, 32], strides = [1, 1]} : vector<6x96xf32> to vector<6x32xf32>
    %244 = vector.extract_strided_slice %242 {offsets = [0, 32], sizes = [6, 32], strides = [1, 1]} : vector<6x96xf32> to vector<6x32xf32>
    %245 = vector.extract_strided_slice %242 {offsets = [0, 64], sizes = [6, 32], strides = [1, 1]} : vector<6x96xf32> to vector<6x32xf32>
    %246 = vector.extract_strided_slice %243 {offsets = [0, 0], sizes = [6, 8], strides = [1, 1]} : vector<6x32xf32> to vector<6x8xf32>
    %247 = vector.extract_strided_slice %244 {offsets = [0, 0], sizes = [6, 8], strides = [1, 1]} : vector<6x32xf32> to vector<6x8xf32>
    %cst_149 = arith.constant dense<0.000000e+00> : vector<6x6xf32>
    %248 = tpu.matmul %246, %247, %cst_149 {dimension_numbers = #tpu.dot_dimension_numbers<[1], [1], [0], [0], [0, 0, 1, 0], [], []>} : vector<6x8xf32>, vector<6x8xf32>, vector<6x6xf32> -> vector<6x6xf32>
    %249 = arith.addf %248, %45 : vector<6x6xf32>
    %cst_150 = arith.constant dense<0xFF800000> : vector<6xf32>
    %250 = vector.multi_reduction <maximumf>, %249, %cst_150 [1] : vector<6x6xf32> to vector<6xf32>
    %251 = vector.shape_cast %250 : vector<6xf32> to vector<6x1xf32>
    %252 = vector.broadcast %251 : vector<6x1xf32> to vector<6x6xf32>
    %253 = arith.subf %249, %252 : vector<6x6xf32>
    %254 = math.exp %253 : vector<6x6xf32>
    %cst_151 = arith.constant dense<0.000000e+00> : vector<6xf32>
    %255 = vector.multi_reduction <add>, %254, %cst_151 [1] : vector<6x6xf32> to vector<6xf32>
    %256 = vector.shape_cast %255 : vector<6xf32> to vector<6x1xf32>
    %257 = tpu.reciprocal %256 {approx = true} : vector<6x1xf32> -> vector<6x1xf32>
    %258 = vector.broadcast %257 : vector<6x1xf32> to vector<6x6xf32>
    %259 = arith.mulf %254, %258 : vector<6x6xf32>
    %260 = vector.extract_strided_slice %245 {offsets = [0, 0], sizes = [6, 8], strides = [1, 1]} : vector<6x32xf32> to vector<6x8xf32>
    %cst_152 = arith.constant dense<0.000000e+00> : vector<6x8xf32>
    %261 = tpu.matmul %259, %260, %cst_152 {dimension_numbers = #tpu.dot_dimension_numbers<[1], [0], [0], [1], [0, 0, 1, 1], [], []>} : vector<6x6xf32>, vector<6x8xf32>, vector<6x8xf32> -> vector<6x8xf32>
    %262 = vector.extract_strided_slice %109 {offsets = [0, 0], sizes = [8, 32], strides = [1, 1]} : vector<32x32xf32> to vector<8x32xf32>
    %cst_153 = arith.constant dense<0.000000e+00> : vector<6x32xf32>
    %263 = tpu.matmul %261, %262, %cst_153 {dimension_numbers = #tpu.dot_dimension_numbers<[1], [0], [0], [1], [0, 0, 1, 1], [], []>} : vector<6x8xf32>, vector<8x32xf32>, vector<6x32xf32> -> vector<6x32xf32>
    %264 = vector.extract_strided_slice %243 {offsets = [0, 8], sizes = [6, 8], strides = [1, 1]} : vector<6x32xf32> to vector<6x8xf32>
    %265 = vector.extract_strided_slice %244 {offsets = [0, 8], sizes = [6, 8], strides = [1, 1]} : vector<6x32xf32> to vector<6x8xf32>
    %cst_154 = arith.constant dense<0.000000e+00> : vector<6x6xf32>
    %266 = tpu.matmul %264, %265, %cst_154 {dimension_numbers = #tpu.dot_dimension_numbers<[1], [1], [0], [0], [0, 0, 1, 0], [], []>} : vector<6x8xf32>, vector<6x8xf32>, vector<6x6xf32> -> vector<6x6xf32>
    %267 = arith.addf %266, %45 : vector<6x6xf32>
    %cst_155 = arith.constant dense<0xFF800000> : vector<6xf32>
    %268 = vector.multi_reduction <maximumf>, %267, %cst_155 [1] : vector<6x6xf32> to vector<6xf32>
    %269 = vector.shape_cast %268 : vector<6xf32> to vector<6x1xf32>
    %270 = vector.broadcast %269 : vector<6x1xf32> to vector<6x6xf32>
    %271 = arith.subf %267, %270 : vector<6x6xf32>
    %272 = math.exp %271 : vector<6x6xf32>
    %cst_156 = arith.constant dense<0.000000e+00> : vector<6xf32>
    %273 = vector.multi_reduction <add>, %272, %cst_156 [1] : vector<6x6xf32> to vector<6xf32>
    %274 = vector.shape_cast %273 : vector<6xf32> to vector<6x1xf32>
    %275 = tpu.reciprocal %274 {approx = true} : vector<6x1xf32> -> vector<6x1xf32>
    %276 = vector.broadcast %275 : vector<6x1xf32> to vector<6x6xf32>
    %277 = arith.mulf %272, %276 : vector<6x6xf32>
    %278 = vector.extract_strided_slice %245 {offsets = [0, 8], sizes = [6, 8], strides = [1, 1]} : vector<6x32xf32> to vector<6x8xf32>
    %cst_157 = arith.constant dense<0.000000e+00> : vector<6x8xf32>
    %279 = tpu.matmul %277, %278, %cst_157 {dimension_numbers = #tpu.dot_dimension_numbers<[1], [0], [0], [1], [0, 0, 1, 1], [], []>} : vector<6x6xf32>, vector<6x8xf32>, vector<6x8xf32> -> vector<6x8xf32>
    %280 = vector.extract_strided_slice %109 {offsets = [8, 0], sizes = [8, 32], strides = [1, 1]} : vector<32x32xf32> to vector<8x32xf32>
    %cst_158 = arith.constant dense<0.000000e+00> : vector<6x32xf32>
    %281 = tpu.matmul %279, %280, %cst_158 {dimension_numbers = #tpu.dot_dimension_numbers<[1], [0], [0], [1], [0, 0, 1, 1], [], []>} : vector<6x8xf32>, vector<8x32xf32>, vector<6x32xf32> -> vector<6x32xf32>
    %282 = arith.addf %263, %281 : vector<6x32xf32>
    %283 = vector.extract_strided_slice %243 {offsets = [0, 16], sizes = [6, 8], strides = [1, 1]} : vector<6x32xf32> to vector<6x8xf32>
    %284 = vector.extract_strided_slice %244 {offsets = [0, 16], sizes = [6, 8], strides = [1, 1]} : vector<6x32xf32> to vector<6x8xf32>
    %cst_159 = arith.constant dense<0.000000e+00> : vector<6x6xf32>
    %285 = tpu.matmul %283, %284, %cst_159 {dimension_numbers = #tpu.dot_dimension_numbers<[1], [1], [0], [0], [0, 0, 1, 0], [], []>} : vector<6x8xf32>, vector<6x8xf32>, vector<6x6xf32> -> vector<6x6xf32>
    %286 = arith.addf %285, %45 : vector<6x6xf32>
    %cst_160 = arith.constant dense<0xFF800000> : vector<6xf32>
    %287 = vector.multi_reduction <maximumf>, %286, %cst_160 [1] : vector<6x6xf32> to vector<6xf32>
    %288 = vector.shape_cast %287 : vector<6xf32> to vector<6x1xf32>
    %289 = vector.broadcast %288 : vector<6x1xf32> to vector<6x6xf32>
    %290 = arith.subf %286, %289 : vector<6x6xf32>
    %291 = math.exp %290 : vector<6x6xf32>
    %cst_161 = arith.constant dense<0.000000e+00> : vector<6xf32>
    %292 = vector.multi_reduction <add>, %291, %cst_161 [1] : vector<6x6xf32> to vector<6xf32>
    %293 = vector.shape_cast %292 : vector<6xf32> to vector<6x1xf32>
    %294 = tpu.reciprocal %293 {approx = true} : vector<6x1xf32> -> vector<6x1xf32>
    %295 = vector.broadcast %294 : vector<6x1xf32> to vector<6x6xf32>
    %296 = arith.mulf %291, %295 : vector<6x6xf32>
    %297 = vector.extract_strided_slice %245 {offsets = [0, 16], sizes = [6, 8], strides = [1, 1]} : vector<6x32xf32> to vector<6x8xf32>
    %cst_162 = arith.constant dense<0.000000e+00> : vector<6x8xf32>
    %298 = tpu.matmul %296, %297, %cst_162 {dimension_numbers = #tpu.dot_dimension_numbers<[1], [0], [0], [1], [0, 0, 1, 1], [], []>} : vector<6x6xf32>, vector<6x8xf32>, vector<6x8xf32> -> vector<6x8xf32>
    %299 = vector.extract_strided_slice %109 {offsets = [16, 0], sizes = [8, 32], strides = [1, 1]} : vector<32x32xf32> to vector<8x32xf32>
    %cst_163 = arith.constant dense<0.000000e+00> : vector<6x32xf32>
    %300 = tpu.matmul %298, %299, %cst_163 {dimension_numbers = #tpu.dot_dimension_numbers<[1], [0], [0], [1], [0, 0, 1, 1], [], []>} : vector<6x8xf32>, vector<8x32xf32>, vector<6x32xf32> -> vector<6x32xf32>
    %301 = arith.addf %282, %300 : vector<6x32xf32>
    %302 = vector.extract_strided_slice %243 {offsets = [0, 24], sizes = [6, 8], strides = [1, 1]} : vector<6x32xf32> to vector<6x8xf32>
    %303 = vector.extract_strided_slice %244 {offsets = [0, 24], sizes = [6, 8], strides = [1, 1]} : vector<6x32xf32> to vector<6x8xf32>
    %cst_164 = arith.constant dense<0.000000e+00> : vector<6x6xf32>
    %304 = tpu.matmul %302, %303, %cst_164 {dimension_numbers = #tpu.dot_dimension_numbers<[1], [1], [0], [0], [0, 0, 1, 0], [], []>} : vector<6x8xf32>, vector<6x8xf32>, vector<6x6xf32> -> vector<6x6xf32>
    %305 = arith.addf %304, %45 : vector<6x6xf32>
    %cst_165 = arith.constant dense<0xFF800000> : vector<6xf32>
    %306 = vector.multi_reduction <maximumf>, %305, %cst_165 [1] : vector<6x6xf32> to vector<6xf32>
    %307 = vector.shape_cast %306 : vector<6xf32> to vector<6x1xf32>
    %308 = vector.broadcast %307 : vector<6x1xf32> to vector<6x6xf32>
    %309 = arith.subf %305, %308 : vector<6x6xf32>
    %310 = math.exp %309 : vector<6x6xf32>
    %cst_166 = arith.constant dense<0.000000e+00> : vector<6xf32>
    %311 = vector.multi_reduction <add>, %310, %cst_166 [1] : vector<6x6xf32> to vector<6xf32>
    %312 = vector.shape_cast %311 : vector<6xf32> to vector<6x1xf32>
    %313 = tpu.reciprocal %312 {approx = true} : vector<6x1xf32> -> vector<6x1xf32>
    %314 = vector.broadcast %313 : vector<6x1xf32> to vector<6x6xf32>
    %315 = arith.mulf %310, %314 : vector<6x6xf32>
    %316 = vector.extract_strided_slice %245 {offsets = [0, 24], sizes = [6, 8], strides = [1, 1]} : vector<6x32xf32> to vector<6x8xf32>
    %cst_167 = arith.constant dense<0.000000e+00> : vector<6x8xf32>
    %317 = tpu.matmul %315, %316, %cst_167 {dimension_numbers = #tpu.dot_dimension_numbers<[1], [0], [0], [1], [0, 0, 1, 1], [], []>} : vector<6x6xf32>, vector<6x8xf32>, vector<6x8xf32> -> vector<6x8xf32>
    %318 = vector.extract_strided_slice %109 {offsets = [24, 0], sizes = [8, 32], strides = [1, 1]} : vector<32x32xf32> to vector<8x32xf32>
    %cst_168 = arith.constant dense<0.000000e+00> : vector<6x32xf32>
    %319 = tpu.matmul %317, %318, %cst_168 {dimension_numbers = #tpu.dot_dimension_numbers<[1], [0], [0], [1], [0, 0, 1, 1], [], []>} : vector<6x8xf32>, vector<8x32xf32>, vector<6x32xf32> -> vector<6x32xf32>
    %320 = arith.addf %301, %319 : vector<6x32xf32>
    %321 = vector.broadcast %111 : vector<1x32xf32> to vector<6x32xf32>
    %322 = arith.addf %320, %321 : vector<6x32xf32>
    %323 = arith.addf %322, %239 : vector<6x32xf32>
    %cst_169 = arith.constant dense<0.000000e+00> : vector<6xf32>
    %324 = vector.multi_reduction <add>, %323, %cst_169 [1] : vector<6x32xf32> to vector<6xf32>
    %325 = vector.shape_cast %324 : vector<6xf32> to vector<6x1xf32>
    %cst_170 = arith.constant 3.200000e+01 : f32
    %326 = vector.broadcast %cst_170 : f32 to vector<6x1xf32>
    %327 = arith.divf %325, %326 : vector<6x1xf32>
    %328 = vector.broadcast %327 : vector<6x1xf32> to vector<6x32xf32>
    %329 = arith.subf %323, %328 : vector<6x32xf32>
    %330 = arith.mulf %329, %329 : vector<6x32xf32>
    %cst_171 = arith.constant dense<0.000000e+00> : vector<6xf32>
    %331 = vector.multi_reduction <add>, %330, %cst_171 [1] : vector<6x32xf32> to vector<6xf32>
    %332 = vector.shape_cast %331 : vector<6xf32> to vector<6x1xf32>
    %cst_172 = arith.constant 3.200000e+01 : f32
    %333 = vector.broadcast %cst_172 : f32 to vector<6x1xf32>
    %334 = arith.divf %332, %333 : vector<6x1xf32>
    %335 = vector.broadcast %327 : vector<6x1xf32> to vector<6x32xf32>
    %336 = arith.subf %323, %335 : vector<6x32xf32>
    %cst_173 = arith.constant 9.99999996E-13 : f32
    %337 = vector.broadcast %cst_173 : f32 to vector<6x1xf32>
    %338 = arith.addf %334, %337 : vector<6x1xf32>
    %339 = math.rsqrt %338 : vector<6x1xf32>
    %340 = vector.broadcast %339 : vector<6x1xf32> to vector<6x32xf32>
    %341 = arith.mulf %336, %340 : vector<6x32xf32>
    %342 = vector.broadcast %113 : vector<1x32xf32> to vector<6x32xf32>
    %343 = arith.mulf %341, %342 : vector<6x32xf32>
    %344 = vector.broadcast %115 : vector<1x32xf32> to vector<6x32xf32>
    %345 = arith.addf %343, %344 : vector<6x32xf32>
    %cst_174 = arith.constant dense<0.000000e+00> : vector<6x64xf32>
    %346 = tpu.matmul %345, %117, %cst_174 {dimension_numbers = #tpu.dot_dimension_numbers<[1], [0], [0], [1], [0, 0, 1, 1], [], []>} : vector<6x32xf32>, vector<32x64xf32>, vector<6x64xf32> -> vector<6x64xf32>
    %347 = vector.broadcast %119 : vector<1x64xf32> to vector<6x64xf32>
    %348 = arith.addf %346, %347 : vector<6x64xf32>
    %349 = arith.mulf %348, %348 : vector<6x64xf32>
    %350 = arith.mulf %348, %349 : vector<6x64xf32>
    %cst_175 = arith.constant 4.471500e-02 : f32
    %351 = vector.broadcast %cst_175 : f32 to vector<6x64xf32>
    %352 = arith.mulf %351, %350 : vector<6x64xf32>
    %353 = arith.addf %348, %352 : vector<6x64xf32>
    %cst_176 = arith.constant 0.797884583 : f32
    %354 = vector.broadcast %cst_176 : f32 to vector<6x64xf32>
    %355 = arith.mulf %354, %353 : vector<6x64xf32>
    %356 = math.tanh %355 : vector<6x64xf32>
    %cst_177 = arith.constant 1.000000e+00 : f32
    %357 = vector.broadcast %cst_177 : f32 to vector<6x64xf32>
    %358 = arith.addf %357, %356 : vector<6x64xf32>
    %cst_178 = arith.constant 5.000000e-01 : f32
    %359 = vector.broadcast %cst_178 : f32 to vector<6x64xf32>
    %360 = arith.mulf %359, %358 : vector<6x64xf32>
    %361 = arith.mulf %348, %360 : vector<6x64xf32>
    %cst_179 = arith.constant dense<0.000000e+00> : vector<6x32xf32>
    %362 = tpu.matmul %361, %121, %cst_179 {dimension_numbers = #tpu.dot_dimension_numbers<[1], [0], [0], [1], [0, 0, 1, 1], [], []>} : vector<6x64xf32>, vector<64x32xf32>, vector<6x32xf32> -> vector<6x32xf32>
    %363 = vector.broadcast %123 : vector<1x32xf32> to vector<6x32xf32>
    %364 = arith.addf %362, %363 : vector<6x32xf32>
    %365 = arith.addf %364, %345 : vector<6x32xf32>
    %cst_180 = arith.constant dense<0.000000e+00> : vector<6xf32>
    %366 = vector.multi_reduction <add>, %365, %cst_180 [1] : vector<6x32xf32> to vector<6xf32>
    %367 = vector.shape_cast %366 : vector<6xf32> to vector<6x1xf32>
    %cst_181 = arith.constant 3.200000e+01 : f32
    %368 = vector.broadcast %cst_181 : f32 to vector<6x1xf32>
    %369 = arith.divf %367, %368 : vector<6x1xf32>
    %370 = vector.broadcast %369 : vector<6x1xf32> to vector<6x32xf32>
    %371 = arith.subf %365, %370 : vector<6x32xf32>
    %372 = arith.mulf %371, %371 : vector<6x32xf32>
    %cst_182 = arith.constant dense<0.000000e+00> : vector<6xf32>
    %373 = vector.multi_reduction <add>, %372, %cst_182 [1] : vector<6x32xf32> to vector<6xf32>
    %374 = vector.shape_cast %373 : vector<6xf32> to vector<6x1xf32>
    %cst_183 = arith.constant 3.200000e+01 : f32
    %375 = vector.broadcast %cst_183 : f32 to vector<6x1xf32>
    %376 = arith.divf %374, %375 : vector<6x1xf32>
    %377 = vector.broadcast %369 : vector<6x1xf32> to vector<6x32xf32>
    %378 = arith.subf %365, %377 : vector<6x32xf32>
    %cst_184 = arith.constant 9.99999996E-13 : f32
    %379 = vector.broadcast %cst_184 : f32 to vector<6x1xf32>
    %380 = arith.addf %376, %379 : vector<6x1xf32>
    %381 = math.rsqrt %380 : vector<6x1xf32>
    %382 = vector.broadcast %381 : vector<6x1xf32> to vector<6x32xf32>
    %383 = arith.mulf %378, %382 : vector<6x32xf32>
    %384 = vector.broadcast %125 : vector<1x32xf32> to vector<6x32xf32>
    %385 = arith.mulf %383, %384 : vector<6x32xf32>
    %386 = vector.broadcast %127 : vector<1x32xf32> to vector<6x32xf32>
    %387 = arith.addf %385, %386 : vector<6x32xf32>
    %cst_185 = arith.constant dense<0.000000e+00> : vector<6x32xf32>
    %388 = tpu.matmul %81, %89, %cst_185 {dimension_numbers = #tpu.dot_dimension_numbers<[1], [0], [0], [1], [0, 0, 1, 1], [], []>} : vector<6x32xf32>, vector<32x32xf32>, vector<6x32xf32> -> vector<6x32xf32>
    %389 = vector.broadcast %91 : vector<1x32xf32> to vector<6x32xf32>
    %390 = arith.addf %388, %389 : vector<6x32xf32>
    %cst_186 = arith.constant dense<0.000000e+00> : vector<6x64xf32>
    %391 = tpu.matmul %83, %93, %cst_186 {dimension_numbers = #tpu.dot_dimension_numbers<[1], [0], [0], [1], [0, 0, 1, 1], [], []>} : vector<6x32xf32>, vector<32x64xf32>, vector<6x64xf32> -> vector<6x64xf32>
    %392 = vector.broadcast %95 : vector<1x64xf32> to vector<6x64xf32>
    %393 = arith.addf %391, %392 : vector<6x64xf32>
    %394 = vector.extract_strided_slice %393 {offsets = [0, 0], sizes = [6, 32], strides = [1, 1]} : vector<6x64xf32> to vector<6x32xf32>
    %395 = vector.extract_strided_slice %393 {offsets = [0, 32], sizes = [6, 32], strides = [1, 1]} : vector<6x64xf32> to vector<6x32xf32>
    %396 = vector.extract_strided_slice %390 {offsets = [0, 0], sizes = [6, 8], strides = [1, 1]} : vector<6x32xf32> to vector<6x8xf32>
    %397 = vector.extract_strided_slice %394 {offsets = [0, 0], sizes = [6, 8], strides = [1, 1]} : vector<6x32xf32> to vector<6x8xf32>
    %cst_187 = arith.constant dense<0.000000e+00> : vector<6x6xf32>
    %398 = tpu.matmul %396, %397, %cst_187 {dimension_numbers = #tpu.dot_dimension_numbers<[1], [1], [0], [0], [0, 0, 1, 0], [], []>} : vector<6x8xf32>, vector<6x8xf32>, vector<6x6xf32> -> vector<6x6xf32>
    %399 = vector.broadcast %85 : vector<1x6xf32> to vector<6x6xf32>
    %400 = arith.addf %398, %399 : vector<6x6xf32>
    %cst_188 = arith.constant dense<0xFF800000> : vector<6xf32>
    %401 = vector.multi_reduction <maximumf>, %400, %cst_188 [1] : vector<6x6xf32> to vector<6xf32>
    %402 = vector.shape_cast %401 : vector<6xf32> to vector<6x1xf32>
    %403 = vector.broadcast %402 : vector<6x1xf32> to vector<6x6xf32>
    %404 = arith.subf %400, %403 : vector<6x6xf32>
    %405 = math.exp %404 : vector<6x6xf32>
    %cst_189 = arith.constant dense<0.000000e+00> : vector<6xf32>
    %406 = vector.multi_reduction <add>, %405, %cst_189 [1] : vector<6x6xf32> to vector<6xf32>
    %407 = vector.shape_cast %406 : vector<6xf32> to vector<6x1xf32>
    %408 = tpu.reciprocal %407 {approx = true} : vector<6x1xf32> -> vector<6x1xf32>
    %409 = vector.broadcast %408 : vector<6x1xf32> to vector<6x6xf32>
    %410 = arith.mulf %405, %409 : vector<6x6xf32>
    %411 = vector.extract_strided_slice %395 {offsets = [0, 0], sizes = [6, 8], strides = [1, 1]} : vector<6x32xf32> to vector<6x8xf32>
    %cst_190 = arith.constant dense<0.000000e+00> : vector<6x8xf32>
    %412 = tpu.matmul %410, %411, %cst_190 {dimension_numbers = #tpu.dot_dimension_numbers<[1], [0], [0], [1], [0, 0, 1, 1], [], []>} : vector<6x6xf32>, vector<6x8xf32>, vector<6x8xf32> -> vector<6x8xf32>
    %413 = vector.extract_strided_slice %97 {offsets = [0, 0], sizes = [8, 32], strides = [1, 1]} : vector<32x32xf32> to vector<8x32xf32>
    %cst_191 = arith.constant dense<0.000000e+00> : vector<6x32xf32>
    %414 = tpu.matmul %412, %413, %cst_191 {dimension_numbers = #tpu.dot_dimension_numbers<[1], [0], [0], [1], [0, 0, 1, 1], [], []>} : vector<6x8xf32>, vector<8x32xf32>, vector<6x32xf32> -> vector<6x32xf32>
    %415 = vector.extract_strided_slice %390 {offsets = [0, 8], sizes = [6, 8], strides = [1, 1]} : vector<6x32xf32> to vector<6x8xf32>
    %416 = vector.extract_strided_slice %394 {offsets = [0, 8], sizes = [6, 8], strides = [1, 1]} : vector<6x32xf32> to vector<6x8xf32>
    %cst_192 = arith.constant dense<0.000000e+00> : vector<6x6xf32>
    %417 = tpu.matmul %415, %416, %cst_192 {dimension_numbers = #tpu.dot_dimension_numbers<[1], [1], [0], [0], [0, 0, 1, 0], [], []>} : vector<6x8xf32>, vector<6x8xf32>, vector<6x6xf32> -> vector<6x6xf32>
    %418 = vector.broadcast %85 : vector<1x6xf32> to vector<6x6xf32>
    %419 = arith.addf %417, %418 : vector<6x6xf32>
    %cst_193 = arith.constant dense<0xFF800000> : vector<6xf32>
    %420 = vector.multi_reduction <maximumf>, %419, %cst_193 [1] : vector<6x6xf32> to vector<6xf32>
    %421 = vector.shape_cast %420 : vector<6xf32> to vector<6x1xf32>
    %422 = vector.broadcast %421 : vector<6x1xf32> to vector<6x6xf32>
    %423 = arith.subf %419, %422 : vector<6x6xf32>
    %424 = math.exp %423 : vector<6x6xf32>
    %cst_194 = arith.constant dense<0.000000e+00> : vector<6xf32>
    %425 = vector.multi_reduction <add>, %424, %cst_194 [1] : vector<6x6xf32> to vector<6xf32>
    %426 = vector.shape_cast %425 : vector<6xf32> to vector<6x1xf32>
    %427 = tpu.reciprocal %426 {approx = true} : vector<6x1xf32> -> vector<6x1xf32>
    %428 = vector.broadcast %427 : vector<6x1xf32> to vector<6x6xf32>
    %429 = arith.mulf %424, %428 : vector<6x6xf32>
    %430 = vector.extract_strided_slice %395 {offsets = [0, 8], sizes = [6, 8], strides = [1, 1]} : vector<6x32xf32> to vector<6x8xf32>
    %cst_195 = arith.constant dense<0.000000e+00> : vector<6x8xf32>
    %431 = tpu.matmul %429, %430, %cst_195 {dimension_numbers = #tpu.dot_dimension_numbers<[1], [0], [0], [1], [0, 0, 1, 1], [], []>} : vector<6x6xf32>, vector<6x8xf32>, vector<6x8xf32> -> vector<6x8xf32>
    %432 = vector.extract_strided_slice %97 {offsets = [8, 0], sizes = [8, 32], strides = [1, 1]} : vector<32x32xf32> to vector<8x32xf32>
    %cst_196 = arith.constant dense<0.000000e+00> : vector<6x32xf32>
    %433 = tpu.matmul %431, %432, %cst_196 {dimension_numbers = #tpu.dot_dimension_numbers<[1], [0], [0], [1], [0, 0, 1, 1], [], []>} : vector<6x8xf32>, vector<8x32xf32>, vector<6x32xf32> -> vector<6x32xf32>
    %434 = arith.addf %414, %433 : vector<6x32xf32>
    %435 = vector.extract_strided_slice %390 {offsets = [0, 16], sizes = [6, 8], strides = [1, 1]} : vector<6x32xf32> to vector<6x8xf32>
    %436 = vector.extract_strided_slice %394 {offsets = [0, 16], sizes = [6, 8], strides = [1, 1]} : vector<6x32xf32> to vector<6x8xf32>
    %cst_197 = arith.constant dense<0.000000e+00> : vector<6x6xf32>
    %437 = tpu.matmul %435, %436, %cst_197 {dimension_numbers = #tpu.dot_dimension_numbers<[1], [1], [0], [0], [0, 0, 1, 0], [], []>} : vector<6x8xf32>, vector<6x8xf32>, vector<6x6xf32> -> vector<6x6xf32>
    %438 = vector.broadcast %85 : vector<1x6xf32> to vector<6x6xf32>
    %439 = arith.addf %437, %438 : vector<6x6xf32>
    %cst_198 = arith.constant dense<0xFF800000> : vector<6xf32>
    %440 = vector.multi_reduction <maximumf>, %439, %cst_198 [1] : vector<6x6xf32> to vector<6xf32>
    %441 = vector.shape_cast %440 : vector<6xf32> to vector<6x1xf32>
    %442 = vector.broadcast %441 : vector<6x1xf32> to vector<6x6xf32>
    %443 = arith.subf %439, %442 : vector<6x6xf32>
    %444 = math.exp %443 : vector<6x6xf32>
    %cst_199 = arith.constant dense<0.000000e+00> : vector<6xf32>
    %445 = vector.multi_reduction <add>, %444, %cst_199 [1] : vector<6x6xf32> to vector<6xf32>
    %446 = vector.shape_cast %445 : vector<6xf32> to vector<6x1xf32>
    %447 = tpu.reciprocal %446 {approx = true} : vector<6x1xf32> -> vector<6x1xf32>
    %448 = vector.broadcast %447 : vector<6x1xf32> to vector<6x6xf32>
    %449 = arith.mulf %444, %448 : vector<6x6xf32>
    %450 = vector.extract_strided_slice %395 {offsets = [0, 16], sizes = [6, 8], strides = [1, 1]} : vector<6x32xf32> to vector<6x8xf32>
    %cst_200 = arith.constant dense<0.000000e+00> : vector<6x8xf32>
    %451 = tpu.matmul %449, %450, %cst_200 {dimension_numbers = #tpu.dot_dimension_numbers<[1], [0], [0], [1], [0, 0, 1, 1], [], []>} : vector<6x6xf32>, vector<6x8xf32>, vector<6x8xf32> -> vector<6x8xf32>
    %452 = vector.extract_strided_slice %97 {offsets = [16, 0], sizes = [8, 32], strides = [1, 1]} : vector<32x32xf32> to vector<8x32xf32>
    %cst_201 = arith.constant dense<0.000000e+00> : vector<6x32xf32>
    %453 = tpu.matmul %451, %452, %cst_201 {dimension_numbers = #tpu.dot_dimension_numbers<[1], [0], [0], [1], [0, 0, 1, 1], [], []>} : vector<6x8xf32>, vector<8x32xf32>, vector<6x32xf32> -> vector<6x32xf32>
    %454 = arith.addf %434, %453 : vector<6x32xf32>
    %455 = vector.extract_strided_slice %390 {offsets = [0, 24], sizes = [6, 8], strides = [1, 1]} : vector<6x32xf32> to vector<6x8xf32>
    %456 = vector.extract_strided_slice %394 {offsets = [0, 24], sizes = [6, 8], strides = [1, 1]} : vector<6x32xf32> to vector<6x8xf32>
    %cst_202 = arith.constant dense<0.000000e+00> : vector<6x6xf32>
    %457 = tpu.matmul %455, %456, %cst_202 {dimension_numbers = #tpu.dot_dimension_numbers<[1], [1], [0], [0], [0, 0, 1, 0], [], []>} : vector<6x8xf32>, vector<6x8xf32>, vector<6x6xf32> -> vector<6x6xf32>
    %458 = vector.broadcast %85 : vector<1x6xf32> to vector<6x6xf32>
    %459 = arith.addf %457, %458 : vector<6x6xf32>
    %cst_203 = arith.constant dense<0xFF800000> : vector<6xf32>
    %460 = vector.multi_reduction <maximumf>, %459, %cst_203 [1] : vector<6x6xf32> to vector<6xf32>
    %461 = vector.shape_cast %460 : vector<6xf32> to vector<6x1xf32>
    %462 = vector.broadcast %461 : vector<6x1xf32> to vector<6x6xf32>
    %463 = arith.subf %459, %462 : vector<6x6xf32>
    %464 = math.exp %463 : vector<6x6xf32>
    %cst_204 = arith.constant dense<0.000000e+00> : vector<6xf32>
    %465 = vector.multi_reduction <add>, %464, %cst_204 [1] : vector<6x6xf32> to vector<6xf32>
    %466 = vector.shape_cast %465 : vector<6xf32> to vector<6x1xf32>
    %467 = tpu.reciprocal %466 {approx = true} : vector<6x1xf32> -> vector<6x1xf32>
    %468 = vector.broadcast %467 : vector<6x1xf32> to vector<6x6xf32>
    %469 = arith.mulf %464, %468 : vector<6x6xf32>
    %470 = vector.extract_strided_slice %395 {offsets = [0, 24], sizes = [6, 8], strides = [1, 1]} : vector<6x32xf32> to vector<6x8xf32>
    %cst_205 = arith.constant dense<0.000000e+00> : vector<6x8xf32>
    %471 = tpu.matmul %469, %470, %cst_205 {dimension_numbers = #tpu.dot_dimension_numbers<[1], [0], [0], [1], [0, 0, 1, 1], [], []>} : vector<6x6xf32>, vector<6x8xf32>, vector<6x8xf32> -> vector<6x8xf32>
    %472 = vector.extract_strided_slice %97 {offsets = [24, 0], sizes = [8, 32], strides = [1, 1]} : vector<32x32xf32> to vector<8x32xf32>
    %cst_206 = arith.constant dense<0.000000e+00> : vector<6x32xf32>
    %473 = tpu.matmul %471, %472, %cst_206 {dimension_numbers = #tpu.dot_dimension_numbers<[1], [0], [0], [1], [0, 0, 1, 1], [], []>} : vector<6x8xf32>, vector<8x32xf32>, vector<6x32xf32> -> vector<6x32xf32>
    %474 = arith.addf %454, %473 : vector<6x32xf32>
    %475 = vector.broadcast %99 : vector<1x32xf32> to vector<6x32xf32>
    %476 = arith.addf %474, %475 : vector<6x32xf32>
    %477 = arith.addf %476, %81 : vector<6x32xf32>
    %cst_207 = arith.constant dense<0.000000e+00> : vector<6xf32>
    %478 = vector.multi_reduction <add>, %477, %cst_207 [1] : vector<6x32xf32> to vector<6xf32>
    %479 = vector.shape_cast %478 : vector<6xf32> to vector<6x1xf32>
    %cst_208 = arith.constant 3.200000e+01 : f32
    %480 = vector.broadcast %cst_208 : f32 to vector<6x1xf32>
    %481 = arith.divf %479, %480 : vector<6x1xf32>
    %482 = vector.broadcast %481 : vector<6x1xf32> to vector<6x32xf32>
    %483 = arith.subf %477, %482 : vector<6x32xf32>
    %484 = arith.mulf %483, %483 : vector<6x32xf32>
    %cst_209 = arith.constant dense<0.000000e+00> : vector<6xf32>
    %485 = vector.multi_reduction <add>, %484, %cst_209 [1] : vector<6x32xf32> to vector<6xf32>
    %486 = vector.shape_cast %485 : vector<6xf32> to vector<6x1xf32>
    %cst_210 = arith.constant 3.200000e+01 : f32
    %487 = vector.broadcast %cst_210 : f32 to vector<6x1xf32>
    %488 = arith.divf %486, %487 : vector<6x1xf32>
    %489 = vector.broadcast %481 : vector<6x1xf32> to vector<6x32xf32>
    %490 = arith.subf %477, %489 : vector<6x32xf32>
    %cst_211 = arith.constant 9.99999996E-13 : f32
    %491 = vector.broadcast %cst_211 : f32 to vector<6x1xf32>
    %492 = arith.addf %488, %491 : vector<6x1xf32>
    %493 = math.rsqrt %492 : vector<6x1xf32>
    %494 = vector.broadcast %493 : vector<6x1xf32> to vector<6x32xf32>
    %495 = arith.mulf %490, %494 : vector<6x32xf32>
    %496 = vector.broadcast %101 : vector<1x32xf32> to vector<6x32xf32>
    %497 = arith.mulf %495, %496 : vector<6x32xf32>
    %498 = vector.broadcast %103 : vector<1x32xf32> to vector<6x32xf32>
    %499 = arith.addf %497, %498 : vector<6x32xf32>
    %cst_212 = arith.constant dense<0.000000e+00> : vector<6x96xf32>
    %500 = tpu.matmul %499, %105, %cst_212 {dimension_numbers = #tpu.dot_dimension_numbers<[1], [0], [0], [1], [0, 0, 1, 1], [], []>} : vector<6x32xf32>, vector<32x96xf32>, vector<6x96xf32> -> vector<6x96xf32>
    %501 = vector.broadcast %107 : vector<1x96xf32> to vector<6x96xf32>
    %502 = arith.addf %500, %501 : vector<6x96xf32>
    %503 = vector.extract_strided_slice %502 {offsets = [0, 0], sizes = [6, 32], strides = [1, 1]} : vector<6x96xf32> to vector<6x32xf32>
    %504 = vector.extract_strided_slice %502 {offsets = [0, 32], sizes = [6, 32], strides = [1, 1]} : vector<6x96xf32> to vector<6x32xf32>
    %505 = vector.extract_strided_slice %502 {offsets = [0, 64], sizes = [6, 32], strides = [1, 1]} : vector<6x96xf32> to vector<6x32xf32>
    %506 = vector.extract_strided_slice %503 {offsets = [0, 0], sizes = [6, 8], strides = [1, 1]} : vector<6x32xf32> to vector<6x8xf32>
    %507 = vector.extract_strided_slice %504 {offsets = [0, 0], sizes = [6, 8], strides = [1, 1]} : vector<6x32xf32> to vector<6x8xf32>
    %cst_213 = arith.constant dense<0.000000e+00> : vector<6x6xf32>
    %508 = tpu.matmul %506, %507, %cst_213 {dimension_numbers = #tpu.dot_dimension_numbers<[1], [1], [0], [0], [0, 0, 1, 0], [], []>} : vector<6x8xf32>, vector<6x8xf32>, vector<6x6xf32> -> vector<6x6xf32>
    %509 = arith.addf %508, %87 : vector<6x6xf32>
    %cst_214 = arith.constant dense<0xFF800000> : vector<6xf32>
    %510 = vector.multi_reduction <maximumf>, %509, %cst_214 [1] : vector<6x6xf32> to vector<6xf32>
    %511 = vector.shape_cast %510 : vector<6xf32> to vector<6x1xf32>
    %512 = vector.broadcast %511 : vector<6x1xf32> to vector<6x6xf32>
    %513 = arith.subf %509, %512 : vector<6x6xf32>
    %514 = math.exp %513 : vector<6x6xf32>
    %cst_215 = arith.constant dense<0.000000e+00> : vector<6xf32>
    %515 = vector.multi_reduction <add>, %514, %cst_215 [1] : vector<6x6xf32> to vector<6xf32>
    %516 = vector.shape_cast %515 : vector<6xf32> to vector<6x1xf32>
    %517 = tpu.reciprocal %516 {approx = true} : vector<6x1xf32> -> vector<6x1xf32>
    %518 = vector.broadcast %517 : vector<6x1xf32> to vector<6x6xf32>
    %519 = arith.mulf %514, %518 : vector<6x6xf32>
    %520 = vector.extract_strided_slice %505 {offsets = [0, 0], sizes = [6, 8], strides = [1, 1]} : vector<6x32xf32> to vector<6x8xf32>
    %cst_216 = arith.constant dense<0.000000e+00> : vector<6x8xf32>
    %521 = tpu.matmul %519, %520, %cst_216 {dimension_numbers = #tpu.dot_dimension_numbers<[1], [0], [0], [1], [0, 0, 1, 1], [], []>} : vector<6x6xf32>, vector<6x8xf32>, vector<6x8xf32> -> vector<6x8xf32>
    %522 = vector.extract_strided_slice %109 {offsets = [0, 0], sizes = [8, 32], strides = [1, 1]} : vector<32x32xf32> to vector<8x32xf32>
    %cst_217 = arith.constant dense<0.000000e+00> : vector<6x32xf32>
    %523 = tpu.matmul %521, %522, %cst_217 {dimension_numbers = #tpu.dot_dimension_numbers<[1], [0], [0], [1], [0, 0, 1, 1], [], []>} : vector<6x8xf32>, vector<8x32xf32>, vector<6x32xf32> -> vector<6x32xf32>
    %524 = vector.extract_strided_slice %503 {offsets = [0, 8], sizes = [6, 8], strides = [1, 1]} : vector<6x32xf32> to vector<6x8xf32>
    %525 = vector.extract_strided_slice %504 {offsets = [0, 8], sizes = [6, 8], strides = [1, 1]} : vector<6x32xf32> to vector<6x8xf32>
    %cst_218 = arith.constant dense<0.000000e+00> : vector<6x6xf32>
    %526 = tpu.matmul %524, %525, %cst_218 {dimension_numbers = #tpu.dot_dimension_numbers<[1], [1], [0], [0], [0, 0, 1, 0], [], []>} : vector<6x8xf32>, vector<6x8xf32>, vector<6x6xf32> -> vector<6x6xf32>
    %527 = arith.addf %526, %87 : vector<6x6xf32>
    %cst_219 = arith.constant dense<0xFF800000> : vector<6xf32>
    %528 = vector.multi_reduction <maximumf>, %527, %cst_219 [1] : vector<6x6xf32> to vector<6xf32>
    %529 = vector.shape_cast %528 : vector<6xf32> to vector<6x1xf32>
    %530 = vector.broadcast %529 : vector<6x1xf32> to vector<6x6xf32>
    %531 = arith.subf %527, %530 : vector<6x6xf32>
    %532 = math.exp %531 : vector<6x6xf32>
    %cst_220 = arith.constant dense<0.000000e+00> : vector<6xf32>
    %533 = vector.multi_reduction <add>, %532, %cst_220 [1] : vector<6x6xf32> to vector<6xf32>
    %534 = vector.shape_cast %533 : vector<6xf32> to vector<6x1xf32>
    %535 = tpu.reciprocal %534 {approx = true} : vector<6x1xf32> -> vector<6x1xf32>
    %536 = vector.broadcast %535 : vector<6x1xf32> to vector<6x6xf32>
    %537 = arith.mulf %532, %536 : vector<6x6xf32>
    %538 = vector.extract_strided_slice %505 {offsets = [0, 8], sizes = [6, 8], strides = [1, 1]} : vector<6x32xf32> to vector<6x8xf32>
    %cst_221 = arith.constant dense<0.000000e+00> : vector<6x8xf32>
    %539 = tpu.matmul %537, %538, %cst_221 {dimension_numbers = #tpu.dot_dimension_numbers<[1], [0], [0], [1], [0, 0, 1, 1], [], []>} : vector<6x6xf32>, vector<6x8xf32>, vector<6x8xf32> -> vector<6x8xf32>
    %540 = vector.extract_strided_slice %109 {offsets = [8, 0], sizes = [8, 32], strides = [1, 1]} : vector<32x32xf32> to vector<8x32xf32>
    %cst_222 = arith.constant dense<0.000000e+00> : vector<6x32xf32>
    %541 = tpu.matmul %539, %540, %cst_222 {dimension_numbers = #tpu.dot_dimension_numbers<[1], [0], [0], [1], [0, 0, 1, 1], [], []>} : vector<6x8xf32>, vector<8x32xf32>, vector<6x32xf32> -> vector<6x32xf32>
    %542 = arith.addf %523, %541 : vector<6x32xf32>
    %543 = vector.extract_strided_slice %503 {offsets = [0, 16], sizes = [6, 8], strides = [1, 1]} : vector<6x32xf32> to vector<6x8xf32>
    %544 = vector.extract_strided_slice %504 {offsets = [0, 16], sizes = [6, 8], strides = [1, 1]} : vector<6x32xf32> to vector<6x8xf32>
    %cst_223 = arith.constant dense<0.000000e+00> : vector<6x6xf32>
    %545 = tpu.matmul %543, %544, %cst_223 {dimension_numbers = #tpu.dot_dimension_numbers<[1], [1], [0], [0], [0, 0, 1, 0], [], []>} : vector<6x8xf32>, vector<6x8xf32>, vector<6x6xf32> -> vector<6x6xf32>
    %546 = arith.addf %545, %87 : vector<6x6xf32>
    %cst_224 = arith.constant dense<0xFF800000> : vector<6xf32>
    %547 = vector.multi_reduction <maximumf>, %546, %cst_224 [1] : vector<6x6xf32> to vector<6xf32>
    %548 = vector.shape_cast %547 : vector<6xf32> to vector<6x1xf32>
    %549 = vector.broadcast %548 : vector<6x1xf32> to vector<6x6xf32>
    %550 = arith.subf %546, %549 : vector<6x6xf32>
    %551 = math.exp %550 : vector<6x6xf32>
    %cst_225 = arith.constant dense<0.000000e+00> : vector<6xf32>
    %552 = vector.multi_reduction <add>, %551, %cst_225 [1] : vector<6x6xf32> to vector<6xf32>
    %553 = vector.shape_cast %552 : vector<6xf32> to vector<6x1xf32>
    %554 = tpu.reciprocal %553 {approx = true} : vector<6x1xf32> -> vector<6x1xf32>
    %555 = vector.broadcast %554 : vector<6x1xf32> to vector<6x6xf32>
    %556 = arith.mulf %551, %555 : vector<6x6xf32>
    %557 = vector.extract_strided_slice %505 {offsets = [0, 16], sizes = [6, 8], strides = [1, 1]} : vector<6x32xf32> to vector<6x8xf32>
    %cst_226 = arith.constant dense<0.000000e+00> : vector<6x8xf32>
    %558 = tpu.matmul %556, %557, %cst_226 {dimension_numbers = #tpu.dot_dimension_numbers<[1], [0], [0], [1], [0, 0, 1, 1], [], []>} : vector<6x6xf32>, vector<6x8xf32>, vector<6x8xf32> -> vector<6x8xf32>
    %559 = vector.extract_strided_slice %109 {offsets = [16, 0], sizes = [8, 32], strides = [1, 1]} : vector<32x32xf32> to vector<8x32xf32>
    %cst_227 = arith.constant dense<0.000000e+00> : vector<6x32xf32>
    %560 = tpu.matmul %558, %559, %cst_227 {dimension_numbers = #tpu.dot_dimension_numbers<[1], [0], [0], [1], [0, 0, 1, 1], [], []>} : vector<6x8xf32>, vector<8x32xf32>, vector<6x32xf32> -> vector<6x32xf32>
    %561 = arith.addf %542, %560 : vector<6x32xf32>
    %562 = vector.extract_strided_slice %503 {offsets = [0, 24], sizes = [6, 8], strides = [1, 1]} : vector<6x32xf32> to vector<6x8xf32>
    %563 = vector.extract_strided_slice %504 {offsets = [0, 24], sizes = [6, 8], strides = [1, 1]} : vector<6x32xf32> to vector<6x8xf32>
    %cst_228 = arith.constant dense<0.000000e+00> : vector<6x6xf32>
    %564 = tpu.matmul %562, %563, %cst_228 {dimension_numbers = #tpu.dot_dimension_numbers<[1], [1], [0], [0], [0, 0, 1, 0], [], []>} : vector<6x8xf32>, vector<6x8xf32>, vector<6x6xf32> -> vector<6x6xf32>
    %565 = arith.addf %564, %87 : vector<6x6xf32>
    %cst_229 = arith.constant dense<0xFF800000> : vector<6xf32>
    %566 = vector.multi_reduction <maximumf>, %565, %cst_229 [1] : vector<6x6xf32> to vector<6xf32>
    %567 = vector.shape_cast %566 : vector<6xf32> to vector<6x1xf32>
    %568 = vector.broadcast %567 : vector<6x1xf32> to vector<6x6xf32>
    %569 = arith.subf %565, %568 : vector<6x6xf32>
    %570 = math.exp %569 : vector<6x6xf32>
    %cst_230 = arith.constant dense<0.000000e+00> : vector<6xf32>
    %571 = vector.multi_reduction <add>, %570, %cst_230 [1] : vector<6x6xf32> to vector<6xf32>
    %572 = vector.shape_cast %571 : vector<6xf32> to vector<6x1xf32>
    %573 = tpu.reciprocal %572 {approx = true} : vector<6x1xf32> -> vector<6x1xf32>
    %574 = vector.broadcast %573 : vector<6x1xf32> to vector<6x6xf32>
    %575 = arith.mulf %570, %574 : vector<6x6xf32>
    %576 = vector.extract_strided_slice %505 {offsets = [0, 24], sizes = [6, 8], strides = [1, 1]} : vector<6x32xf32> to vector<6x8xf32>
    %cst_231 = arith.constant dense<0.000000e+00> : vector<6x8xf32>
    %577 = tpu.matmul %575, %576, %cst_231 {dimension_numbers = #tpu.dot_dimension_numbers<[1], [0], [0], [1], [0, 0, 1, 1], [], []>} : vector<6x6xf32>, vector<6x8xf32>, vector<6x8xf32> -> vector<6x8xf32>
    %578 = vector.extract_strided_slice %109 {offsets = [24, 0], sizes = [8, 32], strides = [1, 1]} : vector<32x32xf32> to vector<8x32xf32>
    %cst_232 = arith.constant dense<0.000000e+00> : vector<6x32xf32>
    %579 = tpu.matmul %577, %578, %cst_232 {dimension_numbers = #tpu.dot_dimension_numbers<[1], [0], [0], [1], [0, 0, 1, 1], [], []>} : vector<6x8xf32>, vector<8x32xf32>, vector<6x32xf32> -> vector<6x32xf32>
    %580 = arith.addf %561, %579 : vector<6x32xf32>
    %581 = vector.broadcast %111 : vector<1x32xf32> to vector<6x32xf32>
    %582 = arith.addf %580, %581 : vector<6x32xf32>
    %583 = arith.addf %582, %499 : vector<6x32xf32>
    %cst_233 = arith.constant dense<0.000000e+00> : vector<6xf32>
    %584 = vector.multi_reduction <add>, %583, %cst_233 [1] : vector<6x32xf32> to vector<6xf32>
    %585 = vector.shape_cast %584 : vector<6xf32> to vector<6x1xf32>
    %cst_234 = arith.constant 3.200000e+01 : f32
    %586 = vector.broadcast %cst_234 : f32 to vector<6x1xf32>
    %587 = arith.divf %585, %586 : vector<6x1xf32>
    %588 = vector.broadcast %587 : vector<6x1xf32> to vector<6x32xf32>
    %589 = arith.subf %583, %588 : vector<6x32xf32>
    %590 = arith.mulf %589, %589 : vector<6x32xf32>
    %cst_235 = arith.constant dense<0.000000e+00> : vector<6xf32>
    %591 = vector.multi_reduction <add>, %590, %cst_235 [1] : vector<6x32xf32> to vector<6xf32>
    %592 = vector.shape_cast %591 : vector<6xf32> to vector<6x1xf32>
    %cst_236 = arith.constant 3.200000e+01 : f32
    %593 = vector.broadcast %cst_236 : f32 to vector<6x1xf32>
    %594 = arith.divf %592, %593 : vector<6x1xf32>
    %595 = vector.broadcast %587 : vector<6x1xf32> to vector<6x32xf32>
    %596 = arith.subf %583, %595 : vector<6x32xf32>
    %cst_237 = arith.constant 9.99999996E-13 : f32
    %597 = vector.broadcast %cst_237 : f32 to vector<6x1xf32>
    %598 = arith.addf %594, %597 : vector<6x1xf32>
    %599 = math.rsqrt %598 : vector<6x1xf32>
    %600 = vector.broadcast %599 : vector<6x1xf32> to vector<6x32xf32>
    %601 = arith.mulf %596, %600 : vector<6x32xf32>
    %602 = vector.broadcast %113 : vector<1x32xf32> to vector<6x32xf32>
    %603 = arith.mulf %601, %602 : vector<6x32xf32>
    %604 = vector.broadcast %115 : vector<1x32xf32> to vector<6x32xf32>
    %605 = arith.addf %603, %604 : vector<6x32xf32>
    %cst_238 = arith.constant dense<0.000000e+00> : vector<6x64xf32>
    %606 = tpu.matmul %605, %117, %cst_238 {dimension_numbers = #tpu.dot_dimension_numbers<[1], [0], [0], [1], [0, 0, 1, 1], [], []>} : vector<6x32xf32>, vector<32x64xf32>, vector<6x64xf32> -> vector<6x64xf32>
    %607 = vector.broadcast %119 : vector<1x64xf32> to vector<6x64xf32>
    %608 = arith.addf %606, %607 : vector<6x64xf32>
    %609 = arith.mulf %608, %608 : vector<6x64xf32>
    %610 = arith.mulf %608, %609 : vector<6x64xf32>
    %cst_239 = arith.constant 4.471500e-02 : f32
    %611 = vector.broadcast %cst_239 : f32 to vector<6x64xf32>
    %612 = arith.mulf %611, %610 : vector<6x64xf32>
    %613 = arith.addf %608, %612 : vector<6x64xf32>
    %cst_240 = arith.constant 0.797884583 : f32
    %614 = vector.broadcast %cst_240 : f32 to vector<6x64xf32>
    %615 = arith.mulf %614, %613 : vector<6x64xf32>
    %616 = math.tanh %615 : vector<6x64xf32>
    %cst_241 = arith.constant 1.000000e+00 : f32
    %617 = vector.broadcast %cst_241 : f32 to vector<6x64xf32>
    %618 = arith.addf %617, %616 : vector<6x64xf32>
    %cst_242 = arith.constant 5.000000e-01 : f32
    %619 = vector.broadcast %cst_242 : f32 to vector<6x64xf32>
    %620 = arith.mulf %619, %618 : vector<6x64xf32>
    %621 = arith.mulf %608, %620 : vector<6x64xf32>
    %cst_243 = arith.constant dense<0.000000e+00> : vector<6x32xf32>
    %622 = tpu.matmul %621, %121, %cst_243 {dimension_numbers = #tpu.dot_dimension_numbers<[1], [0], [0], [1], [0, 0, 1, 1], [], []>} : vector<6x64xf32>, vector<64x32xf32>, vector<6x32xf32> -> vector<6x32xf32>
    %623 = vector.broadcast %123 : vector<1x32xf32> to vector<6x32xf32>
    %624 = arith.addf %622, %623 : vector<6x32xf32>
    %625 = arith.addf %624, %605 : vector<6x32xf32>
    %cst_244 = arith.constant dense<0.000000e+00> : vector<6xf32>
    %626 = vector.multi_reduction <add>, %625, %cst_244 [1] : vector<6x32xf32> to vector<6xf32>
    %627 = vector.shape_cast %626 : vector<6xf32> to vector<6x1xf32>
    %cst_245 = arith.constant 3.200000e+01 : f32
    %628 = vector.broadcast %cst_245 : f32 to vector<6x1xf32>
    %629 = arith.divf %627, %628 : vector<6x1xf32>
    %630 = vector.broadcast %629 : vector<6x1xf32> to vector<6x32xf32>
    %631 = arith.subf %625, %630 : vector<6x32xf32>
    %632 = arith.mulf %631, %631 : vector<6x32xf32>
    %cst_246 = arith.constant dense<0.000000e+00> : vector<6xf32>
    %633 = vector.multi_reduction <add>, %632, %cst_246 [1] : vector<6x32xf32> to vector<6xf32>
    %634 = vector.shape_cast %633 : vector<6xf32> to vector<6x1xf32>
    %cst_247 = arith.constant 3.200000e+01 : f32
    %635 = vector.broadcast %cst_247 : f32 to vector<6x1xf32>
    %636 = arith.divf %634, %635 : vector<6x1xf32>
    %637 = vector.broadcast %629 : vector<6x1xf32> to vector<6x32xf32>
    %638 = arith.subf %625, %637 : vector<6x32xf32>
    %cst_248 = arith.constant 9.99999996E-13 : f32
    %639 = vector.broadcast %cst_248 : f32 to vector<6x1xf32>
    %640 = arith.addf %636, %639 : vector<6x1xf32>
    %641 = math.rsqrt %640 : vector<6x1xf32>
    %642 = vector.broadcast %641 : vector<6x1xf32> to vector<6x32xf32>
    %643 = arith.mulf %638, %642 : vector<6x32xf32>
    %644 = vector.broadcast %125 : vector<1x32xf32> to vector<6x32xf32>
    %645 = arith.mulf %643, %644 : vector<6x32xf32>
    %646 = vector.broadcast %127 : vector<1x32xf32> to vector<6x32xf32>
    %647 = arith.addf %645, %646 : vector<6x32xf32>
    %c1_249 = arith.constant 1 : index
    %c0_250 = arith.constant 0 : index
    %c0_251 = arith.constant 0 : index
    %648 = vector.load %arg11[%c1_249, %c0_250, %c0_251] : memref<2x32x32xf32, #tpu.memory_space<vmem>>, vector<1x32x32xf32>
    %649 = vector.shape_cast %648 : vector<1x32x32xf32> to vector<32x32xf32>
    %c1_252 = arith.constant 1 : index
    %c0_253 = arith.constant 0 : index
    %c0_254 = arith.constant 0 : index
    %650 = vector.load %arg12[%c1_252, %c0_253, %c0_254] : memref<2x1x32xf32, #tpu.memory_space<vmem>>, vector<1x1x32xf32>
    %651 = vector.shape_cast %650 : vector<1x1x32xf32> to vector<1x32xf32>
    %c1_255 = arith.constant 1 : index
    %c0_256 = arith.constant 0 : index
    %c0_257 = arith.constant 0 : index
    %652 = vector.load %arg13[%c1_255, %c0_256, %c0_257] : memref<2x32x64xf32, #tpu.memory_space<vmem>>, vector<1x32x64xf32>
    %653 = vector.shape_cast %652 : vector<1x32x64xf32> to vector<32x64xf32>
    %c1_258 = arith.constant 1 : index
    %c0_259 = arith.constant 0 : index
    %c0_260 = arith.constant 0 : index
    %654 = vector.load %arg14[%c1_258, %c0_259, %c0_260] : memref<2x1x64xf32, #tpu.memory_space<vmem>>, vector<1x1x64xf32>
    %655 = vector.shape_cast %654 : vector<1x1x64xf32> to vector<1x64xf32>
    %c1_261 = arith.constant 1 : index
    %c0_262 = arith.constant 0 : index
    %c0_263 = arith.constant 0 : index
    %656 = vector.load %arg15[%c1_261, %c0_262, %c0_263] : memref<2x32x32xf32, #tpu.memory_space<vmem>>, vector<1x32x32xf32>
    %657 = vector.shape_cast %656 : vector<1x32x32xf32> to vector<32x32xf32>
    %c1_264 = arith.constant 1 : index
    %c0_265 = arith.constant 0 : index
    %c0_266 = arith.constant 0 : index
    %658 = vector.load %arg16[%c1_264, %c0_265, %c0_266] : memref<2x1x32xf32, #tpu.memory_space<vmem>>, vector<1x1x32xf32>
    %659 = vector.shape_cast %658 : vector<1x1x32xf32> to vector<1x32xf32>
    %c1_267 = arith.constant 1 : index
    %c0_268 = arith.constant 0 : index
    %c0_269 = arith.constant 0 : index
    %660 = vector.load %arg17[%c1_267, %c0_268, %c0_269] : memref<2x1x32xf32, #tpu.memory_space<vmem>>, vector<1x1x32xf32>
    %661 = vector.shape_cast %660 : vector<1x1x32xf32> to vector<1x32xf32>
    %c1_270 = arith.constant 1 : index
    %c0_271 = arith.constant 0 : index
    %c0_272 = arith.constant 0 : index
    %662 = vector.load %arg18[%c1_270, %c0_271, %c0_272] : memref<2x1x32xf32, #tpu.memory_space<vmem>>, vector<1x1x32xf32>
    %663 = vector.shape_cast %662 : vector<1x1x32xf32> to vector<1x32xf32>
    %c1_273 = arith.constant 1 : index
    %c0_274 = arith.constant 0 : index
    %c0_275 = arith.constant 0 : index
    %664 = vector.load %arg19[%c1_273, %c0_274, %c0_275] : memref<2x32x96xf32, #tpu.memory_space<vmem>>, vector<1x32x96xf32>
    %665 = vector.shape_cast %664 : vector<1x32x96xf32> to vector<32x96xf32>
    %c1_276 = arith.constant 1 : index
    %c0_277 = arith.constant 0 : index
    %c0_278 = arith.constant 0 : index
    %666 = vector.load %arg20[%c1_276, %c0_277, %c0_278] : memref<2x1x96xf32, #tpu.memory_space<vmem>>, vector<1x1x96xf32>
    %667 = vector.shape_cast %666 : vector<1x1x96xf32> to vector<1x96xf32>
    %c1_279 = arith.constant 1 : index
    %c0_280 = arith.constant 0 : index
    %c0_281 = arith.constant 0 : index
    %668 = vector.load %arg21[%c1_279, %c0_280, %c0_281] : memref<2x32x32xf32, #tpu.memory_space<vmem>>, vector<1x32x32xf32>
    %669 = vector.shape_cast %668 : vector<1x32x32xf32> to vector<32x32xf32>
    %c1_282 = arith.constant 1 : index
    %c0_283 = arith.constant 0 : index
    %c0_284 = arith.constant 0 : index
    %670 = vector.load %arg22[%c1_282, %c0_283, %c0_284] : memref<2x1x32xf32, #tpu.memory_space<vmem>>, vector<1x1x32xf32>
    %671 = vector.shape_cast %670 : vector<1x1x32xf32> to vector<1x32xf32>
    %c1_285 = arith.constant 1 : index
    %c0_286 = arith.constant 0 : index
    %c0_287 = arith.constant 0 : index
    %672 = vector.load %arg23[%c1_285, %c0_286, %c0_287] : memref<2x1x32xf32, #tpu.memory_space<vmem>>, vector<1x1x32xf32>
    %673 = vector.shape_cast %672 : vector<1x1x32xf32> to vector<1x32xf32>
    %c1_288 = arith.constant 1 : index
    %c0_289 = arith.constant 0 : index
    %c0_290 = arith.constant 0 : index
    %674 = vector.load %arg24[%c1_288, %c0_289, %c0_290] : memref<2x1x32xf32, #tpu.memory_space<vmem>>, vector<1x1x32xf32>
    %675 = vector.shape_cast %674 : vector<1x1x32xf32> to vector<1x32xf32>
    %c1_291 = arith.constant 1 : index
    %c0_292 = arith.constant 0 : index
    %c0_293 = arith.constant 0 : index
    %676 = vector.load %arg25[%c1_291, %c0_292, %c0_293] : memref<2x32x64xf32, #tpu.memory_space<vmem>>, vector<1x32x64xf32>
    %677 = vector.shape_cast %676 : vector<1x32x64xf32> to vector<32x64xf32>
    %c1_294 = arith.constant 1 : index
    %c0_295 = arith.constant 0 : index
    %c0_296 = arith.constant 0 : index
    %678 = vector.load %arg26[%c1_294, %c0_295, %c0_296] : memref<2x1x64xf32, #tpu.memory_space<vmem>>, vector<1x1x64xf32>
    %679 = vector.shape_cast %678 : vector<1x1x64xf32> to vector<1x64xf32>
    %c1_297 = arith.constant 1 : index
    %c0_298 = arith.constant 0 : index
    %c0_299 = arith.constant 0 : index
    %680 = vector.load %arg27[%c1_297, %c0_298, %c0_299] : memref<2x64x32xf32, #tpu.memory_space<vmem>>, vector<1x64x32xf32>
    %681 = vector.shape_cast %680 : vector<1x64x32xf32> to vector<64x32xf32>
    %c1_300 = arith.constant 1 : index
    %c0_301 = arith.constant 0 : index
    %c0_302 = arith.constant 0 : index
    %682 = vector.load %arg28[%c1_300, %c0_301, %c0_302] : memref<2x1x32xf32, #tpu.memory_space<vmem>>, vector<1x1x32xf32>
    %683 = vector.shape_cast %682 : vector<1x1x32xf32> to vector<1x32xf32>
    %c1_303 = arith.constant 1 : index
    %c0_304 = arith.constant 0 : index
    %c0_305 = arith.constant 0 : index
    %684 = vector.load %arg29[%c1_303, %c0_304, %c0_305] : memref<2x1x32xf32, #tpu.memory_space<vmem>>, vector<1x1x32xf32>
    %685 = vector.shape_cast %684 : vector<1x1x32xf32> to vector<1x32xf32>
    %c1_306 = arith.constant 1 : index
    %c0_307 = arith.constant 0 : index
    %c0_308 = arith.constant 0 : index
    %686 = vector.load %arg30[%c1_306, %c0_307, %c0_308] : memref<2x1x32xf32, #tpu.memory_space<vmem>>, vector<1x1x32xf32>
    %687 = vector.shape_cast %686 : vector<1x1x32xf32> to vector<1x32xf32>
    %cst_309 = arith.constant dense<0.000000e+00> : vector<6x32xf32>
    %688 = tpu.matmul %387, %649, %cst_309 {dimension_numbers = #tpu.dot_dimension_numbers<[1], [0], [0], [1], [0, 0, 1, 1], [], []>} : vector<6x32xf32>, vector<32x32xf32>, vector<6x32xf32> -> vector<6x32xf32>
    %689 = vector.broadcast %651 : vector<1x32xf32> to vector<6x32xf32>
    %690 = arith.addf %688, %689 : vector<6x32xf32>
    %cst_310 = arith.constant dense<0.000000e+00> : vector<6x64xf32>
    %691 = tpu.matmul %41, %653, %cst_310 {dimension_numbers = #tpu.dot_dimension_numbers<[1], [0], [0], [1], [0, 0, 1, 1], [], []>} : vector<6x32xf32>, vector<32x64xf32>, vector<6x64xf32> -> vector<6x64xf32>
    %692 = vector.broadcast %655 : vector<1x64xf32> to vector<6x64xf32>
    %693 = arith.addf %691, %692 : vector<6x64xf32>
    %694 = vector.extract_strided_slice %693 {offsets = [0, 0], sizes = [6, 32], strides = [1, 1]} : vector<6x64xf32> to vector<6x32xf32>
    %695 = vector.extract_strided_slice %693 {offsets = [0, 32], sizes = [6, 32], strides = [1, 1]} : vector<6x64xf32> to vector<6x32xf32>
    %696 = vector.extract_strided_slice %690 {offsets = [0, 0], sizes = [6, 8], strides = [1, 1]} : vector<6x32xf32> to vector<6x8xf32>
    %697 = vector.extract_strided_slice %694 {offsets = [0, 0], sizes = [6, 8], strides = [1, 1]} : vector<6x32xf32> to vector<6x8xf32>
    %cst_311 = arith.constant dense<0.000000e+00> : vector<6x6xf32>
    %698 = tpu.matmul %696, %697, %cst_311 {dimension_numbers = #tpu.dot_dimension_numbers<[1], [1], [0], [0], [0, 0, 1, 0], [], []>} : vector<6x8xf32>, vector<6x8xf32>, vector<6x6xf32> -> vector<6x6xf32>
    %699 = vector.broadcast %43 : vector<1x6xf32> to vector<6x6xf32>
    %700 = arith.addf %698, %699 : vector<6x6xf32>
    %cst_312 = arith.constant dense<0xFF800000> : vector<6xf32>
    %701 = vector.multi_reduction <maximumf>, %700, %cst_312 [1] : vector<6x6xf32> to vector<6xf32>
    %702 = vector.shape_cast %701 : vector<6xf32> to vector<6x1xf32>
    %703 = vector.broadcast %702 : vector<6x1xf32> to vector<6x6xf32>
    %704 = arith.subf %700, %703 : vector<6x6xf32>
    %705 = math.exp %704 : vector<6x6xf32>
    %cst_313 = arith.constant dense<0.000000e+00> : vector<6xf32>
    %706 = vector.multi_reduction <add>, %705, %cst_313 [1] : vector<6x6xf32> to vector<6xf32>
    %707 = vector.shape_cast %706 : vector<6xf32> to vector<6x1xf32>
    %708 = tpu.reciprocal %707 {approx = true} : vector<6x1xf32> -> vector<6x1xf32>
    %709 = vector.broadcast %708 : vector<6x1xf32> to vector<6x6xf32>
    %710 = arith.mulf %705, %709 : vector<6x6xf32>
    %711 = vector.extract_strided_slice %695 {offsets = [0, 0], sizes = [6, 8], strides = [1, 1]} : vector<6x32xf32> to vector<6x8xf32>
    %cst_314 = arith.constant dense<0.000000e+00> : vector<6x8xf32>
    %712 = tpu.matmul %710, %711, %cst_314 {dimension_numbers = #tpu.dot_dimension_numbers<[1], [0], [0], [1], [0, 0, 1, 1], [], []>} : vector<6x6xf32>, vector<6x8xf32>, vector<6x8xf32> -> vector<6x8xf32>
    %713 = vector.extract_strided_slice %657 {offsets = [0, 0], sizes = [8, 32], strides = [1, 1]} : vector<32x32xf32> to vector<8x32xf32>
    %cst_315 = arith.constant dense<0.000000e+00> : vector<6x32xf32>
    %714 = tpu.matmul %712, %713, %cst_315 {dimension_numbers = #tpu.dot_dimension_numbers<[1], [0], [0], [1], [0, 0, 1, 1], [], []>} : vector<6x8xf32>, vector<8x32xf32>, vector<6x32xf32> -> vector<6x32xf32>
    %715 = vector.extract_strided_slice %690 {offsets = [0, 8], sizes = [6, 8], strides = [1, 1]} : vector<6x32xf32> to vector<6x8xf32>
    %716 = vector.extract_strided_slice %694 {offsets = [0, 8], sizes = [6, 8], strides = [1, 1]} : vector<6x32xf32> to vector<6x8xf32>
    %cst_316 = arith.constant dense<0.000000e+00> : vector<6x6xf32>
    %717 = tpu.matmul %715, %716, %cst_316 {dimension_numbers = #tpu.dot_dimension_numbers<[1], [1], [0], [0], [0, 0, 1, 0], [], []>} : vector<6x8xf32>, vector<6x8xf32>, vector<6x6xf32> -> vector<6x6xf32>
    %718 = vector.broadcast %43 : vector<1x6xf32> to vector<6x6xf32>
    %719 = arith.addf %717, %718 : vector<6x6xf32>
    %cst_317 = arith.constant dense<0xFF800000> : vector<6xf32>
    %720 = vector.multi_reduction <maximumf>, %719, %cst_317 [1] : vector<6x6xf32> to vector<6xf32>
    %721 = vector.shape_cast %720 : vector<6xf32> to vector<6x1xf32>
    %722 = vector.broadcast %721 : vector<6x1xf32> to vector<6x6xf32>
    %723 = arith.subf %719, %722 : vector<6x6xf32>
    %724 = math.exp %723 : vector<6x6xf32>
    %cst_318 = arith.constant dense<0.000000e+00> : vector<6xf32>
    %725 = vector.multi_reduction <add>, %724, %cst_318 [1] : vector<6x6xf32> to vector<6xf32>
    %726 = vector.shape_cast %725 : vector<6xf32> to vector<6x1xf32>
    %727 = tpu.reciprocal %726 {approx = true} : vector<6x1xf32> -> vector<6x1xf32>
    %728 = vector.broadcast %727 : vector<6x1xf32> to vector<6x6xf32>
    %729 = arith.mulf %724, %728 : vector<6x6xf32>
    %730 = vector.extract_strided_slice %695 {offsets = [0, 8], sizes = [6, 8], strides = [1, 1]} : vector<6x32xf32> to vector<6x8xf32>
    %cst_319 = arith.constant dense<0.000000e+00> : vector<6x8xf32>
    %731 = tpu.matmul %729, %730, %cst_319 {dimension_numbers = #tpu.dot_dimension_numbers<[1], [0], [0], [1], [0, 0, 1, 1], [], []>} : vector<6x6xf32>, vector<6x8xf32>, vector<6x8xf32> -> vector<6x8xf32>
    %732 = vector.extract_strided_slice %657 {offsets = [8, 0], sizes = [8, 32], strides = [1, 1]} : vector<32x32xf32> to vector<8x32xf32>
    %cst_320 = arith.constant dense<0.000000e+00> : vector<6x32xf32>
    %733 = tpu.matmul %731, %732, %cst_320 {dimension_numbers = #tpu.dot_dimension_numbers<[1], [0], [0], [1], [0, 0, 1, 1], [], []>} : vector<6x8xf32>, vector<8x32xf32>, vector<6x32xf32> -> vector<6x32xf32>
    %734 = arith.addf %714, %733 : vector<6x32xf32>
    %735 = vector.extract_strided_slice %690 {offsets = [0, 16], sizes = [6, 8], strides = [1, 1]} : vector<6x32xf32> to vector<6x8xf32>
    %736 = vector.extract_strided_slice %694 {offsets = [0, 16], sizes = [6, 8], strides = [1, 1]} : vector<6x32xf32> to vector<6x8xf32>
    %cst_321 = arith.constant dense<0.000000e+00> : vector<6x6xf32>
    %737 = tpu.matmul %735, %736, %cst_321 {dimension_numbers = #tpu.dot_dimension_numbers<[1], [1], [0], [0], [0, 0, 1, 0], [], []>} : vector<6x8xf32>, vector<6x8xf32>, vector<6x6xf32> -> vector<6x6xf32>
    %738 = vector.broadcast %43 : vector<1x6xf32> to vector<6x6xf32>
    %739 = arith.addf %737, %738 : vector<6x6xf32>
    %cst_322 = arith.constant dense<0xFF800000> : vector<6xf32>
    %740 = vector.multi_reduction <maximumf>, %739, %cst_322 [1] : vector<6x6xf32> to vector<6xf32>
    %741 = vector.shape_cast %740 : vector<6xf32> to vector<6x1xf32>
    %742 = vector.broadcast %741 : vector<6x1xf32> to vector<6x6xf32>
    %743 = arith.subf %739, %742 : vector<6x6xf32>
    %744 = math.exp %743 : vector<6x6xf32>
    %cst_323 = arith.constant dense<0.000000e+00> : vector<6xf32>
    %745 = vector.multi_reduction <add>, %744, %cst_323 [1] : vector<6x6xf32> to vector<6xf32>
    %746 = vector.shape_cast %745 : vector<6xf32> to vector<6x1xf32>
    %747 = tpu.reciprocal %746 {approx = true} : vector<6x1xf32> -> vector<6x1xf32>
    %748 = vector.broadcast %747 : vector<6x1xf32> to vector<6x6xf32>
    %749 = arith.mulf %744, %748 : vector<6x6xf32>
    %750 = vector.extract_strided_slice %695 {offsets = [0, 16], sizes = [6, 8], strides = [1, 1]} : vector<6x32xf32> to vector<6x8xf32>
    %cst_324 = arith.constant dense<0.000000e+00> : vector<6x8xf32>
    %751 = tpu.matmul %749, %750, %cst_324 {dimension_numbers = #tpu.dot_dimension_numbers<[1], [0], [0], [1], [0, 0, 1, 1], [], []>} : vector<6x6xf32>, vector<6x8xf32>, vector<6x8xf32> -> vector<6x8xf32>
    %752 = vector.extract_strided_slice %657 {offsets = [16, 0], sizes = [8, 32], strides = [1, 1]} : vector<32x32xf32> to vector<8x32xf32>
    %cst_325 = arith.constant dense<0.000000e+00> : vector<6x32xf32>
    %753 = tpu.matmul %751, %752, %cst_325 {dimension_numbers = #tpu.dot_dimension_numbers<[1], [0], [0], [1], [0, 0, 1, 1], [], []>} : vector<6x8xf32>, vector<8x32xf32>, vector<6x32xf32> -> vector<6x32xf32>
    %754 = arith.addf %734, %753 : vector<6x32xf32>
    %755 = vector.extract_strided_slice %690 {offsets = [0, 24], sizes = [6, 8], strides = [1, 1]} : vector<6x32xf32> to vector<6x8xf32>
    %756 = vector.extract_strided_slice %694 {offsets = [0, 24], sizes = [6, 8], strides = [1, 1]} : vector<6x32xf32> to vector<6x8xf32>
    %cst_326 = arith.constant dense<0.000000e+00> : vector<6x6xf32>
    %757 = tpu.matmul %755, %756, %cst_326 {dimension_numbers = #tpu.dot_dimension_numbers<[1], [1], [0], [0], [0, 0, 1, 0], [], []>} : vector<6x8xf32>, vector<6x8xf32>, vector<6x6xf32> -> vector<6x6xf32>
    %758 = vector.broadcast %43 : vector<1x6xf32> to vector<6x6xf32>
    %759 = arith.addf %757, %758 : vector<6x6xf32>
    %cst_327 = arith.constant dense<0xFF800000> : vector<6xf32>
    %760 = vector.multi_reduction <maximumf>, %759, %cst_327 [1] : vector<6x6xf32> to vector<6xf32>
    %761 = vector.shape_cast %760 : vector<6xf32> to vector<6x1xf32>
    %762 = vector.broadcast %761 : vector<6x1xf32> to vector<6x6xf32>
    %763 = arith.subf %759, %762 : vector<6x6xf32>
    %764 = math.exp %763 : vector<6x6xf32>
    %cst_328 = arith.constant dense<0.000000e+00> : vector<6xf32>
    %765 = vector.multi_reduction <add>, %764, %cst_328 [1] : vector<6x6xf32> to vector<6xf32>
    %766 = vector.shape_cast %765 : vector<6xf32> to vector<6x1xf32>
    %767 = tpu.reciprocal %766 {approx = true} : vector<6x1xf32> -> vector<6x1xf32>
    %768 = vector.broadcast %767 : vector<6x1xf32> to vector<6x6xf32>
    %769 = arith.mulf %764, %768 : vector<6x6xf32>
    %770 = vector.extract_strided_slice %695 {offsets = [0, 24], sizes = [6, 8], strides = [1, 1]} : vector<6x32xf32> to vector<6x8xf32>
    %cst_329 = arith.constant dense<0.000000e+00> : vector<6x8xf32>
    %771 = tpu.matmul %769, %770, %cst_329 {dimension_numbers = #tpu.dot_dimension_numbers<[1], [0], [0], [1], [0, 0, 1, 1], [], []>} : vector<6x6xf32>, vector<6x8xf32>, vector<6x8xf32> -> vector<6x8xf32>
    %772 = vector.extract_strided_slice %657 {offsets = [24, 0], sizes = [8, 32], strides = [1, 1]} : vector<32x32xf32> to vector<8x32xf32>
    %cst_330 = arith.constant dense<0.000000e+00> : vector<6x32xf32>
    %773 = tpu.matmul %771, %772, %cst_330 {dimension_numbers = #tpu.dot_dimension_numbers<[1], [0], [0], [1], [0, 0, 1, 1], [], []>} : vector<6x8xf32>, vector<8x32xf32>, vector<6x32xf32> -> vector<6x32xf32>
    %774 = arith.addf %754, %773 : vector<6x32xf32>
    %775 = vector.broadcast %659 : vector<1x32xf32> to vector<6x32xf32>
    %776 = arith.addf %774, %775 : vector<6x32xf32>
    %777 = arith.addf %776, %387 : vector<6x32xf32>
    %cst_331 = arith.constant dense<0.000000e+00> : vector<6xf32>
    %778 = vector.multi_reduction <add>, %777, %cst_331 [1] : vector<6x32xf32> to vector<6xf32>
    %779 = vector.shape_cast %778 : vector<6xf32> to vector<6x1xf32>
    %cst_332 = arith.constant 3.200000e+01 : f32
    %780 = vector.broadcast %cst_332 : f32 to vector<6x1xf32>
    %781 = arith.divf %779, %780 : vector<6x1xf32>
    %782 = vector.broadcast %781 : vector<6x1xf32> to vector<6x32xf32>
    %783 = arith.subf %777, %782 : vector<6x32xf32>
    %784 = arith.mulf %783, %783 : vector<6x32xf32>
    %cst_333 = arith.constant dense<0.000000e+00> : vector<6xf32>
    %785 = vector.multi_reduction <add>, %784, %cst_333 [1] : vector<6x32xf32> to vector<6xf32>
    %786 = vector.shape_cast %785 : vector<6xf32> to vector<6x1xf32>
    %cst_334 = arith.constant 3.200000e+01 : f32
    %787 = vector.broadcast %cst_334 : f32 to vector<6x1xf32>
    %788 = arith.divf %786, %787 : vector<6x1xf32>
    %789 = vector.broadcast %781 : vector<6x1xf32> to vector<6x32xf32>
    %790 = arith.subf %777, %789 : vector<6x32xf32>
    %cst_335 = arith.constant 9.99999996E-13 : f32
    %791 = vector.broadcast %cst_335 : f32 to vector<6x1xf32>
    %792 = arith.addf %788, %791 : vector<6x1xf32>
    %793 = math.rsqrt %792 : vector<6x1xf32>
    %794 = vector.broadcast %793 : vector<6x1xf32> to vector<6x32xf32>
    %795 = arith.mulf %790, %794 : vector<6x32xf32>
    %796 = vector.broadcast %661 : vector<1x32xf32> to vector<6x32xf32>
    %797 = arith.mulf %795, %796 : vector<6x32xf32>
    %798 = vector.broadcast %663 : vector<1x32xf32> to vector<6x32xf32>
    %799 = arith.addf %797, %798 : vector<6x32xf32>
    %cst_336 = arith.constant dense<0.000000e+00> : vector<6x96xf32>
    %800 = tpu.matmul %799, %665, %cst_336 {dimension_numbers = #tpu.dot_dimension_numbers<[1], [0], [0], [1], [0, 0, 1, 1], [], []>} : vector<6x32xf32>, vector<32x96xf32>, vector<6x96xf32> -> vector<6x96xf32>
    %801 = vector.broadcast %667 : vector<1x96xf32> to vector<6x96xf32>
    %802 = arith.addf %800, %801 : vector<6x96xf32>
    %803 = vector.extract_strided_slice %802 {offsets = [0, 0], sizes = [6, 32], strides = [1, 1]} : vector<6x96xf32> to vector<6x32xf32>
    %804 = vector.extract_strided_slice %802 {offsets = [0, 32], sizes = [6, 32], strides = [1, 1]} : vector<6x96xf32> to vector<6x32xf32>
    %805 = vector.extract_strided_slice %802 {offsets = [0, 64], sizes = [6, 32], strides = [1, 1]} : vector<6x96xf32> to vector<6x32xf32>
    %806 = vector.extract_strided_slice %803 {offsets = [0, 0], sizes = [6, 8], strides = [1, 1]} : vector<6x32xf32> to vector<6x8xf32>
    %807 = vector.extract_strided_slice %804 {offsets = [0, 0], sizes = [6, 8], strides = [1, 1]} : vector<6x32xf32> to vector<6x8xf32>
    %cst_337 = arith.constant dense<0.000000e+00> : vector<6x6xf32>
    %808 = tpu.matmul %806, %807, %cst_337 {dimension_numbers = #tpu.dot_dimension_numbers<[1], [1], [0], [0], [0, 0, 1, 0], [], []>} : vector<6x8xf32>, vector<6x8xf32>, vector<6x6xf32> -> vector<6x6xf32>
    %809 = arith.addf %808, %45 : vector<6x6xf32>
    %cst_338 = arith.constant dense<0xFF800000> : vector<6xf32>
    %810 = vector.multi_reduction <maximumf>, %809, %cst_338 [1] : vector<6x6xf32> to vector<6xf32>
    %811 = vector.shape_cast %810 : vector<6xf32> to vector<6x1xf32>
    %812 = vector.broadcast %811 : vector<6x1xf32> to vector<6x6xf32>
    %813 = arith.subf %809, %812 : vector<6x6xf32>
    %814 = math.exp %813 : vector<6x6xf32>
    %cst_339 = arith.constant dense<0.000000e+00> : vector<6xf32>
    %815 = vector.multi_reduction <add>, %814, %cst_339 [1] : vector<6x6xf32> to vector<6xf32>
    %816 = vector.shape_cast %815 : vector<6xf32> to vector<6x1xf32>
    %817 = tpu.reciprocal %816 {approx = true} : vector<6x1xf32> -> vector<6x1xf32>
    %818 = vector.broadcast %817 : vector<6x1xf32> to vector<6x6xf32>
    %819 = arith.mulf %814, %818 : vector<6x6xf32>
    %820 = vector.extract_strided_slice %805 {offsets = [0, 0], sizes = [6, 8], strides = [1, 1]} : vector<6x32xf32> to vector<6x8xf32>
    %cst_340 = arith.constant dense<0.000000e+00> : vector<6x8xf32>
    %821 = tpu.matmul %819, %820, %cst_340 {dimension_numbers = #tpu.dot_dimension_numbers<[1], [0], [0], [1], [0, 0, 1, 1], [], []>} : vector<6x6xf32>, vector<6x8xf32>, vector<6x8xf32> -> vector<6x8xf32>
    %822 = vector.extract_strided_slice %669 {offsets = [0, 0], sizes = [8, 32], strides = [1, 1]} : vector<32x32xf32> to vector<8x32xf32>
    %cst_341 = arith.constant dense<0.000000e+00> : vector<6x32xf32>
    %823 = tpu.matmul %821, %822, %cst_341 {dimension_numbers = #tpu.dot_dimension_numbers<[1], [0], [0], [1], [0, 0, 1, 1], [], []>} : vector<6x8xf32>, vector<8x32xf32>, vector<6x32xf32> -> vector<6x32xf32>
    %824 = vector.extract_strided_slice %803 {offsets = [0, 8], sizes = [6, 8], strides = [1, 1]} : vector<6x32xf32> to vector<6x8xf32>
    %825 = vector.extract_strided_slice %804 {offsets = [0, 8], sizes = [6, 8], strides = [1, 1]} : vector<6x32xf32> to vector<6x8xf32>
    %cst_342 = arith.constant dense<0.000000e+00> : vector<6x6xf32>
    %826 = tpu.matmul %824, %825, %cst_342 {dimension_numbers = #tpu.dot_dimension_numbers<[1], [1], [0], [0], [0, 0, 1, 0], [], []>} : vector<6x8xf32>, vector<6x8xf32>, vector<6x6xf32> -> vector<6x6xf32>
    %827 = arith.addf %826, %45 : vector<6x6xf32>
    %cst_343 = arith.constant dense<0xFF800000> : vector<6xf32>
    %828 = vector.multi_reduction <maximumf>, %827, %cst_343 [1] : vector<6x6xf32> to vector<6xf32>
    %829 = vector.shape_cast %828 : vector<6xf32> to vector<6x1xf32>
    %830 = vector.broadcast %829 : vector<6x1xf32> to vector<6x6xf32>
    %831 = arith.subf %827, %830 : vector<6x6xf32>
    %832 = math.exp %831 : vector<6x6xf32>
    %cst_344 = arith.constant dense<0.000000e+00> : vector<6xf32>
    %833 = vector.multi_reduction <add>, %832, %cst_344 [1] : vector<6x6xf32> to vector<6xf32>
    %834 = vector.shape_cast %833 : vector<6xf32> to vector<6x1xf32>
    %835 = tpu.reciprocal %834 {approx = true} : vector<6x1xf32> -> vector<6x1xf32>
    %836 = vector.broadcast %835 : vector<6x1xf32> to vector<6x6xf32>
    %837 = arith.mulf %832, %836 : vector<6x6xf32>
    %838 = vector.extract_strided_slice %805 {offsets = [0, 8], sizes = [6, 8], strides = [1, 1]} : vector<6x32xf32> to vector<6x8xf32>
    %cst_345 = arith.constant dense<0.000000e+00> : vector<6x8xf32>
    %839 = tpu.matmul %837, %838, %cst_345 {dimension_numbers = #tpu.dot_dimension_numbers<[1], [0], [0], [1], [0, 0, 1, 1], [], []>} : vector<6x6xf32>, vector<6x8xf32>, vector<6x8xf32> -> vector<6x8xf32>
    %840 = vector.extract_strided_slice %669 {offsets = [8, 0], sizes = [8, 32], strides = [1, 1]} : vector<32x32xf32> to vector<8x32xf32>
    %cst_346 = arith.constant dense<0.000000e+00> : vector<6x32xf32>
    %841 = tpu.matmul %839, %840, %cst_346 {dimension_numbers = #tpu.dot_dimension_numbers<[1], [0], [0], [1], [0, 0, 1, 1], [], []>} : vector<6x8xf32>, vector<8x32xf32>, vector<6x32xf32> -> vector<6x32xf32>
    %842 = arith.addf %823, %841 : vector<6x32xf32>
    %843 = vector.extract_strided_slice %803 {offsets = [0, 16], sizes = [6, 8], strides = [1, 1]} : vector<6x32xf32> to vector<6x8xf32>
    %844 = vector.extract_strided_slice %804 {offsets = [0, 16], sizes = [6, 8], strides = [1, 1]} : vector<6x32xf32> to vector<6x8xf32>
    %cst_347 = arith.constant dense<0.000000e+00> : vector<6x6xf32>
    %845 = tpu.matmul %843, %844, %cst_347 {dimension_numbers = #tpu.dot_dimension_numbers<[1], [1], [0], [0], [0, 0, 1, 0], [], []>} : vector<6x8xf32>, vector<6x8xf32>, vector<6x6xf32> -> vector<6x6xf32>
    %846 = arith.addf %845, %45 : vector<6x6xf32>
    %cst_348 = arith.constant dense<0xFF800000> : vector<6xf32>
    %847 = vector.multi_reduction <maximumf>, %846, %cst_348 [1] : vector<6x6xf32> to vector<6xf32>
    %848 = vector.shape_cast %847 : vector<6xf32> to vector<6x1xf32>
    %849 = vector.broadcast %848 : vector<6x1xf32> to vector<6x6xf32>
    %850 = arith.subf %846, %849 : vector<6x6xf32>
    %851 = math.exp %850 : vector<6x6xf32>
    %cst_349 = arith.constant dense<0.000000e+00> : vector<6xf32>
    %852 = vector.multi_reduction <add>, %851, %cst_349 [1] : vector<6x6xf32> to vector<6xf32>
    %853 = vector.shape_cast %852 : vector<6xf32> to vector<6x1xf32>
    %854 = tpu.reciprocal %853 {approx = true} : vector<6x1xf32> -> vector<6x1xf32>
    %855 = vector.broadcast %854 : vector<6x1xf32> to vector<6x6xf32>
    %856 = arith.mulf %851, %855 : vector<6x6xf32>
    %857 = vector.extract_strided_slice %805 {offsets = [0, 16], sizes = [6, 8], strides = [1, 1]} : vector<6x32xf32> to vector<6x8xf32>
    %cst_350 = arith.constant dense<0.000000e+00> : vector<6x8xf32>
    %858 = tpu.matmul %856, %857, %cst_350 {dimension_numbers = #tpu.dot_dimension_numbers<[1], [0], [0], [1], [0, 0, 1, 1], [], []>} : vector<6x6xf32>, vector<6x8xf32>, vector<6x8xf32> -> vector<6x8xf32>
    %859 = vector.extract_strided_slice %669 {offsets = [16, 0], sizes = [8, 32], strides = [1, 1]} : vector<32x32xf32> to vector<8x32xf32>
    %cst_351 = arith.constant dense<0.000000e+00> : vector<6x32xf32>
    %860 = tpu.matmul %858, %859, %cst_351 {dimension_numbers = #tpu.dot_dimension_numbers<[1], [0], [0], [1], [0, 0, 1, 1], [], []>} : vector<6x8xf32>, vector<8x32xf32>, vector<6x32xf32> -> vector<6x32xf32>
    %861 = arith.addf %842, %860 : vector<6x32xf32>
    %862 = vector.extract_strided_slice %803 {offsets = [0, 24], sizes = [6, 8], strides = [1, 1]} : vector<6x32xf32> to vector<6x8xf32>
    %863 = vector.extract_strided_slice %804 {offsets = [0, 24], sizes = [6, 8], strides = [1, 1]} : vector<6x32xf32> to vector<6x8xf32>
    %cst_352 = arith.constant dense<0.000000e+00> : vector<6x6xf32>
    %864 = tpu.matmul %862, %863, %cst_352 {dimension_numbers = #tpu.dot_dimension_numbers<[1], [1], [0], [0], [0, 0, 1, 0], [], []>} : vector<6x8xf32>, vector<6x8xf32>, vector<6x6xf32> -> vector<6x6xf32>
    %865 = arith.addf %864, %45 : vector<6x6xf32>
    %cst_353 = arith.constant dense<0xFF800000> : vector<6xf32>
    %866 = vector.multi_reduction <maximumf>, %865, %cst_353 [1] : vector<6x6xf32> to vector<6xf32>
    %867 = vector.shape_cast %866 : vector<6xf32> to vector<6x1xf32>
    %868 = vector.broadcast %867 : vector<6x1xf32> to vector<6x6xf32>
    %869 = arith.subf %865, %868 : vector<6x6xf32>
    %870 = math.exp %869 : vector<6x6xf32>
    %cst_354 = arith.constant dense<0.000000e+00> : vector<6xf32>
    %871 = vector.multi_reduction <add>, %870, %cst_354 [1] : vector<6x6xf32> to vector<6xf32>
    %872 = vector.shape_cast %871 : vector<6xf32> to vector<6x1xf32>
    %873 = tpu.reciprocal %872 {approx = true} : vector<6x1xf32> -> vector<6x1xf32>
    %874 = vector.broadcast %873 : vector<6x1xf32> to vector<6x6xf32>
    %875 = arith.mulf %870, %874 : vector<6x6xf32>
    %876 = vector.extract_strided_slice %805 {offsets = [0, 24], sizes = [6, 8], strides = [1, 1]} : vector<6x32xf32> to vector<6x8xf32>
    %cst_355 = arith.constant dense<0.000000e+00> : vector<6x8xf32>
    %877 = tpu.matmul %875, %876, %cst_355 {dimension_numbers = #tpu.dot_dimension_numbers<[1], [0], [0], [1], [0, 0, 1, 1], [], []>} : vector<6x6xf32>, vector<6x8xf32>, vector<6x8xf32> -> vector<6x8xf32>
    %878 = vector.extract_strided_slice %669 {offsets = [24, 0], sizes = [8, 32], strides = [1, 1]} : vector<32x32xf32> to vector<8x32xf32>
    %cst_356 = arith.constant dense<0.000000e+00> : vector<6x32xf32>
    %879 = tpu.matmul %877, %878, %cst_356 {dimension_numbers = #tpu.dot_dimension_numbers<[1], [0], [0], [1], [0, 0, 1, 1], [], []>} : vector<6x8xf32>, vector<8x32xf32>, vector<6x32xf32> -> vector<6x32xf32>
    %880 = arith.addf %861, %879 : vector<6x32xf32>
    %881 = vector.broadcast %671 : vector<1x32xf32> to vector<6x32xf32>
    %882 = arith.addf %880, %881 : vector<6x32xf32>
    %883 = arith.addf %882, %799 : vector<6x32xf32>
    %cst_357 = arith.constant dense<0.000000e+00> : vector<6xf32>
    %884 = vector.multi_reduction <add>, %883, %cst_357 [1] : vector<6x32xf32> to vector<6xf32>
    %885 = vector.shape_cast %884 : vector<6xf32> to vector<6x1xf32>
    %cst_358 = arith.constant 3.200000e+01 : f32
    %886 = vector.broadcast %cst_358 : f32 to vector<6x1xf32>
    %887 = arith.divf %885, %886 : vector<6x1xf32>
    %888 = vector.broadcast %887 : vector<6x1xf32> to vector<6x32xf32>
    %889 = arith.subf %883, %888 : vector<6x32xf32>
    %890 = arith.mulf %889, %889 : vector<6x32xf32>
    %cst_359 = arith.constant dense<0.000000e+00> : vector<6xf32>
    %891 = vector.multi_reduction <add>, %890, %cst_359 [1] : vector<6x32xf32> to vector<6xf32>
    %892 = vector.shape_cast %891 : vector<6xf32> to vector<6x1xf32>
    %cst_360 = arith.constant 3.200000e+01 : f32
    %893 = vector.broadcast %cst_360 : f32 to vector<6x1xf32>
    %894 = arith.divf %892, %893 : vector<6x1xf32>
    %895 = vector.broadcast %887 : vector<6x1xf32> to vector<6x32xf32>
    %896 = arith.subf %883, %895 : vector<6x32xf32>
    %cst_361 = arith.constant 9.99999996E-13 : f32
    %897 = vector.broadcast %cst_361 : f32 to vector<6x1xf32>
    %898 = arith.addf %894, %897 : vector<6x1xf32>
    %899 = math.rsqrt %898 : vector<6x1xf32>
    %900 = vector.broadcast %899 : vector<6x1xf32> to vector<6x32xf32>
    %901 = arith.mulf %896, %900 : vector<6x32xf32>
    %902 = vector.broadcast %673 : vector<1x32xf32> to vector<6x32xf32>
    %903 = arith.mulf %901, %902 : vector<6x32xf32>
    %904 = vector.broadcast %675 : vector<1x32xf32> to vector<6x32xf32>
    %905 = arith.addf %903, %904 : vector<6x32xf32>
    %cst_362 = arith.constant dense<0.000000e+00> : vector<6x64xf32>
    %906 = tpu.matmul %905, %677, %cst_362 {dimension_numbers = #tpu.dot_dimension_numbers<[1], [0], [0], [1], [0, 0, 1, 1], [], []>} : vector<6x32xf32>, vector<32x64xf32>, vector<6x64xf32> -> vector<6x64xf32>
    %907 = vector.broadcast %679 : vector<1x64xf32> to vector<6x64xf32>
    %908 = arith.addf %906, %907 : vector<6x64xf32>
    %909 = arith.mulf %908, %908 : vector<6x64xf32>
    %910 = arith.mulf %908, %909 : vector<6x64xf32>
    %cst_363 = arith.constant 4.471500e-02 : f32
    %911 = vector.broadcast %cst_363 : f32 to vector<6x64xf32>
    %912 = arith.mulf %911, %910 : vector<6x64xf32>
    %913 = arith.addf %908, %912 : vector<6x64xf32>
    %cst_364 = arith.constant 0.797884583 : f32
    %914 = vector.broadcast %cst_364 : f32 to vector<6x64xf32>
    %915 = arith.mulf %914, %913 : vector<6x64xf32>
    %916 = math.tanh %915 : vector<6x64xf32>
    %cst_365 = arith.constant 1.000000e+00 : f32
    %917 = vector.broadcast %cst_365 : f32 to vector<6x64xf32>
    %918 = arith.addf %917, %916 : vector<6x64xf32>
    %cst_366 = arith.constant 5.000000e-01 : f32
    %919 = vector.broadcast %cst_366 : f32 to vector<6x64xf32>
    %920 = arith.mulf %919, %918 : vector<6x64xf32>
    %921 = arith.mulf %908, %920 : vector<6x64xf32>
    %cst_367 = arith.constant dense<0.000000e+00> : vector<6x32xf32>
    %922 = tpu.matmul %921, %681, %cst_367 {dimension_numbers = #tpu.dot_dimension_numbers<[1], [0], [0], [1], [0, 0, 1, 1], [], []>} : vector<6x64xf32>, vector<64x32xf32>, vector<6x32xf32> -> vector<6x32xf32>
    %923 = vector.broadcast %683 : vector<1x32xf32> to vector<6x32xf32>
    %924 = arith.addf %922, %923 : vector<6x32xf32>
    %925 = arith.addf %924, %905 : vector<6x32xf32>
    %cst_368 = arith.constant dense<0.000000e+00> : vector<6xf32>
    %926 = vector.multi_reduction <add>, %925, %cst_368 [1] : vector<6x32xf32> to vector<6xf32>
    %927 = vector.shape_cast %926 : vector<6xf32> to vector<6x1xf32>
    %cst_369 = arith.constant 3.200000e+01 : f32
    %928 = vector.broadcast %cst_369 : f32 to vector<6x1xf32>
    %929 = arith.divf %927, %928 : vector<6x1xf32>
    %930 = vector.broadcast %929 : vector<6x1xf32> to vector<6x32xf32>
    %931 = arith.subf %925, %930 : vector<6x32xf32>
    %932 = arith.mulf %931, %931 : vector<6x32xf32>
    %cst_370 = arith.constant dense<0.000000e+00> : vector<6xf32>
    %933 = vector.multi_reduction <add>, %932, %cst_370 [1] : vector<6x32xf32> to vector<6xf32>
    %934 = vector.shape_cast %933 : vector<6xf32> to vector<6x1xf32>
    %cst_371 = arith.constant 3.200000e+01 : f32
    %935 = vector.broadcast %cst_371 : f32 to vector<6x1xf32>
    %936 = arith.divf %934, %935 : vector<6x1xf32>
    %937 = vector.broadcast %929 : vector<6x1xf32> to vector<6x32xf32>
    %938 = arith.subf %925, %937 : vector<6x32xf32>
    %cst_372 = arith.constant 9.99999996E-13 : f32
    %939 = vector.broadcast %cst_372 : f32 to vector<6x1xf32>
    %940 = arith.addf %936, %939 : vector<6x1xf32>
    %941 = math.rsqrt %940 : vector<6x1xf32>
    %942 = vector.broadcast %941 : vector<6x1xf32> to vector<6x32xf32>
    %943 = arith.mulf %938, %942 : vector<6x32xf32>
    %944 = vector.broadcast %685 : vector<1x32xf32> to vector<6x32xf32>
    %945 = arith.mulf %943, %944 : vector<6x32xf32>
    %946 = vector.broadcast %687 : vector<1x32xf32> to vector<6x32xf32>
    %947 = arith.addf %945, %946 : vector<6x32xf32>
    %cst_373 = arith.constant dense<0.000000e+00> : vector<6x32xf32>
    %948 = tpu.matmul %647, %649, %cst_373 {dimension_numbers = #tpu.dot_dimension_numbers<[1], [0], [0], [1], [0, 0, 1, 1], [], []>} : vector<6x32xf32>, vector<32x32xf32>, vector<6x32xf32> -> vector<6x32xf32>
    %949 = vector.broadcast %651 : vector<1x32xf32> to vector<6x32xf32>
    %950 = arith.addf %948, %949 : vector<6x32xf32>
    %cst_374 = arith.constant dense<0.000000e+00> : vector<6x64xf32>
    %951 = tpu.matmul %83, %653, %cst_374 {dimension_numbers = #tpu.dot_dimension_numbers<[1], [0], [0], [1], [0, 0, 1, 1], [], []>} : vector<6x32xf32>, vector<32x64xf32>, vector<6x64xf32> -> vector<6x64xf32>
    %952 = vector.broadcast %655 : vector<1x64xf32> to vector<6x64xf32>
    %953 = arith.addf %951, %952 : vector<6x64xf32>
    %954 = vector.extract_strided_slice %953 {offsets = [0, 0], sizes = [6, 32], strides = [1, 1]} : vector<6x64xf32> to vector<6x32xf32>
    %955 = vector.extract_strided_slice %953 {offsets = [0, 32], sizes = [6, 32], strides = [1, 1]} : vector<6x64xf32> to vector<6x32xf32>
    %956 = vector.extract_strided_slice %950 {offsets = [0, 0], sizes = [6, 8], strides = [1, 1]} : vector<6x32xf32> to vector<6x8xf32>
    %957 = vector.extract_strided_slice %954 {offsets = [0, 0], sizes = [6, 8], strides = [1, 1]} : vector<6x32xf32> to vector<6x8xf32>
    %cst_375 = arith.constant dense<0.000000e+00> : vector<6x6xf32>
    %958 = tpu.matmul %956, %957, %cst_375 {dimension_numbers = #tpu.dot_dimension_numbers<[1], [1], [0], [0], [0, 0, 1, 0], [], []>} : vector<6x8xf32>, vector<6x8xf32>, vector<6x6xf32> -> vector<6x6xf32>
    %959 = vector.broadcast %85 : vector<1x6xf32> to vector<6x6xf32>
    %960 = arith.addf %958, %959 : vector<6x6xf32>
    %cst_376 = arith.constant dense<0xFF800000> : vector<6xf32>
    %961 = vector.multi_reduction <maximumf>, %960, %cst_376 [1] : vector<6x6xf32> to vector<6xf32>
    %962 = vector.shape_cast %961 : vector<6xf32> to vector<6x1xf32>
    %963 = vector.broadcast %962 : vector<6x1xf32> to vector<6x6xf32>
    %964 = arith.subf %960, %963 : vector<6x6xf32>
    %965 = math.exp %964 : vector<6x6xf32>
    %cst_377 = arith.constant dense<0.000000e+00> : vector<6xf32>
    %966 = vector.multi_reduction <add>, %965, %cst_377 [1] : vector<6x6xf32> to vector<6xf32>
    %967 = vector.shape_cast %966 : vector<6xf32> to vector<6x1xf32>
    %968 = tpu.reciprocal %967 {approx = true} : vector<6x1xf32> -> vector<6x1xf32>
    %969 = vector.broadcast %968 : vector<6x1xf32> to vector<6x6xf32>
    %970 = arith.mulf %965, %969 : vector<6x6xf32>
    %971 = vector.extract_strided_slice %955 {offsets = [0, 0], sizes = [6, 8], strides = [1, 1]} : vector<6x32xf32> to vector<6x8xf32>
    %cst_378 = arith.constant dense<0.000000e+00> : vector<6x8xf32>
    %972 = tpu.matmul %970, %971, %cst_378 {dimension_numbers = #tpu.dot_dimension_numbers<[1], [0], [0], [1], [0, 0, 1, 1], [], []>} : vector<6x6xf32>, vector<6x8xf32>, vector<6x8xf32> -> vector<6x8xf32>
    %973 = vector.extract_strided_slice %657 {offsets = [0, 0], sizes = [8, 32], strides = [1, 1]} : vector<32x32xf32> to vector<8x32xf32>
    %cst_379 = arith.constant dense<0.000000e+00> : vector<6x32xf32>
    %974 = tpu.matmul %972, %973, %cst_379 {dimension_numbers = #tpu.dot_dimension_numbers<[1], [0], [0], [1], [0, 0, 1, 1], [], []>} : vector<6x8xf32>, vector<8x32xf32>, vector<6x32xf32> -> vector<6x32xf32>
    %975 = vector.extract_strided_slice %950 {offsets = [0, 8], sizes = [6, 8], strides = [1, 1]} : vector<6x32xf32> to vector<6x8xf32>
    %976 = vector.extract_strided_slice %954 {offsets = [0, 8], sizes = [6, 8], strides = [1, 1]} : vector<6x32xf32> to vector<6x8xf32>
    %cst_380 = arith.constant dense<0.000000e+00> : vector<6x6xf32>
    %977 = tpu.matmul %975, %976, %cst_380 {dimension_numbers = #tpu.dot_dimension_numbers<[1], [1], [0], [0], [0, 0, 1, 0], [], []>} : vector<6x8xf32>, vector<6x8xf32>, vector<6x6xf32> -> vector<6x6xf32>
    %978 = vector.broadcast %85 : vector<1x6xf32> to vector<6x6xf32>
    %979 = arith.addf %977, %978 : vector<6x6xf32>
    %cst_381 = arith.constant dense<0xFF800000> : vector<6xf32>
    %980 = vector.multi_reduction <maximumf>, %979, %cst_381 [1] : vector<6x6xf32> to vector<6xf32>
    %981 = vector.shape_cast %980 : vector<6xf32> to vector<6x1xf32>
    %982 = vector.broadcast %981 : vector<6x1xf32> to vector<6x6xf32>
    %983 = arith.subf %979, %982 : vector<6x6xf32>
    %984 = math.exp %983 : vector<6x6xf32>
    %cst_382 = arith.constant dense<0.000000e+00> : vector<6xf32>
    %985 = vector.multi_reduction <add>, %984, %cst_382 [1] : vector<6x6xf32> to vector<6xf32>
    %986 = vector.shape_cast %985 : vector<6xf32> to vector<6x1xf32>
    %987 = tpu.reciprocal %986 {approx = true} : vector<6x1xf32> -> vector<6x1xf32>
    %988 = vector.broadcast %987 : vector<6x1xf32> to vector<6x6xf32>
    %989 = arith.mulf %984, %988 : vector<6x6xf32>
    %990 = vector.extract_strided_slice %955 {offsets = [0, 8], sizes = [6, 8], strides = [1, 1]} : vector<6x32xf32> to vector<6x8xf32>
    %cst_383 = arith.constant dense<0.000000e+00> : vector<6x8xf32>
    %991 = tpu.matmul %989, %990, %cst_383 {dimension_numbers = #tpu.dot_dimension_numbers<[1], [0], [0], [1], [0, 0, 1, 1], [], []>} : vector<6x6xf32>, vector<6x8xf32>, vector<6x8xf32> -> vector<6x8xf32>
    %992 = vector.extract_strided_slice %657 {offsets = [8, 0], sizes = [8, 32], strides = [1, 1]} : vector<32x32xf32> to vector<8x32xf32>
    %cst_384 = arith.constant dense<0.000000e+00> : vector<6x32xf32>
    %993 = tpu.matmul %991, %992, %cst_384 {dimension_numbers = #tpu.dot_dimension_numbers<[1], [0], [0], [1], [0, 0, 1, 1], [], []>} : vector<6x8xf32>, vector<8x32xf32>, vector<6x32xf32> -> vector<6x32xf32>
    %994 = arith.addf %974, %993 : vector<6x32xf32>
    %995 = vector.extract_strided_slice %950 {offsets = [0, 16], sizes = [6, 8], strides = [1, 1]} : vector<6x32xf32> to vector<6x8xf32>
    %996 = vector.extract_strided_slice %954 {offsets = [0, 16], sizes = [6, 8], strides = [1, 1]} : vector<6x32xf32> to vector<6x8xf32>
    %cst_385 = arith.constant dense<0.000000e+00> : vector<6x6xf32>
    %997 = tpu.matmul %995, %996, %cst_385 {dimension_numbers = #tpu.dot_dimension_numbers<[1], [1], [0], [0], [0, 0, 1, 0], [], []>} : vector<6x8xf32>, vector<6x8xf32>, vector<6x6xf32> -> vector<6x6xf32>
    %998 = vector.broadcast %85 : vector<1x6xf32> to vector<6x6xf32>
    %999 = arith.addf %997, %998 : vector<6x6xf32>
    %cst_386 = arith.constant dense<0xFF800000> : vector<6xf32>
    %1000 = vector.multi_reduction <maximumf>, %999, %cst_386 [1] : vector<6x6xf32> to vector<6xf32>
    %1001 = vector.shape_cast %1000 : vector<6xf32> to vector<6x1xf32>
    %1002 = vector.broadcast %1001 : vector<6x1xf32> to vector<6x6xf32>
    %1003 = arith.subf %999, %1002 : vector<6x6xf32>
    %1004 = math.exp %1003 : vector<6x6xf32>
    %cst_387 = arith.constant dense<0.000000e+00> : vector<6xf32>
    %1005 = vector.multi_reduction <add>, %1004, %cst_387 [1] : vector<6x6xf32> to vector<6xf32>
    %1006 = vector.shape_cast %1005 : vector<6xf32> to vector<6x1xf32>
    %1007 = tpu.reciprocal %1006 {approx = true} : vector<6x1xf32> -> vector<6x1xf32>
    %1008 = vector.broadcast %1007 : vector<6x1xf32> to vector<6x6xf32>
    %1009 = arith.mulf %1004, %1008 : vector<6x6xf32>
    %1010 = vector.extract_strided_slice %955 {offsets = [0, 16], sizes = [6, 8], strides = [1, 1]} : vector<6x32xf32> to vector<6x8xf32>
    %cst_388 = arith.constant dense<0.000000e+00> : vector<6x8xf32>
    %1011 = tpu.matmul %1009, %1010, %cst_388 {dimension_numbers = #tpu.dot_dimension_numbers<[1], [0], [0], [1], [0, 0, 1, 1], [], []>} : vector<6x6xf32>, vector<6x8xf32>, vector<6x8xf32> -> vector<6x8xf32>
    %1012 = vector.extract_strided_slice %657 {offsets = [16, 0], sizes = [8, 32], strides = [1, 1]} : vector<32x32xf32> to vector<8x32xf32>
    %cst_389 = arith.constant dense<0.000000e+00> : vector<6x32xf32>
    %1013 = tpu.matmul %1011, %1012, %cst_389 {dimension_numbers = #tpu.dot_dimension_numbers<[1], [0], [0], [1], [0, 0, 1, 1], [], []>} : vector<6x8xf32>, vector<8x32xf32>, vector<6x32xf32> -> vector<6x32xf32>
    %1014 = arith.addf %994, %1013 : vector<6x32xf32>
    %1015 = vector.extract_strided_slice %950 {offsets = [0, 24], sizes = [6, 8], strides = [1, 1]} : vector<6x32xf32> to vector<6x8xf32>
    %1016 = vector.extract_strided_slice %954 {offsets = [0, 24], sizes = [6, 8], strides = [1, 1]} : vector<6x32xf32> to vector<6x8xf32>
    %cst_390 = arith.constant dense<0.000000e+00> : vector<6x6xf32>
    %1017 = tpu.matmul %1015, %1016, %cst_390 {dimension_numbers = #tpu.dot_dimension_numbers<[1], [1], [0], [0], [0, 0, 1, 0], [], []>} : vector<6x8xf32>, vector<6x8xf32>, vector<6x6xf32> -> vector<6x6xf32>
    %1018 = vector.broadcast %85 : vector<1x6xf32> to vector<6x6xf32>
    %1019 = arith.addf %1017, %1018 : vector<6x6xf32>
    %cst_391 = arith.constant dense<0xFF800000> : vector<6xf32>
    %1020 = vector.multi_reduction <maximumf>, %1019, %cst_391 [1] : vector<6x6xf32> to vector<6xf32>
    %1021 = vector.shape_cast %1020 : vector<6xf32> to vector<6x1xf32>
    %1022 = vector.broadcast %1021 : vector<6x1xf32> to vector<6x6xf32>
    %1023 = arith.subf %1019, %1022 : vector<6x6xf32>
    %1024 = math.exp %1023 : vector<6x6xf32>
    %cst_392 = arith.constant dense<0.000000e+00> : vector<6xf32>
    %1025 = vector.multi_reduction <add>, %1024, %cst_392 [1] : vector<6x6xf32> to vector<6xf32>
    %1026 = vector.shape_cast %1025 : vector<6xf32> to vector<6x1xf32>
    %1027 = tpu.reciprocal %1026 {approx = true} : vector<6x1xf32> -> vector<6x1xf32>
    %1028 = vector.broadcast %1027 : vector<6x1xf32> to vector<6x6xf32>
    %1029 = arith.mulf %1024, %1028 : vector<6x6xf32>
    %1030 = vector.extract_strided_slice %955 {offsets = [0, 24], sizes = [6, 8], strides = [1, 1]} : vector<6x32xf32> to vector<6x8xf32>
    %cst_393 = arith.constant dense<0.000000e+00> : vector<6x8xf32>
    %1031 = tpu.matmul %1029, %1030, %cst_393 {dimension_numbers = #tpu.dot_dimension_numbers<[1], [0], [0], [1], [0, 0, 1, 1], [], []>} : vector<6x6xf32>, vector<6x8xf32>, vector<6x8xf32> -> vector<6x8xf32>
    %1032 = vector.extract_strided_slice %657 {offsets = [24, 0], sizes = [8, 32], strides = [1, 1]} : vector<32x32xf32> to vector<8x32xf32>
    %cst_394 = arith.constant dense<0.000000e+00> : vector<6x32xf32>
    %1033 = tpu.matmul %1031, %1032, %cst_394 {dimension_numbers = #tpu.dot_dimension_numbers<[1], [0], [0], [1], [0, 0, 1, 1], [], []>} : vector<6x8xf32>, vector<8x32xf32>, vector<6x32xf32> -> vector<6x32xf32>
    %1034 = arith.addf %1014, %1033 : vector<6x32xf32>
    %1035 = vector.broadcast %659 : vector<1x32xf32> to vector<6x32xf32>
    %1036 = arith.addf %1034, %1035 : vector<6x32xf32>
    %1037 = arith.addf %1036, %647 : vector<6x32xf32>
    %cst_395 = arith.constant dense<0.000000e+00> : vector<6xf32>
    %1038 = vector.multi_reduction <add>, %1037, %cst_395 [1] : vector<6x32xf32> to vector<6xf32>
    %1039 = vector.shape_cast %1038 : vector<6xf32> to vector<6x1xf32>
    %cst_396 = arith.constant 3.200000e+01 : f32
    %1040 = vector.broadcast %cst_396 : f32 to vector<6x1xf32>
    %1041 = arith.divf %1039, %1040 : vector<6x1xf32>
    %1042 = vector.broadcast %1041 : vector<6x1xf32> to vector<6x32xf32>
    %1043 = arith.subf %1037, %1042 : vector<6x32xf32>
    %1044 = arith.mulf %1043, %1043 : vector<6x32xf32>
    %cst_397 = arith.constant dense<0.000000e+00> : vector<6xf32>
    %1045 = vector.multi_reduction <add>, %1044, %cst_397 [1] : vector<6x32xf32> to vector<6xf32>
    %1046 = vector.shape_cast %1045 : vector<6xf32> to vector<6x1xf32>
    %cst_398 = arith.constant 3.200000e+01 : f32
    %1047 = vector.broadcast %cst_398 : f32 to vector<6x1xf32>
    %1048 = arith.divf %1046, %1047 : vector<6x1xf32>
    %1049 = vector.broadcast %1041 : vector<6x1xf32> to vector<6x32xf32>
    %1050 = arith.subf %1037, %1049 : vector<6x32xf32>
    %cst_399 = arith.constant 9.99999996E-13 : f32
    %1051 = vector.broadcast %cst_399 : f32 to vector<6x1xf32>
    %1052 = arith.addf %1048, %1051 : vector<6x1xf32>
    %1053 = math.rsqrt %1052 : vector<6x1xf32>
    %1054 = vector.broadcast %1053 : vector<6x1xf32> to vector<6x32xf32>
    %1055 = arith.mulf %1050, %1054 : vector<6x32xf32>
    %1056 = vector.broadcast %661 : vector<1x32xf32> to vector<6x32xf32>
    %1057 = arith.mulf %1055, %1056 : vector<6x32xf32>
    %1058 = vector.broadcast %663 : vector<1x32xf32> to vector<6x32xf32>
    %1059 = arith.addf %1057, %1058 : vector<6x32xf32>
    %cst_400 = arith.constant dense<0.000000e+00> : vector<6x96xf32>
    %1060 = tpu.matmul %1059, %665, %cst_400 {dimension_numbers = #tpu.dot_dimension_numbers<[1], [0], [0], [1], [0, 0, 1, 1], [], []>} : vector<6x32xf32>, vector<32x96xf32>, vector<6x96xf32> -> vector<6x96xf32>
    %1061 = vector.broadcast %667 : vector<1x96xf32> to vector<6x96xf32>
    %1062 = arith.addf %1060, %1061 : vector<6x96xf32>
    %1063 = vector.extract_strided_slice %1062 {offsets = [0, 0], sizes = [6, 32], strides = [1, 1]} : vector<6x96xf32> to vector<6x32xf32>
    %1064 = vector.extract_strided_slice %1062 {offsets = [0, 32], sizes = [6, 32], strides = [1, 1]} : vector<6x96xf32> to vector<6x32xf32>
    %1065 = vector.extract_strided_slice %1062 {offsets = [0, 64], sizes = [6, 32], strides = [1, 1]} : vector<6x96xf32> to vector<6x32xf32>
    %1066 = vector.extract_strided_slice %1063 {offsets = [0, 0], sizes = [6, 8], strides = [1, 1]} : vector<6x32xf32> to vector<6x8xf32>
    %1067 = vector.extract_strided_slice %1064 {offsets = [0, 0], sizes = [6, 8], strides = [1, 1]} : vector<6x32xf32> to vector<6x8xf32>
    %cst_401 = arith.constant dense<0.000000e+00> : vector<6x6xf32>
    %1068 = tpu.matmul %1066, %1067, %cst_401 {dimension_numbers = #tpu.dot_dimension_numbers<[1], [1], [0], [0], [0, 0, 1, 0], [], []>} : vector<6x8xf32>, vector<6x8xf32>, vector<6x6xf32> -> vector<6x6xf32>
    %1069 = arith.addf %1068, %87 : vector<6x6xf32>
    %cst_402 = arith.constant dense<0xFF800000> : vector<6xf32>
    %1070 = vector.multi_reduction <maximumf>, %1069, %cst_402 [1] : vector<6x6xf32> to vector<6xf32>
    %1071 = vector.shape_cast %1070 : vector<6xf32> to vector<6x1xf32>
    %1072 = vector.broadcast %1071 : vector<6x1xf32> to vector<6x6xf32>
    %1073 = arith.subf %1069, %1072 : vector<6x6xf32>
    %1074 = math.exp %1073 : vector<6x6xf32>
    %cst_403 = arith.constant dense<0.000000e+00> : vector<6xf32>
    %1075 = vector.multi_reduction <add>, %1074, %cst_403 [1] : vector<6x6xf32> to vector<6xf32>
    %1076 = vector.shape_cast %1075 : vector<6xf32> to vector<6x1xf32>
    %1077 = tpu.reciprocal %1076 {approx = true} : vector<6x1xf32> -> vector<6x1xf32>
    %1078 = vector.broadcast %1077 : vector<6x1xf32> to vector<6x6xf32>
    %1079 = arith.mulf %1074, %1078 : vector<6x6xf32>
    %1080 = vector.extract_strided_slice %1065 {offsets = [0, 0], sizes = [6, 8], strides = [1, 1]} : vector<6x32xf32> to vector<6x8xf32>
    %cst_404 = arith.constant dense<0.000000e+00> : vector<6x8xf32>
    %1081 = tpu.matmul %1079, %1080, %cst_404 {dimension_numbers = #tpu.dot_dimension_numbers<[1], [0], [0], [1], [0, 0, 1, 1], [], []>} : vector<6x6xf32>, vector<6x8xf32>, vector<6x8xf32> -> vector<6x8xf32>
    %1082 = vector.extract_strided_slice %669 {offsets = [0, 0], sizes = [8, 32], strides = [1, 1]} : vector<32x32xf32> to vector<8x32xf32>
    %cst_405 = arith.constant dense<0.000000e+00> : vector<6x32xf32>
    %1083 = tpu.matmul %1081, %1082, %cst_405 {dimension_numbers = #tpu.dot_dimension_numbers<[1], [0], [0], [1], [0, 0, 1, 1], [], []>} : vector<6x8xf32>, vector<8x32xf32>, vector<6x32xf32> -> vector<6x32xf32>
    %1084 = vector.extract_strided_slice %1063 {offsets = [0, 8], sizes = [6, 8], strides = [1, 1]} : vector<6x32xf32> to vector<6x8xf32>
    %1085 = vector.extract_strided_slice %1064 {offsets = [0, 8], sizes = [6, 8], strides = [1, 1]} : vector<6x32xf32> to vector<6x8xf32>
    %cst_406 = arith.constant dense<0.000000e+00> : vector<6x6xf32>
    %1086 = tpu.matmul %1084, %1085, %cst_406 {dimension_numbers = #tpu.dot_dimension_numbers<[1], [1], [0], [0], [0, 0, 1, 0], [], []>} : vector<6x8xf32>, vector<6x8xf32>, vector<6x6xf32> -> vector<6x6xf32>
    %1087 = arith.addf %1086, %87 : vector<6x6xf32>
    %cst_407 = arith.constant dense<0xFF800000> : vector<6xf32>
    %1088 = vector.multi_reduction <maximumf>, %1087, %cst_407 [1] : vector<6x6xf32> to vector<6xf32>
    %1089 = vector.shape_cast %1088 : vector<6xf32> to vector<6x1xf32>
    %1090 = vector.broadcast %1089 : vector<6x1xf32> to vector<6x6xf32>
    %1091 = arith.subf %1087, %1090 : vector<6x6xf32>
    %1092 = math.exp %1091 : vector<6x6xf32>
    %cst_408 = arith.constant dense<0.000000e+00> : vector<6xf32>
    %1093 = vector.multi_reduction <add>, %1092, %cst_408 [1] : vector<6x6xf32> to vector<6xf32>
    %1094 = vector.shape_cast %1093 : vector<6xf32> to vector<6x1xf32>
    %1095 = tpu.reciprocal %1094 {approx = true} : vector<6x1xf32> -> vector<6x1xf32>
    %1096 = vector.broadcast %1095 : vector<6x1xf32> to vector<6x6xf32>
    %1097 = arith.mulf %1092, %1096 : vector<6x6xf32>
    %1098 = vector.extract_strided_slice %1065 {offsets = [0, 8], sizes = [6, 8], strides = [1, 1]} : vector<6x32xf32> to vector<6x8xf32>
    %cst_409 = arith.constant dense<0.000000e+00> : vector<6x8xf32>
    %1099 = tpu.matmul %1097, %1098, %cst_409 {dimension_numbers = #tpu.dot_dimension_numbers<[1], [0], [0], [1], [0, 0, 1, 1], [], []>} : vector<6x6xf32>, vector<6x8xf32>, vector<6x8xf32> -> vector<6x8xf32>
    %1100 = vector.extract_strided_slice %669 {offsets = [8, 0], sizes = [8, 32], strides = [1, 1]} : vector<32x32xf32> to vector<8x32xf32>
    %cst_410 = arith.constant dense<0.000000e+00> : vector<6x32xf32>
    %1101 = tpu.matmul %1099, %1100, %cst_410 {dimension_numbers = #tpu.dot_dimension_numbers<[1], [0], [0], [1], [0, 0, 1, 1], [], []>} : vector<6x8xf32>, vector<8x32xf32>, vector<6x32xf32> -> vector<6x32xf32>
    %1102 = arith.addf %1083, %1101 : vector<6x32xf32>
    %1103 = vector.extract_strided_slice %1063 {offsets = [0, 16], sizes = [6, 8], strides = [1, 1]} : vector<6x32xf32> to vector<6x8xf32>
    %1104 = vector.extract_strided_slice %1064 {offsets = [0, 16], sizes = [6, 8], strides = [1, 1]} : vector<6x32xf32> to vector<6x8xf32>
    %cst_411 = arith.constant dense<0.000000e+00> : vector<6x6xf32>
    %1105 = tpu.matmul %1103, %1104, %cst_411 {dimension_numbers = #tpu.dot_dimension_numbers<[1], [1], [0], [0], [0, 0, 1, 0], [], []>} : vector<6x8xf32>, vector<6x8xf32>, vector<6x6xf32> -> vector<6x6xf32>
    %1106 = arith.addf %1105, %87 : vector<6x6xf32>
    %cst_412 = arith.constant dense<0xFF800000> : vector<6xf32>
    %1107 = vector.multi_reduction <maximumf>, %1106, %cst_412 [1] : vector<6x6xf32> to vector<6xf32>
    %1108 = vector.shape_cast %1107 : vector<6xf32> to vector<6x1xf32>
    %1109 = vector.broadcast %1108 : vector<6x1xf32> to vector<6x6xf32>
    %1110 = arith.subf %1106, %1109 : vector<6x6xf32>
    %1111 = math.exp %1110 : vector<6x6xf32>
    %cst_413 = arith.constant dense<0.000000e+00> : vector<6xf32>
    %1112 = vector.multi_reduction <add>, %1111, %cst_413 [1] : vector<6x6xf32> to vector<6xf32>
    %1113 = vector.shape_cast %1112 : vector<6xf32> to vector<6x1xf32>
    %1114 = tpu.reciprocal %1113 {approx = true} : vector<6x1xf32> -> vector<6x1xf32>
    %1115 = vector.broadcast %1114 : vector<6x1xf32> to vector<6x6xf32>
    %1116 = arith.mulf %1111, %1115 : vector<6x6xf32>
    %1117 = vector.extract_strided_slice %1065 {offsets = [0, 16], sizes = [6, 8], strides = [1, 1]} : vector<6x32xf32> to vector<6x8xf32>
    %cst_414 = arith.constant dense<0.000000e+00> : vector<6x8xf32>
    %1118 = tpu.matmul %1116, %1117, %cst_414 {dimension_numbers = #tpu.dot_dimension_numbers<[1], [0], [0], [1], [0, 0, 1, 1], [], []>} : vector<6x6xf32>, vector<6x8xf32>, vector<6x8xf32> -> vector<6x8xf32>
    %1119 = vector.extract_strided_slice %669 {offsets = [16, 0], sizes = [8, 32], strides = [1, 1]} : vector<32x32xf32> to vector<8x32xf32>
    %cst_415 = arith.constant dense<0.000000e+00> : vector<6x32xf32>
    %1120 = tpu.matmul %1118, %1119, %cst_415 {dimension_numbers = #tpu.dot_dimension_numbers<[1], [0], [0], [1], [0, 0, 1, 1], [], []>} : vector<6x8xf32>, vector<8x32xf32>, vector<6x32xf32> -> vector<6x32xf32>
    %1121 = arith.addf %1102, %1120 : vector<6x32xf32>
    %1122 = vector.extract_strided_slice %1063 {offsets = [0, 24], sizes = [6, 8], strides = [1, 1]} : vector<6x32xf32> to vector<6x8xf32>
    %1123 = vector.extract_strided_slice %1064 {offsets = [0, 24], sizes = [6, 8], strides = [1, 1]} : vector<6x32xf32> to vector<6x8xf32>
    %cst_416 = arith.constant dense<0.000000e+00> : vector<6x6xf32>
    %1124 = tpu.matmul %1122, %1123, %cst_416 {dimension_numbers = #tpu.dot_dimension_numbers<[1], [1], [0], [0], [0, 0, 1, 0], [], []>} : vector<6x8xf32>, vector<6x8xf32>, vector<6x6xf32> -> vector<6x6xf32>
    %1125 = arith.addf %1124, %87 : vector<6x6xf32>
    %cst_417 = arith.constant dense<0xFF800000> : vector<6xf32>
    %1126 = vector.multi_reduction <maximumf>, %1125, %cst_417 [1] : vector<6x6xf32> to vector<6xf32>
    %1127 = vector.shape_cast %1126 : vector<6xf32> to vector<6x1xf32>
    %1128 = vector.broadcast %1127 : vector<6x1xf32> to vector<6x6xf32>
    %1129 = arith.subf %1125, %1128 : vector<6x6xf32>
    %1130 = math.exp %1129 : vector<6x6xf32>
    %cst_418 = arith.constant dense<0.000000e+00> : vector<6xf32>
    %1131 = vector.multi_reduction <add>, %1130, %cst_418 [1] : vector<6x6xf32> to vector<6xf32>
    %1132 = vector.shape_cast %1131 : vector<6xf32> to vector<6x1xf32>
    %1133 = tpu.reciprocal %1132 {approx = true} : vector<6x1xf32> -> vector<6x1xf32>
    %1134 = vector.broadcast %1133 : vector<6x1xf32> to vector<6x6xf32>
    %1135 = arith.mulf %1130, %1134 : vector<6x6xf32>
    %1136 = vector.extract_strided_slice %1065 {offsets = [0, 24], sizes = [6, 8], strides = [1, 1]} : vector<6x32xf32> to vector<6x8xf32>
    %cst_419 = arith.constant dense<0.000000e+00> : vector<6x8xf32>
    %1137 = tpu.matmul %1135, %1136, %cst_419 {dimension_numbers = #tpu.dot_dimension_numbers<[1], [0], [0], [1], [0, 0, 1, 1], [], []>} : vector<6x6xf32>, vector<6x8xf32>, vector<6x8xf32> -> vector<6x8xf32>
    %1138 = vector.extract_strided_slice %669 {offsets = [24, 0], sizes = [8, 32], strides = [1, 1]} : vector<32x32xf32> to vector<8x32xf32>
    %cst_420 = arith.constant dense<0.000000e+00> : vector<6x32xf32>
    %1139 = tpu.matmul %1137, %1138, %cst_420 {dimension_numbers = #tpu.dot_dimension_numbers<[1], [0], [0], [1], [0, 0, 1, 1], [], []>} : vector<6x8xf32>, vector<8x32xf32>, vector<6x32xf32> -> vector<6x32xf32>
    %1140 = arith.addf %1121, %1139 : vector<6x32xf32>
    %1141 = vector.broadcast %671 : vector<1x32xf32> to vector<6x32xf32>
    %1142 = arith.addf %1140, %1141 : vector<6x32xf32>
    %1143 = arith.addf %1142, %1059 : vector<6x32xf32>
    %cst_421 = arith.constant dense<0.000000e+00> : vector<6xf32>
    %1144 = vector.multi_reduction <add>, %1143, %cst_421 [1] : vector<6x32xf32> to vector<6xf32>
    %1145 = vector.shape_cast %1144 : vector<6xf32> to vector<6x1xf32>
    %cst_422 = arith.constant 3.200000e+01 : f32
    %1146 = vector.broadcast %cst_422 : f32 to vector<6x1xf32>
    %1147 = arith.divf %1145, %1146 : vector<6x1xf32>
    %1148 = vector.broadcast %1147 : vector<6x1xf32> to vector<6x32xf32>
    %1149 = arith.subf %1143, %1148 : vector<6x32xf32>
    %1150 = arith.mulf %1149, %1149 : vector<6x32xf32>
    %cst_423 = arith.constant dense<0.000000e+00> : vector<6xf32>
    %1151 = vector.multi_reduction <add>, %1150, %cst_423 [1] : vector<6x32xf32> to vector<6xf32>
    %1152 = vector.shape_cast %1151 : vector<6xf32> to vector<6x1xf32>
    %cst_424 = arith.constant 3.200000e+01 : f32
    %1153 = vector.broadcast %cst_424 : f32 to vector<6x1xf32>
    %1154 = arith.divf %1152, %1153 : vector<6x1xf32>
    %1155 = vector.broadcast %1147 : vector<6x1xf32> to vector<6x32xf32>
    %1156 = arith.subf %1143, %1155 : vector<6x32xf32>
    %cst_425 = arith.constant 9.99999996E-13 : f32
    %1157 = vector.broadcast %cst_425 : f32 to vector<6x1xf32>
    %1158 = arith.addf %1154, %1157 : vector<6x1xf32>
    %1159 = math.rsqrt %1158 : vector<6x1xf32>
    %1160 = vector.broadcast %1159 : vector<6x1xf32> to vector<6x32xf32>
    %1161 = arith.mulf %1156, %1160 : vector<6x32xf32>
    %1162 = vector.broadcast %673 : vector<1x32xf32> to vector<6x32xf32>
    %1163 = arith.mulf %1161, %1162 : vector<6x32xf32>
    %1164 = vector.broadcast %675 : vector<1x32xf32> to vector<6x32xf32>
    %1165 = arith.addf %1163, %1164 : vector<6x32xf32>
    %cst_426 = arith.constant dense<0.000000e+00> : vector<6x64xf32>
    %1166 = tpu.matmul %1165, %677, %cst_426 {dimension_numbers = #tpu.dot_dimension_numbers<[1], [0], [0], [1], [0, 0, 1, 1], [], []>} : vector<6x32xf32>, vector<32x64xf32>, vector<6x64xf32> -> vector<6x64xf32>
    %1167 = vector.broadcast %679 : vector<1x64xf32> to vector<6x64xf32>
    %1168 = arith.addf %1166, %1167 : vector<6x64xf32>
    %1169 = arith.mulf %1168, %1168 : vector<6x64xf32>
    %1170 = arith.mulf %1168, %1169 : vector<6x64xf32>
    %cst_427 = arith.constant 4.471500e-02 : f32
    %1171 = vector.broadcast %cst_427 : f32 to vector<6x64xf32>
    %1172 = arith.mulf %1171, %1170 : vector<6x64xf32>
    %1173 = arith.addf %1168, %1172 : vector<6x64xf32>
    %cst_428 = arith.constant 0.797884583 : f32
    %1174 = vector.broadcast %cst_428 : f32 to vector<6x64xf32>
    %1175 = arith.mulf %1174, %1173 : vector<6x64xf32>
    %1176 = math.tanh %1175 : vector<6x64xf32>
    %cst_429 = arith.constant 1.000000e+00 : f32
    %1177 = vector.broadcast %cst_429 : f32 to vector<6x64xf32>
    %1178 = arith.addf %1177, %1176 : vector<6x64xf32>
    %cst_430 = arith.constant 5.000000e-01 : f32
    %1179 = vector.broadcast %cst_430 : f32 to vector<6x64xf32>
    %1180 = arith.mulf %1179, %1178 : vector<6x64xf32>
    %1181 = arith.mulf %1168, %1180 : vector<6x64xf32>
    %cst_431 = arith.constant dense<0.000000e+00> : vector<6x32xf32>
    %1182 = tpu.matmul %1181, %681, %cst_431 {dimension_numbers = #tpu.dot_dimension_numbers<[1], [0], [0], [1], [0, 0, 1, 1], [], []>} : vector<6x64xf32>, vector<64x32xf32>, vector<6x32xf32> -> vector<6x32xf32>
    %1183 = vector.broadcast %683 : vector<1x32xf32> to vector<6x32xf32>
    %1184 = arith.addf %1182, %1183 : vector<6x32xf32>
    %1185 = arith.addf %1184, %1165 : vector<6x32xf32>
    %cst_432 = arith.constant dense<0.000000e+00> : vector<6xf32>
    %1186 = vector.multi_reduction <add>, %1185, %cst_432 [1] : vector<6x32xf32> to vector<6xf32>
    %1187 = vector.shape_cast %1186 : vector<6xf32> to vector<6x1xf32>
    %cst_433 = arith.constant 3.200000e+01 : f32
    %1188 = vector.broadcast %cst_433 : f32 to vector<6x1xf32>
    %1189 = arith.divf %1187, %1188 : vector<6x1xf32>
    %1190 = vector.broadcast %1189 : vector<6x1xf32> to vector<6x32xf32>
    %1191 = arith.subf %1185, %1190 : vector<6x32xf32>
    %1192 = arith.mulf %1191, %1191 : vector<6x32xf32>
    %cst_434 = arith.constant dense<0.000000e+00> : vector<6xf32>
    %1193 = vector.multi_reduction <add>, %1192, %cst_434 [1] : vector<6x32xf32> to vector<6xf32>
    %1194 = vector.shape_cast %1193 : vector<6xf32> to vector<6x1xf32>
    %cst_435 = arith.constant 3.200000e+01 : f32
    %1195 = vector.broadcast %cst_435 : f32 to vector<6x1xf32>
    %1196 = arith.divf %1194, %1195 : vector<6x1xf32>
    %1197 = vector.broadcast %1189 : vector<6x1xf32> to vector<6x32xf32>
    %1198 = arith.subf %1185, %1197 : vector<6x32xf32>
    %cst_436 = arith.constant 9.99999996E-13 : f32
    %1199 = vector.broadcast %cst_436 : f32 to vector<6x1xf32>
    %1200 = arith.addf %1196, %1199 : vector<6x1xf32>
    %1201 = math.rsqrt %1200 : vector<6x1xf32>
    %1202 = vector.broadcast %1201 : vector<6x1xf32> to vector<6x32xf32>
    %1203 = arith.mulf %1198, %1202 : vector<6x32xf32>
    %1204 = vector.broadcast %685 : vector<1x32xf32> to vector<6x32xf32>
    %1205 = arith.mulf %1203, %1204 : vector<6x32xf32>
    %1206 = vector.broadcast %687 : vector<1x32xf32> to vector<6x32xf32>
    %1207 = arith.addf %1205, %1206 : vector<6x32xf32>
    %c0_437 = arith.constant 0 : index
    %c0_438 = arith.constant 0 : index
    %c0_439 = arith.constant 0 : index
    %1208 = vector.load %arg31[%c0_437, %c0_438, %c0_439] : memref<2x6x32xf32, #tpu.memory_space<vmem>>, vector<1x6x32xf32>
    %1209 = vector.shape_cast %1208 : vector<1x6x32xf32> to vector<6x32xf32>
    %1210 = vector.shape_cast %947 : vector<6x32xf32> to vector<1x6x32xf32>
    tpu.vector_store %arg31[%c0_437, %c0_438, %c0_439], %1210 {strides = array<i32>} : memref<2x6x32xf32, #tpu.memory_space<vmem>>, vector<1x6x32xf32>,
    %c1_440 = arith.constant 1 : index
    %c0_441 = arith.constant 0 : index
    %c0_442 = arith.constant 0 : index
    %1211 = vector.load %arg31[%c1_440, %c0_441, %c0_442] : memref<2x6x32xf32, #tpu.memory_space<vmem>>, vector<1x6x32xf32>
    %1212 = vector.shape_cast %1211 : vector<1x6x32xf32> to vector<6x32xf32>
    %1213 = vector.shape_cast %1207 : vector<6x32xf32> to vector<1x6x32xf32>
    tpu.vector_store %arg31[%c1_440, %c0_441, %c0_442], %1213 {strides = array<i32>} : memref<2x6x32xf32, #tpu.memory_space<vmem>>, vector<1x6x32xf32>,
    return
  }
}

</mosaic_0001>

<bundles_post_ra>
// kernel: _device_forward.1
= control target key start
LH: loop header
LB: loop body
LE: loop exit
PB: predicated region body
PF: predicated region fallthrough
CT: control target
= control target key end

     0   :  { %v11753_v0 = vmov 0.0   ;;  %s11754_s3 = smov 7   ;;  %vm11755_vm0 = vmmov 0   ;;  %s11756_s7 = smov 3   ;;  %vm149_vm1 = vcmask 1046528   ;;  %vm145_vm2 = vcmask 56320   ;;  %s13445_s0 = inlined_call_operand.smem [shape: u32[32], index: -1, kind: input, shape index: {}] }
   0x1   :  { %10774 = vmatprep.subr.mxu0 %v11753_v0  ;;  %s10155_s6 = sld [smem:[%s13445_s0 + %s11754_s3]]   ;;  %10776 = vmatprep.mubr.msk.f32.mxu0 %vm11755_vm0, %v11753_v0  ;;  %s11757_s14 = smov 1   ;;  %vm257_vm3 = vcmask 1041408   ;;  %vm253_vm4 = vcmask 146432   ;;  %vm223_vm5 = vcmask 259072   ;;  %vm567_vm6 = vcmask 261120  }
   0x2   :  { %s11811_s10 = sld [smem:[%s13445_s0 + %s11756_s7]]   ;;  %10802 = vmatprep.subr.mxu1 %v11753_v0  ;;  %10810 = vmatprep.mubr.msk.f32.mxu1 %vm11755_vm0, %v11753_v0  ;;  %s11758_s18 = smov 8   ;;  %vm726_vm7 = vcmask 64512   ;;  %vm803_vm8 = vcmask 46080   ;;  %vm821_vm9 = vcmask 1045504   ;;  %vm817_vm10 = vcmask 48128  }
   0x3   :  { %s11825_s13 = sld [smem:[%s13445_s0]]   ;;  %s11759_s22 = smov 13   ;;  %vm2886_vm11 = vcmask 523264  }
   0x4   :  { %s11830_s17 = sld [smem:[%s13445_s0 + %s11757_s14]]   ;;  %s11760_s26 = smov 11  }
   0x5   :  { %s10156_s21 = sld [smem:[%s13445_s0 + %s11758_s18]]   ;;  %s11761_s30 = smov 4  }
   0x6   :  { %s11864_s25 = sld [smem:[%s13445_s0 + %s11759_s22]]   ;;  %s11762_s4 = smov 2  }
   0x7   :  { %v130_v1 = vld [vmem:[%s10155_s6] sm:$0x7f]  ;;  %s11880_s29 = sld [smem:[%s13445_s0 + %s11760_s26]]   ;;  %s11763_s8 = smov 9  }
   0x8   :  { %10775 = vmatpush3.msk.msra.mxu0 %vm149_vm1, %v130_v1  ;;  %v138_v2 = vld [vmem:[%s11811_s10] sm:$0x3f]  ;;  %v10191_v17 = vld [vmem:[%s11811_s10 + $0x8] sm:$0x3f]  ;;  %s11889_s3 = sld [smem:[%s13445_s0 + %s11761_s30]]   ;;  %s11764_s12 = smov 10  }
   0x9   :  { %10777 = vmatmul.mubr.msk.f32.vlgmr.msra.gmra.mxu0 %vm145_vm2, %v138_v2  ;;  %10779 = vmatprep.subr.mxu0 %v11753_v0  ;;  %v137_v3 = vld [vmem:[%s11825_s13 + $0x10] sm:$0x3]  ;;  %v136_v4 = vld [vmem:[%s11825_s13 + $0x8] sm:$0xff]  ;;  %v135_v5 = vld [vmem:[%s11825_s13] sm:$0xff]  ;;  %s10150_s7 = sld [smem:[%s13445_s0 + %s11762_s4]]   ;;  %s11765_s16 = smov 14  }
   0xa   :  { %10785 = vmatprep.mubr.msk.f32.mxu0 %vm11755_vm0, %v11753_v0  ;;  %10780 = vmatpush3.msk.msra.mxu0 %vm257_vm3, %v137_v3  ;;  %v134_v6 = vld [vmem:[%s11830_s17] sm:$0x3f]  ;;  %v10190_v18 = vld [vmem:[%s11825_s13 + $0x28] sm:$0x3]  ;;  %v10188_v20 = vld [vmem:[%s11825_s13 + $0x18] sm:$0xff]  ;;  %s10157_s11 = sld [smem:[%s13445_s0 + %s11763_s8]]   ;;  %s13466_s20 = smov 120  }
   0xb   :  { %10781 = vmatprep.subr.mxu0 %v11753_v0  ;;  %v11848_v7 = vld [vmem:[%s10156_s21] ss:$0 sm:$0xff]  ;;  %v10187_v21 = vld [vmem:[%s11830_s17 + $0x8] sm:$0x3f]  ;;  %s10158_s15 = sld [smem:[%s13445_s0 + %s11764_s12]]   ;;  %s11767_s21 = smov 12  }
   0xc   :  { %10782 = vmatpush3.msra.mxu0 %v136_v4  ;;  %v10189_v19 = vld [vmem:[%s11825_s13 + $0x20] sm:$0xff]  ;;  %v524_v22 = vld [vmem:[%s11864_s25 + $0x18] sm:$0xff]  ;;  %v523_v23 = vld [vmem:[%s11864_s25 + $0x10] sm:$0xff]  ;;  %s11946_s19 = sld [smem:[%s13445_s0 + %s11765_s16]]   ;;  %s11768_s26 = smov 5  }
   0xd   :  { %10783 = vmatprep.subr.mxu0 %v11753_v0  ;;  %v522_v24 = vld [vmem:[%s11864_s25 + $0x8] sm:$0xff]  ;;  %v11894_v25 = vld [vmem:[%s11880_s29 + $0x18] sm:$0xff]  ;;  %v521_v26 = vld [vmem:[%s11864_s25] sm:$0xff]  ;;  %s11963_s24 = sld [smem:[%s13445_s0 + %s11767_s21]]   ;;  %s13460_s1 = smov 96  }
   0xe   :  { %10784 = vmatpush3.msra.mxu0 %v135_v5  ;;  %10803 = vmatpush3.msra.mxu1 %v11894_v25  ;;  %v332_v28 = vld [vmem:[%s11889_s3] sm:$0x3f]  ;;  %v11902_v29 = vld [vmem:[%s11880_s29 + $0x10] sm:$0xff]  ;;  %v11908_v31 = vld [vmem:[%s11880_s29 + $0x8] sm:$0xff]  ;;  %s11983_s30 = sld [smem:[%s13445_s0 + %s11768_s26]]   ;;  %s13462_s2 = smov 112  }
   0xf   :  { %10786 = vmatmul.mubr.msk.f32.vlgmr.msra.gmra.mxu0 %vm253_vm4, %v134_v6  ;;  %10788 = vmatprep.subr.mxu0 %v11753_v0  ;;  %v11915_v32 = vld [vmem:[%s11880_s29] sm:$0xff]  ;;  %v10194_v47 = vld [vmem:[%s10150_s7 + $0x8] sm:$0x3f]  ;;  %s13464_s4 = smov 88   ;;  %s11772_s5 = smov 15  }
  0x10   :  { %10789 = vmatpush3.msk.msra.mxu0 %vm149_vm1, %v130_v1  ;;  %10790 = vmatprep.mubr.msk.f32.mxu0 %vm11755_vm0, %v11753_v0  ;;  %v11928_v37 = vld [vmem:[%s10157_s11] ss:$0 sm:$0xff]  ;;  %s12010_s8 = sld [smem:[%s13445_s0 + %s11772_s5]]   ;;  %s13458_s9 = smov 80  }
  0x11   :  { %10793 = vmatprep.subr.mxu0 %v11753_v0  ;;  %10804 = vmatprep.subr.mxu1 %v11753_v0  ;;  %v252_v38 = vld [vmem:[%s10150_s7] sm:$0x3f]  ;;  %s13456_s10 = smov 104   ;;  %s13454_s11 = smov 72  }
  0x12   :  { %10805 = vmatpush3.msra.mxu1 %v11902_v29  ;;  %v11931_v40 = vld [vmem:[%s10158_s15] ss:$0 sm:$0xff]  ;;  %s11776_s12 = smov 16   ;;  %s11777_s16 = smov 19  }
  0x13   :  { %10791 = vmatmul.mubr.msk.f32.vlgmr.msra.gmra.mxu0 %vm145_vm2, %v10191_v17  ;;  %10806 = vmatprep.subr.mxu1 %v11753_v0  ;;  %v10202_v51 = vld [vmem:[%s11946_s19] ss:$0 sm:$0xff]  ;;  %s12086_s15 = sld [smem:[%s13445_s0 + %s11776_s12]]   ;;  %s11778_s22 = smov 17  }
  0x14   :  { %10794 = vmatpush3.msk.msra.mxu0 %vm257_vm3, %v10190_v18  ;;  %10799 = vmatprep.mubr.msk.f32.mxu0 %vm11755_vm0, %v11753_v0  ;;  %v11966_v56 = vld [vmem:[%s11963_s24] ss:$0 sm:$0xff]  ;;  %s12098_s21 = sld [smem:[%s13445_s0 + %s11777_s16]]   ;;  %s11779_s28 = smov 18  }
  0x15   :  { %10795 = vmatprep.subr.mxu0 %v11753_v0  ;;  %10807 = vmatpush3.msra.mxu1 %v11908_v31  ;;  %v11986_v61 = vld [vmem:[%s11983_s30] ss:$0 sm:$0xff]  ;;  %s12123_s27 = sld [smem:[%s13445_s0 + %s11778_s22]]   ;;  %s11780_s12 = smov 20  }
  0x16   :  { %10796 = vmatpush3.msra.mxu0 %v10189_v19  ;;  %10808 = vmatprep.subr.mxu1 %v11753_v0  ;;  %s12128_s7 = sld [smem:[%s13445_s0 + %s11779_s28]]   ;;  %s11781_s17 = smov 6  }
  0x17   :  { %10797 = vmatprep.subr.mxu0 %v11753_v0  ;;  %10809 = vmatpush3.msra.mxu1 %v11915_v32  ;;  %s12147_s16 = sld [smem:[%s13445_s0 + %s11780_s12]]   ;;  %s13452_s26 = smov 56  }
  0x18   :  { %10798 = vmatpush3.msra.mxu0 %v10188_v20  ;;  %10824 = vmatprep.subr.mxu1 %v11753_v0  ;;  %s12175_s23 = sld [smem:[%s13445_s0 + %s11781_s17]]   ;;  %s13450_s28 = smov 64  }
  0x19   :  { %10813 = vmatprep.subr.mxu0 %v11753_v0  ;;  %10800 = vmatmul.mubr.msk.f32.vlgmr.msra.gmra.mxu0 %vm253_vm4, %v10187_v21  ;;  %s11784_s5 = smov 21   ;;  %s13448_s14 = smov 48  }
  0x1a   :  { %10814 = vmatpush3.msra.mxu0 %v524_v22  ;;  %10821 = vmatprep.mubr.msk.f32.mxu0 %vm11755_vm0, %v11753_v0  ;;  %v12013_v22 = vld [vmem:[%s12010_s8 + $0x8] sm:$0xff]  ;;  %s12207_s13 = sld [smem:[%s13445_s0 + %s11784_s5]]   ;;  %s13446_s17 = smov 40  }
  0x1b   :  { %10815 = vmatprep.subr.mxu0 %v11753_v0  ;;  %s11787_s18 = smov 22   ;;  %s11788_s12 = smov 25  }
  0x1c   :  { %10816 = vmatpush3.msra.mxu0 %v523_v23  ;;  %s12278_s6 = sld [smem:[%s13445_s0 + %s11787_s18]]   ;;  %s11792_s18 = smov 26  }
  0x1d   :  { %10817 = vmatprep.subr.mxu0 %v11753_v0  ;;  %s12294_s5 = sld [smem:[%s13445_s0 + %s11788_s12]]   ;;  %s11789_s12 = smov 23  }
  0x1e   :  { %10818 = vmatpush3.msra.mxu0 %v522_v24  ;;  %s13478_s22 = smov 64  }
  0x1f   :  { %10819 = vmatprep.subr.mxu0 %v11753_v0 }
  0x20   :  { %10820 = vmatpush3.msra.mxu0 %v521_v26 }
  0x21   :  { %10822 = vmatmul.mubr.msk.f32.vlgmr.msra.gmra.mxu0 %vm567_vm6, %v332_v28  ;;  %10834 = vmatprep.subr.mxu0 %v11753_v0  ;;  %v12020_v28 = vld [vmem:[%s12010_s8] sm:$0xff] }
  0x22   :  { %10836 = vmatprep.mubr.msk.f32.mxu0 %vm11755_vm0, %v11753_v0 }
  0xc9   :  { %v219_v8 = vpop.f32.mrf.mxu0 }
  0xca   :  { %v220_v9 = vadd.f32 %v11848_v7, %v219_v8 }
  0xcb   :  { %v10778_v10 = vpop.f32.mrf.mxu0 }
  0xcc   :  { %v224_v11 = vsel %vm223_vm5, %v220_v9, 0.0 }
  0xcd   :  { %225 = vadd.xlane.f32.xlu0 %v224_v11 }
  0xcf   :  { %v327_v27 = vpop.f32.mrf.mxu0 }
  0xd0   :  { %v328_v42 = vadd.f32 %v327_v27, %v252_v38 }
  0xd1   :  { %v10787_v30 = vpop.f32.mrf.mxu0 }
  0xd3   :  { %v11941_v45 = vpop.f32.mrf.mxu0 }
  0xd5   :  { %v10792_v46 = vpop.f32.mrf.mxu0 }
  0xd9   :  { %v505_v48 = vpop.f32.mrf.mxu0 }
  0xda   :  { %v11948_v49 = vadd.f32 %v10194_v47, %v505_v48 }
  0xdb   :  { %v10801_v50 = vpop.f32.mrf.mxu0 }
  0xe1   :  { %v716_v52 = vpop.f32.mrf.mxu0 }
  0xe2   :  { %v11951_v53 = vadd.f32 %v10202_v51, %v716_v52 }
  0xe3   :  { %v10823_v54 = vpop.f32.mrf.mxu0 }
  0xe4   :  { %896 = vrot.lane.b32.xlu1 %v11951_v53, %s13466_s20 }
 0x156   :  { %v226_v12 = vpop.xlane.xlu0 %225  ;;  %v897_v55 = vpop.permute.xlu1 %896 }
 0x157   :  { %v228_v13 = vmul.f32 0.03125, %v226_v12  ;;  %10835 = vmatpush3.xpose.msk.msra.mxu0 %vm726_vm7, %v897_v55 }
 0x158   :  { %10844 = vmatprep.subr.mxu0 %v11753_v0 }
 0x159   :  { %v11852_v14 = vsub.f32 %v220_v9, %v228_v13 }
 0x15b   :  { %v230_v15 = vmul.f32 %v11852_v14, %v11852_v14 }
 0x15d   :  { %v231_v16 = vsel %vm223_vm5, %v230_v15, 0.0 }
 0x15e   :  { %232 = vadd.xlane.f32.xlu0 %v231_v16 }
 0x1e7   :  { %v233_v33 = vpop.xlane.xlu0 %232 }
 0x1e8   :  { %v234_v34 = vmul.f32 0.03125, %v233_v33 }
 0x1ea   :  { %v235_v35 = vadd.f32 1e-12, %v234_v34 }
 0x1ec   :  { %11578 = vrsqrt.f32 %v235_v35 }
 0x1f9   :  { %v11579_v36 = vpop.eup %11578 }
 0x1fa   :  { %v237_v39 = vmul.f32 %v11579_v36, %v11852_v14 }
 0x1fc   :  { %v244_v41 = vmul.f32 %v11928_v37, %v237_v39 }
 0x1fe   :  { %v251_v43 = vadd.f32 %v11931_v40, %v244_v41 }
 0x200   :  { %v11935_v44 = vadd.f32 %v328_v42, %v251_v43 }
 0x202   :  { %10811 = vmatmul.mubr.msk.f32.vlgmr.msra.gmra.mxu1 %vm567_vm6, %v11935_v44 }
 0x203   :  { %10826 = vmatprep.mubr.msk.f32.mxu1 %vm11755_vm0, %v11753_v0  ;;  %10825 = vmatpush3.xpose.msk.msra.mxu1 %vm726_vm7, %v11951_v53 }
 0x204   :  { %10829 = vmatprep.subr.mxu1 %v11753_v0 }
 0x2c2   :  { %v637_v57 = vpop.f32.mrf.mxu1 }
 0x2c3   :  { %v11969_v58 = vadd.f32 %v11966_v56, %v637_v57 }
 0x2c4   :  { %v10812_v59 = vpop.f32.mrf.mxu1 }
 0x2c5   :  { %894 = vrot.lane.b32.xlu1 %v11969_v58, %s13466_s20  ;;  %10827 = vmatmul.mubr.msk.f32.vlgmr.msra.gmra.mxu1 %vm726_vm7, %v11969_v58 }
 0x2c6   :  { %10831 = vmatprep.mubr.msk.f32.mxu1 %vm11755_vm0, %v11753_v0 }
 0x337   :  { %v895_v60 = vpop.permute.xlu1 %894 }
 0x338   :  { %10837 = vmatmul.mubr.msk.f32.vlgmr.msra.gmra.mxu0 %vm726_vm7, %v895_v60 }
 0x339   :  { %10846 = vmatprep.mubr.msk.f32.mxu0 %vm11755_vm0, %v11753_v0  ;;  %10845 = vmatpush3.msra.mxu0 %v12013_v22 }
 0x33a   :  { %10854 = vmatprep.subr.mxu0 %v11753_v0 }
 0x385   :  { %v799_v62 = vpop.f32.mrf.mxu1 }
 0x386   :  { %v800_v63 = vadd.f32 %v11986_v61, %v799_v62 }
 0x387   :  { %v10828_v1 = vpop.f32.mrf.mxu1 }
 0x388   :  { %v804_v2 = vsel %vm803_vm8, %v800_v63, -inf }
 0x389   :  { %805 = vmax.xlane.f32.xlu0 %v804_v2  ;;  %v12058_v2 = vld [vmem:[%s12010_s8 + $0x10] sm:$0xff] }
 0x39f   :  { %815 = vrot.lane.b32.xlu0 %v11951_v53, %s13460_s1 }
 0x3f8   :  { %v968_v3 = vpop.f32.mrf.mxu0 }
 0x3f9   :  { %v969_v4 = vadd.f32 %v11986_v61, %v968_v3 }
 0x3fa   :  { %v10838_v5 = vpop.f32.mrf.mxu0 }
 0x3fb   :  { %v972_v6 = vsel %vm803_vm8, %v969_v4, -inf }
 0x3fc   :  { %973 = vmax.xlane.f32.xlu1 %v972_v6 }
 0x40d   :  { %1208 = vrot.lane.b32.xlu1 %v11951_v53, %s13462_s2 }
 0x412   :  { %v806_v8 = vpop.xlane.xlu0 %805 }
 0x413   :  { %v807_v9 = vsub.f32 %v800_v63, %v806_v8 }
 0x415   :  { %v808_v10 = vmul.f32 1.442695, %v807_v9 }
 0x416   :  { %v816_v11 = vpop.permute.xlu0 %815 }
 0x417   :  { %11580 = vpow2.f32 %v808_v10  ;;  %10830 = vmatpush3.msk.msra.mxu1 %vm821_vm9, %v816_v11 }
 0x418   :  { %10839 = vmatprep.subr.mxu1 %v11753_v0 }
 0x424   :  { %v11581_v12 = vpop.eup %11580 }
 0x425   :  { %v810_v13 = vsel %vm803_vm8, %v11581_v12, 0.0 }
 0x426   :  { %811 = vadd.xlane.f32.xlu0 %v810_v13 }
 0x485   :  { %v974_v14 = vpop.xlane.xlu1 %973 }
 0x486   :  { %v975_v15 = vsub.f32 %v969_v4, %v974_v14 }
 0x488   :  { %v976_v16 = vmul.f32 1.442695, %v975_v15  ;;  %v12073_v15 = vld [vmem:[%s12010_s8 + $0x18] sm:$0xff] }
 0x489   :  { %v1209_v35 = vpop.permute.xlu1 %1208 }
 0x48a   :  { %11582 = vpow2.f32 %v976_v16 }
 0x497   :  { %v11583_v17 = vpop.eup %11582 }
 0x498   :  { %v978_v18 = vsel %vm803_vm8, %v11583_v17, 0.0 }
 0x499   :  { %979 = vadd.xlane.f32.xlu0 %v978_v18 }
 0x4af   :  { %v812_v19 = vpop.xlane.xlu0 %811  ;;  %983 = vrot.lane.b32.xlu0 %v11951_v53, %s13464_s4 }
 0x4b0   :  { %11584 = vrcp.f32 %v812_v19 }
 0x4b3   :  { %1206 = vrot.lane.b32.xlu0 %v11969_v58, %s13462_s2 }
 0x4bd   :  { %v11585_v20 = vpop.eup %11584 }
 0x4be   :  { %v814_v21 = vmul.f32 %v11585_v20, %v11581_v12 }
 0x4c0   :  { %10832 = vmatmul.mubr.msk.f32.vlgmr.msra.gmra.mxu1 %vm817_vm10, %v814_v21 }
 0x4c1   :  { %10841 = vmatprep.mubr.msk.f32.mxu1 %vm11755_vm0, %v11753_v0 }
 0x522   :  { %v980_v23 = vpop.xlane.xlu0 %979 }
 0x523   :  { %11586 = vrcp.f32 %v980_v23 }
 0x526   :  { %v984_v24 = vpop.permute.xlu0 %983 }
 0x527   :  { %10840 = vmatpush3.msk.msra.mxu1 %vm821_vm9, %v984_v24 }
 0x528   :  { %10849 = vmatprep.subr.mxu1 %v11753_v0 }
 0x52a   :  { %v1207_v38 = vpop.permute.xlu0 %1206 }
 0x530   :  { %v11587_v26 = vpop.eup %11586 }
 0x531   :  { %v982_v27 = vmul.f32 %v11587_v26, %v11583_v17  ;;  %v12089_v26 = vld [vmem:[%s12086_s15] ss:$0 sm:$0xff] }
 0x533   :  { %10842 = vmatmul.mubr.msk.f32.vlgmr.msra.gmra.mxu1 %vm817_vm10, %v982_v27 }
 0x534   :  { %10850 = vmatpush3.msra.mxu1 %v12020_v28  ;;  %10851 = vmatprep.mubr.msk.f32.mxu1 %vm11755_vm0, %v11753_v0 }
 0x535   :  { %10859 = vmatprep.subr.mxu1 %v11753_v0 }
 0x580   :  { %v890_v30 = vpop.f32.mrf.mxu1 }
 0x581   :  { %10852 = vmatmul.mubr.msk.f32.vlgmr.msra.gmra.mxu1 %vm726_vm7, %v890_v30 }
 0x582   :  { %v10833_v33 = vpop.f32.mrf.mxu1  ;;  %10861 = vmatprep.mubr.msk.f32.mxu1 %vm11755_vm0, %v11753_v0 }
 0x5f3   :  { %v1056_v34 = vpop.f32.mrf.mxu1 }
 0x5f4   :  { %10847 = vmatmul.mubr.msk.f32.vlgmr.msra.gmra.mxu0 %vm726_vm7, %v1056_v34 }
 0x5f5   :  { %10855 = vmatpush3.xpose.msk.msra.mxu0 %vm726_vm7, %v1209_v35  ;;  %v10843_v36 = vpop.f32.mrf.mxu1  ;;  %10856 = vmatprep.mubr.msk.f32.mxu0 %vm11755_vm0, %v11753_v0 }
 0x5f6   :  { %10864 = vmatprep.subr.mxu0 %v11753_v0 }
 0x5f8   :  { %10857 = vmatmul.mubr.msk.f32.vlgmr.msra.gmra.mxu0 %vm726_vm7, %v1207_v38 }
 0x5f9   :  { %10866 = vmatprep.mubr.msk.f32.mxu0 %vm11755_vm0, %v11753_v0  ;;  %10865 = vmatpush3.msra.mxu0 %v12058_v2 }
 0x5fa   :  { %10874 = vmatprep.subr.mxu0 %v11753_v0 }
 0x641   :  { %v1202_v39 = vpop.f32.mrf.mxu1 }
 0x643   :  { %v10853_v41 = vpop.f32.mrf.mxu1 }
 0x6b4   :  { %v1129_v42 = vpop.f32.mrf.mxu0 }
 0x6b5   :  { %v1203_v16 = vadd.f32 %v1202_v39, %v1129_v42 }
 0x6b6   :  { %v10848_v43 = vpop.f32.mrf.mxu0 }
 0x6b8   :  { %v1280_v46 = vpop.f32.mrf.mxu0 }
 0x6b9   :  { %v1281_v47 = vadd.f32 %v11986_v61, %v1280_v46  ;;  %v12104_v46 = vld [vmem:[%s12098_s21 + $0x10] sm:$0xff] }
 0x6ba   :  { %v10858_v48 = vpop.f32.mrf.mxu0 }
 0x6bb   :  { %v1284_v50 = vsel %vm803_vm8, %v1281_v47, -inf  ;;  %v12114_v48 = vld [vmem:[%s12098_s21] sm:$0xff] }
 0x6bc   :  { %1285 = vmax.xlane.f32.xlu0 %v1284_v50 }
 0x6d2   :  { %1295 = vrot.lane.b32.xlu0 %v11951_v53, %s13458_s9 }
 0x6d6   :  { %1446 = vrot.lane.b32.xlu0 %v11969_v58, %s13456_s10 }
 0x745   :  { %v1286_v51 = vpop.xlane.xlu0 %1285 }
 0x746   :  { %v1287_v52 = vsub.f32 %v1281_v47, %v1286_v51  ;;  %v12109_v47 = vld [vmem:[%s12098_s21 + $0x8] sm:$0xff] }
 0x748   :  { %v1288_v54 = vmul.f32 1.442695, %v1287_v52 }
 0x749   :  { %v1296_v55 = vpop.permute.xlu0 %1295 }
 0x74a   :  { %11588 = vpow2.f32 %v1288_v54  ;;  %10860 = vmatpush3.msk.msra.mxu1 %vm821_vm9, %v1296_v55  ;;  %v12131_v55 = vld [vmem:[%s12123_s27] ss:$0 sm:$0xff] }
 0x74b   :  { %10869 = vmatprep.subr.mxu1 %v11753_v0 }
 0x74d   :  { %v1447_v1 = vpop.permute.xlu0 %1446 }
 0x757   :  { %v11589_v57 = vpop.eup %11588 }
 0x758   :  { %v1290_v59 = vsel %vm803_vm8, %v11589_v57, 0.0 }
 0x759   :  { %1291 = vadd.xlane.f32.xlu1 %v1290_v59  ;;  %v12134_v59 = vld [vmem:[%s12128_s7] ss:$0 sm:$0xff] }
 0x76a   :  { %1448 = vrot.lane.b32.xlu1 %v11951_v53, %s13456_s10 }
 0x7e2   :  { %v1292_v60 = vpop.xlane.xlu1 %1291 }
 0x7e3   :  { %11590 = vrcp.f32 %v1292_v60 }
 0x7e6   :  { %v1449_v63 = vpop.permute.xlu1 %1448 }
 0x7f0   :  { %v11591_v58 = vpop.eup %11590 }
 0x7f1   :  { %v1294_v62 = vmul.f32 %v11591_v58, %v11589_v57 }
 0x7f3   :  { %10862 = vmatmul.mubr.msk.f32.vlgmr.msra.gmra.mxu1 %vm817_vm10, %v1294_v62  ;;  %v12150_v62 = vld [vmem:[%s12147_s16] ss:$0 sm:$0xff] }
 0x7f4   :  { %10870 = vmatpush3.xpose.msk.msra.mxu1 %vm726_vm7, %v1449_v63  ;;  %10871 = vmatprep.mubr.msk.f32.mxu1 %vm11755_vm0, %v11753_v0 }
 0x7f5   :  { %10879 = vmatprep.subr.mxu1 %v11753_v0 }
 0x7f7   :  { %10872 = vmatmul.mubr.msk.f32.vlgmr.msra.gmra.mxu1 %vm726_vm7, %v1447_v1 }
 0x7f8   :  { %10881 = vmatprep.mubr.msk.f32.mxu1 %vm11755_vm0, %v11753_v0  ;;  %10880 = vmatpush3.msra.mxu1 %v12073_v15 }
 0x7f9   :  { %10895 = vmatprep.subr.mxu1 %v11753_v0 }
 0x8b3   :  { %v1368_v3 = vpop.f32.mrf.mxu1 }
 0x8b4   :  { %10867 = vmatmul.mubr.msk.f32.vlgmr.msra.gmra.mxu0 %vm726_vm7, %v1368_v3 }
 0x8b5   :  { %v10863_v4 = vpop.f32.mrf.mxu1  ;;  %10876 = vmatprep.mubr.msk.f32.mxu0 %vm11755_vm0, %v11753_v0 }
 0x8b7   :  { %v1520_v5 = vpop.f32.mrf.mxu1 }
 0x8b8   :  { %v1521_v6 = vadd.f32 %v11986_v61, %v1520_v5 }
 0x8b9   :  { %v10873_v8 = vpop.f32.mrf.mxu1 }
 0x8ba   :  { %v1524_v9 = vsel %vm803_vm8, %v1521_v6, -inf  ;;  %v12178_v8 = vld [vmem:[%s12175_s23] sm:$0x3f] }
 0x8bb   :  { %1525 = vmax.xlane.f32.xlu0 %v1524_v9 }
 0x8d1   :  { %1535 = vrot.lane.b32.xlu0 %v11951_v53, %s13454_s11 }
 0x944   :  { %v1526_v10 = vpop.xlane.xlu0 %1525 }
 0x945   :  { %v1527_v11 = vsub.f32 %v1521_v6, %v1526_v10 }
 0x947   :  { %v1528_v12 = vmul.f32 1.442695, %v1527_v11 }
 0x948   :  { %v1536_v13 = vpop.permute.xlu0 %1535 }
 0x949   :  { %11592 = vpow2.f32 %v1528_v12  ;;  %10875 = vmatpush3.msk.msra.mxu0 %vm821_vm9, %v1536_v13 }
 0x94a   :  { %10884 = vmatprep.subr.mxu0 %v11753_v0 }
 0x956   :  { %v11593_v14 = vpop.eup %11592 }
 0x957   :  { %v1530_v61 = vsel %vm803_vm8, %v11593_v14, 0.0 }
 0x958   :  { %1531 = vadd.xlane.f32.xlu1 %v1530_v61 }
 0x974   :  { %v1441_v17 = vpop.f32.mrf.mxu0 }
 0x975   :  { %v1445_v53 = vadd.f32 %v1441_v17, %v1203_v16 }
 0x976   :  { %v10868_v18 = vpop.f32.mrf.mxu0 }
 0x9e1   :  { %v1532_v19 = vpop.xlane.xlu1 %1531 }
 0x9e2   :  { %11594 = vrcp.f32 %v1532_v19 }
 0x9ef   :  { %v11595_v20 = vpop.eup %11594 }
 0x9f0   :  { %v1534_v21 = vmul.f32 %v11595_v20, %v11593_v14 }
 0x9f2   :  { %10877 = vmatmul.mubr.msk.f32.vlgmr.msra.gmra.mxu0 %vm817_vm10, %v1534_v21 }
 0x9f3   :  { %10892 = vmatprep.mubr.msk.f32.mxu0 %vm11755_vm0, %v11753_v0 }
 0xab2   :  { %v1608_v23 = vpop.f32.mrf.mxu0 }
 0xab3   :  { %10882 = vmatmul.mubr.msk.f32.vlgmr.msra.gmra.mxu1 %vm726_vm7, %v1608_v23 }
 0xab4   :  { %v10878_v24 = vpop.f32.mrf.mxu0  ;;  %10897 = vmatprep.mubr.msk.f32.mxu1 %vm11755_vm0, %v11753_v0 }
 0xb73   :  { %v1681_v27 = vpop.f32.mrf.mxu1 }
 0xb74   :  { %v1685_v30 = vadd.f32 %v1681_v27, %v1445_v53 }
 0xb75   :  { %v10883_v33 = vpop.f32.mrf.mxu1 }
 0xb76   :  { %v1692_v34 = vadd.f32 %v12089_v26, %v1685_v30 }
 0xb78   :  { %v1693_v35 = vadd.f32 %v1692_v34, %v11935_v44  ;;  %v12101_v44 = vld [vmem:[%s12098_s21 + $0x18] sm:$0xff] }
 0xb79   :  { %10885 = vmatpush3.msra.mxu0 %v12101_v44 }
 0xb7a   :  { %v1694_v36 = vsel %vm223_vm5, %v1693_v35, 0.0  ;;  %10886 = vmatprep.subr.mxu0 %v11753_v0 }
 0xb7b   :  { %1695 = vadd.xlane.f32.xlu1 %v1694_v36  ;;  %10887 = vmatpush3.msra.mxu0 %v12104_v46 }
 0xb7c   :  { %10888 = vmatprep.subr.mxu0 %v11753_v0 }
 0xb7d   :  { %10889 = vmatpush3.msra.mxu0 %v12109_v47 }
 0xb7e   :  { %10890 = vmatprep.subr.mxu0 %v11753_v0 }
 0xb7f   :  { %10891 = vmatpush3.msra.mxu0 %v12114_v48 }
 0xb80   :  { %10905 = vmatprep.subr.mxu0 %v11753_v0 }
 0xc04   :  { %v1696_v38 = vpop.xlane.xlu1 %1695 }
 0xc05   :  { %v1697_v39 = vmul.f32 0.03125, %v1696_v38 }
 0xc07   :  { %v1698_v41 = vsub.f32 %v1693_v35, %v1697_v39 }
 0xc09   :  { %v1699_v42 = vmul.f32 %v1698_v41, %v1698_v41 }
 0xc0b   :  { %v1700_v43 = vsel %vm223_vm5, %v1699_v42, 0.0 }
 0xc0c   :  { %1701 = vadd.xlane.f32.xlu1 %v1700_v43  ;;  %v12210_v43 = vld [vmem:[%s12207_s13] sm:$0xff] }
 0xc95   :  { %v1702_v50 = vpop.xlane.xlu1 %1701 }
 0xc96   :  { %v1703_v51 = vmul.f32 0.03125, %v1702_v50  ;;  %v12214_v50 = vld [vmem:[%s12207_s13 + $0x8] sm:$0xff] }
 0xc98   :  { %v1704_v52 = vadd.f32 1e-12, %v1703_v51 }
 0xc9a   :  { %11596 = vrsqrt.f32 %v1704_v52 }
 0xca7   :  { %v11597_v54 = vpop.eup %11596 }
 0xca8   :  { %v1706_v57 = vmul.f32 %v11597_v54, %v1698_v41 }
 0xcaa   :  { %v1713_v60 = vmul.f32 %v12131_v55, %v1706_v57 }
 0xcac   :  { %v12138_v58 = vadd.f32 %v12134_v59, %v1713_v60 }
 0xcae   :  { %10893 = vmatmul.mubr.msk.f32.vlgmr.msra.gmra.mxu0 %vm567_vm6, %v12138_v58 }
 0xcaf   :  { %10907 = vmatprep.mubr.msk.f32.mxu0 %vm11755_vm0, %v11753_v0 }
 0xd6e   :  { %v1796_v63 = vpop.f32.mrf.mxu0 }
 0xd6f   :  { %v12153_v1 = vadd.f32 %v12150_v62, %v1796_v63 }
 0xd70   :  { %v10894_v3 = vpop.f32.mrf.mxu0 }
 0xd71   :  { %1967 = vrot.lane.b32.xlu0 %v12153_v1, %s13464_s4  ;;  %1801 = vrot.lane.b32.xlu1 %v12153_v1, %s13460_s1 }
 0xd75   :  { %1965 = vrot.lane.b32.xlu0 %v12153_v1, %s13466_s20 }
 0xde3   :  { %v1968_v4 = vpop.permute.xlu0 %1967  ;;  %v1802_v5 = vpop.permute.xlu1 %1801 }
 0xde4   :  { %10896 = vmatpush3.xpose.msk.msra.mxu1 %vm726_vm7, %v1802_v5  ;;  %10906 = vmatpush3.xpose.msk.msra.mxu0 %vm726_vm7, %v1968_v4 }
 0xde5   :  { %10900 = vmatprep.subr.mxu1 %v11753_v0  ;;  %10915 = vmatprep.subr.mxu0 %v11753_v0 }
 0xde7   :  { %v1966_v6 = vpop.permute.xlu0 %1965  ;;  %10898 = vmatmul.mubr.msk.f32.vlgmr.msra.gmra.mxu1 %vm726_vm7, %v12153_v1 }
 0xde8   :  { %10908 = vmatmul.mubr.msk.f32.vlgmr.msra.gmra.mxu0 %vm726_vm7, %v1966_v6  ;;  %10902 = vmatprep.mubr.msk.f32.mxu1 %vm11755_vm0, %v11753_v0 }
 0xde9   :  { %10917 = vmatprep.mubr.msk.f32.mxu0 %vm11755_vm0, %v11753_v0  ;;  %10916 = vmatpush3.msra.mxu0 %v12214_v50 }
 0xdea   :  { %10925 = vmatprep.subr.mxu0 %v11753_v0 }
 0xea7   :  { %v1873_v9 = vpop.f32.mrf.mxu1 }
 0xea8   :  { %v1874_v10 = vadd.f32 %v1873_v9, %v12178_v8  ;;  %v2039_v11 = vpop.f32.mrf.mxu0 }
 0xea9   :  { %v2040_v12 = vadd.f32 %v2039_v11, %v12178_v8  ;;  %v10899_v13 = vpop.f32.mrf.mxu1 }
 0xeaa   :  { %v10909_v14 = vpop.f32.mrf.mxu0  ;;  %v1877_v61 = vsel %vm803_vm8, %v1874_v10, -inf }
 0xeab   :  { %1878 = vmax.xlane.f32.xlu0 %v1877_v61  ;;  %v2043_v16 = vsel %vm803_vm8, %v2040_v12, -inf }
 0xeac   :  { %2044 = vmax.xlane.f32.xlu1 %v2043_v16 }
 0xebd   :  { %2054 = vrot.lane.b32.xlu1 %v12153_v1, %s13452_s26  ;;  %s11791_s26 = smov 27  }
 0xec1   :  { %2279 = vrot.lane.b32.xlu1 %v12153_v1, %s13458_s9 }
 0xf34   :  { %v1879_v17 = vpop.xlane.xlu0 %1878 }
 0xf35   :  { %v1880_v53 = vsub.f32 %v1874_v10, %v1879_v17  ;;  %v2045_v18 = vpop.xlane.xlu1 %2044 }
 0xf36   :  { %v2046_v19 = vsub.f32 %v2040_v12, %v2045_v18 }
 0xf37   :  { %v1881_v20 = vmul.f32 1.442695, %v1880_v53 }
 0xf38   :  { %v2047_v21 = vmul.f32 1.442695, %v2046_v19 }
 0xf39   :  { %11598 = vpow2.f32 %v1881_v20  ;;  %v2055_v39 = vpop.permute.xlu1 %2054 }
 0xf3a   :  { %11600 = vpow2.f32 %v2047_v21 }
 0xf3d   :  { %v2280_v57 = vpop.permute.xlu1 %2279 }
 0xf46   :  { %v11599_v23 = vpop.eup %11598 }
 0xf47   :  { %v1883_v24 = vsel %vm803_vm8, %v11599_v23, 0.0  ;;  %v11601_v27 = vpop.eup %11600 }
 0xf48   :  { %1884 = vadd.xlane.f32.xlu0 %v1883_v24  ;;  %v2049_v30 = vsel %vm803_vm8, %v11601_v27, 0.0 }
 0xf4c   :  { %2050 = vadd.xlane.f32.xlu0 %v2049_v30 }
 0xf62   :  { %1888 = vrot.lane.b32.xlu0 %v12153_v1, %s13450_s28  ;;  %s12417_s28 = sld [smem:[%s13445_s0 + %s11792_s18]]   ;;  %s13477_s18 = smov 56  }
 0xf66   :  { %2277 = vrot.lane.b32.xlu0 %v12153_v1, %s13462_s2 }
 0xf68   :  { %13475 = sst [smem:[#allocation4_spill]] %s12417_s28 }
 0xfd1   :  { %v1885_v33 = vpop.xlane.xlu0 %1884 }
 0xfd2   :  { %11602 = vrcp.f32 %v1885_v33 }
 0xfd5   :  { %v2051_v34 = vpop.xlane.xlu0 %2050 }
 0xfd6   :  { %11604 = vrcp.f32 %v2051_v34 }
 0xfd9   :  { %v1889_v35 = vpop.permute.xlu0 %1888 }
 0xfda   :  { %10901 = vmatpush3.msk.msra.mxu1 %vm821_vm9, %v1889_v35 }
 0xfdb   :  { %10910 = vmatprep.subr.mxu1 %v11753_v0 }
 0xfdd   :  { %v2278_v63 = vpop.permute.xlu0 %2277 }
 0xfdf   :  { %v11603_v36 = vpop.eup %11602 }
 0xfe0   :  { %v1887_v38 = vmul.f32 %v11603_v36, %v11599_v23 }
 0xfe2   :  { %10903 = vmatmul.mubr.msk.f32.vlgmr.msra.gmra.mxu1 %vm817_vm10, %v1887_v38 }
 0xfe3   :  { %v11605_v41 = vpop.eup %11604  ;;  %10911 = vmatpush3.msk.msra.mxu1 %vm821_vm9, %v2055_v39  ;;  %10912 = vmatprep.mubr.msk.f32.mxu1 %vm11755_vm0, %v11753_v0 }
 0xfe4   :  { %v2053_v42 = vmul.f32 %v11605_v41, %v11601_v27  ;;  %10920 = vmatprep.subr.mxu1 %v11753_v0  ;;  %v12250_v27 = vld [vmem:[%s12207_s13 + $0x10] sm:$0xff] }
 0xfe6   :  { %10913 = vmatmul.mubr.msk.f32.vlgmr.msra.gmra.mxu1 %vm817_vm10, %v2053_v42 }
 0xfe7   :  { %10922 = vmatprep.mubr.msk.f32.mxu1 %vm11755_vm0, %v11753_v0  ;;  %10921 = vmatpush3.msra.mxu1 %v12210_v43 }
 0xfe8   :  { %10930 = vmatprep.subr.mxu1 %v11753_v0 }
0x10a2   :  { %v1961_v51 = vpop.f32.mrf.mxu1 }
0x10a3   :  { %10923 = vmatmul.mubr.msk.f32.vlgmr.msra.gmra.mxu1 %vm726_vm7, %v1961_v51 }
0x10a4   :  { %v10904_v52 = vpop.f32.mrf.mxu1  ;;  %10932 = vmatprep.mubr.msk.f32.mxu1 %vm11755_vm0, %v11753_v0 }
0x10a6   :  { %v2127_v54 = vpop.f32.mrf.mxu1 }
0x10a7   :  { %10918 = vmatmul.mubr.msk.f32.vlgmr.msra.gmra.mxu0 %vm726_vm7, %v2127_v54  ;;  %v12265_v54 = vld [vmem:[%s12207_s13 + $0x18] sm:$0xff] }
0x10a8   :  { %10926 = vmatpush3.xpose.msk.msra.mxu0 %vm726_vm7, %v2280_v57  ;;  %v10914_v60 = vpop.f32.mrf.mxu1  ;;  %10927 = vmatprep.mubr.msk.f32.mxu0 %vm11755_vm0, %v11753_v0 }
0x10a9   :  { %10935 = vmatprep.subr.mxu0 %v11753_v0 }
0x10ab   :  { %10928 = vmatmul.mubr.msk.f32.vlgmr.msra.gmra.mxu0 %vm726_vm7, %v2278_v63 }
0x10ac   :  { %10937 = vmatprep.mubr.msk.f32.mxu0 %vm11755_vm0, %v11753_v0  ;;  %10936 = vmatpush3.msra.mxu0 %v12250_v27 }
0x10ad   :  { %10945 = vmatprep.subr.mxu0 %v11753_v0 }
0x1163   :  { %v2273_v3 = vpop.f32.mrf.mxu1 }
0x1165   :  { %v10924_v4 = vpop.f32.mrf.mxu1 }
0x1167   :  { %v2200_v5 = vpop.f32.mrf.mxu0 }
0x1168   :  { %v2274_v6 = vadd.f32 %v2273_v3, %v2200_v5 }
0x1169   :  { %v10919_v9 = vpop.f32.mrf.mxu0 }
0x116b   :  { %v2351_v10 = vpop.f32.mrf.mxu0 }
0x116c   :  { %v2352_v11 = vadd.f32 %v2351_v10, %v12178_v8 }
0x116d   :  { %v10929_v12 = vpop.f32.mrf.mxu0 }
0x116e   :  { %v2355_v13 = vsel %vm803_vm8, %v2352_v11, -inf }
0x116f   :  { %2356 = vmax.xlane.f32.xlu1 %v2355_v13 }
0x1180   :  { %2519 = vrot.lane.b32.xlu1 %v12153_v1, %s13454_s11 }
0x1184   :  { %2517 = vrot.lane.b32.xlu1 %v12153_v1, %s13456_s10 }
0x11f8   :  { %v2357_v14 = vpop.xlane.xlu1 %2356 }
0x11f9   :  { %v2358_v61 = vsub.f32 %v2352_v11, %v2357_v14 }
0x11fb   :  { %v2359_v16 = vmul.f32 1.442695, %v2358_v61  ;;  %v413_v61 = vadd.f32 %v11848_v7, %v11941_v45  ;;  %v12297_v7 = vld [vmem:[%s12294_s5 + $0x18] sm:$0xff]  ;;  %v12302_v45 = vld [vmem:[%s12294_s5 + $0x10] sm:$0xff] }
0x11fc   :  { %v2520_v21 = vpop.permute.xlu1 %2519 }
0x11fd   :  { %11606 = vpow2.f32 %v2359_v16 }
0x1200   :  { %v2518_v24 = vpop.permute.xlu1 %2517 }
0x120a   :  { %v11607_v17 = vpop.eup %11606 }
0x120b   :  { %v2361_v53 = vsel %vm803_vm8, %v11607_v17, 0.0 }
0x120c   :  { %2362 = vadd.xlane.f32.xlu0 %v2361_v53 }
0x1222   :  { %2366 = vrot.lane.b32.xlu0 %v12153_v1, %s13448_s14  ;;  %s11790_s14 = smov 24  }
0x1223   :  { %s12324_s11 = sld [smem:[%s13445_s0 + %s11790_s14]]   ;;  %s13476_s14 = smov 72  }
0x1229   :  { %13473 = sst [smem:[#allocation2_spill]] %s12324_s11 }
0x1295   :  { %v2363_v18 = vpop.xlane.xlu0 %2362 }
0x1296   :  { %11608 = vrcp.f32 %v2363_v18 }
0x1299   :  { %v2367_v19 = vpop.permute.xlu0 %2366 }
0x129a   :  { %10931 = vmatpush3.msk.msra.mxu1 %vm821_vm9, %v2367_v19 }
0x129b   :  { %10940 = vmatprep.subr.mxu1 %v11753_v0 }
0x12a3   :  { %v11609_v20 = vpop.eup %11608 }
0x12a4   :  { %v2365_v23 = vmul.f32 %v11609_v20, %v11607_v17  ;;  %v416_v17 = vsel %vm223_vm5, %v413_v61, 0.0 }
0x12a6   :  { %10933 = vmatmul.mubr.msk.f32.vlgmr.msra.gmra.mxu1 %vm817_vm10, %v2365_v23 }
0x12a7   :  { %10941 = vmatpush3.xpose.msk.msra.mxu1 %vm726_vm7, %v2520_v21  ;;  %10942 = vmatprep.mubr.msk.f32.mxu1 %vm11755_vm0, %v11753_v0 }
0x12a8   :  { %10950 = vmatprep.subr.mxu1 %v11753_v0 }
0x12aa   :  { %10943 = vmatmul.mubr.msk.f32.vlgmr.msra.gmra.mxu1 %vm726_vm7, %v2518_v24 }
0x12ab   :  { %10952 = vmatprep.mubr.msk.f32.mxu1 %vm11755_vm0, %v11753_v0  ;;  %10951 = vmatpush3.msra.mxu1 %v12265_v54 }
0x12ac   :  { %10966 = vmatprep.subr.mxu1 %v11753_v0 }
0x1366   :  { %v2439_v30 = vpop.f32.mrf.mxu1 }
0x1367   :  { %10938 = vmatmul.mubr.msk.f32.vlgmr.msra.gmra.mxu0 %vm726_vm7, %v2439_v30 }
0x1368   :  { %v10934_v33 = vpop.f32.mrf.mxu1  ;;  %10947 = vmatprep.mubr.msk.f32.mxu0 %vm11755_vm0, %v11753_v0 }
0x136a   :  { %v2591_v34 = vpop.f32.mrf.mxu1 }
0x136b   :  { %v2592_v35 = vadd.f32 %v2591_v34, %v12178_v8  ;;  %v12307_v34 = vld [vmem:[%s12294_s5 + $0x8] sm:$0xff] }
0x136c   :  { %v10944_v36 = vpop.f32.mrf.mxu1 }
0x136d   :  { %v2595_v38 = vsel %vm803_vm8, %v2592_v35, -inf }
0x136e   :  { %2596 = vmax.xlane.f32.xlu0 %v2595_v38 }
0x1384   :  { %2606 = vrot.lane.b32.xlu0 %v12153_v1, %s13446_s17  ;;  %s12319_s17 = sld [smem:[%s13445_s0 + %s11789_s12]]  }
0x1385   :  { %s12372_s12 = sld [smem:[%s13445_s0 + %s11791_s26]]   ;;  %s13479_s26 = smov 48  }
0x138b   :  { %13474 = sst [smem:[#allocation3_spill]] %s12372_s12 }
0x13f7   :  { %v2597_v39 = vpop.xlane.xlu0 %2596 }
0x13f8   :  { %v2598_v41 = vsub.f32 %v2592_v35, %v2597_v39  ;;  %v12312_v35 = vld [vmem:[%s12294_s5] sm:$0xff] }
0x13fa   :  { %v2599_v42 = vmul.f32 1.442695, %v2598_v41 }
0x13fb   :  { %v2607_v51 = vpop.permute.xlu0 %2606 }
0x13fc   :  { %11610 = vpow2.f32 %v2599_v42  ;;  %10946 = vmatpush3.msk.msra.mxu0 %vm821_vm9, %v2607_v51 }
0x13fd   :  { %10955 = vmatprep.subr.mxu0 %v11753_v0 }
0x1409   :  { %v11611_v52 = vpop.eup %11610 }
0x140a   :  { %v2601_v8 = vsel %vm803_vm8, %v11611_v52, 0.0 }
0x140b   :  { %2602 = vadd.xlane.f32.xlu1 %v2601_v8  ;;  %v12327_v8 = vld [vmem:[%s12319_s17] ss:$0 sm:$0xff] }
0x1427   :  { %v2512_v57 = vpop.f32.mrf.mxu0 }
0x1428   :  { %v2516_v1 = vadd.f32 %v2512_v57, %v2274_v6  ;;  %v12281_v6 = vld [vmem:[%s12278_s6] ss:$0 sm:$0xff] }
0x1429   :  { %v10939_v60 = vpop.f32.mrf.mxu0 }
0x1494   :  { %v2603_v63 = vpop.xlane.xlu1 %2602 }
0x1495   :  { %11612 = vrcp.f32 %v2603_v63 }
0x14a2   :  { %v11613_v3 = vpop.eup %11612 }
0x14a3   :  { %v2605_v4 = vmul.f32 %v11613_v3, %v11611_v52 }
0x14a5   :  { %10948 = vmatmul.mubr.msk.f32.vlgmr.msra.gmra.mxu0 %vm817_vm10, %v2605_v4 }
0x14a6   :  { %10963 = vmatprep.mubr.msk.f32.mxu0 %vm11755_vm0, %v11753_v0  ;;  %10956 = vmatpush3.msra.mxu0 %v12297_v7 }
0x14a7   :  { %10957 = vmatprep.subr.mxu0 %v11753_v0 }
0x14a8   :  { %10958 = vmatpush3.msra.mxu0 %v12302_v45 }
0x14a9   :  { %10959 = vmatprep.subr.mxu0 %v11753_v0 }
0x14aa   :  { %10960 = vmatpush3.msra.mxu0 %v12307_v34 }
0x14ab   :  { %10961 = vmatprep.subr.mxu0 %v11753_v0 }
0x14ac   :  { %10962 = vmatpush3.msra.mxu0 %v12312_v35 }
0x14ad   :  { %10985 = vmatprep.subr.mxu0 %v11753_v0 }
0x1565   :  { %v2679_v5 = vpop.f32.mrf.mxu0 }
0x1566   :  { %10953 = vmatmul.mubr.msk.f32.vlgmr.msra.gmra.mxu1 %vm726_vm7, %v2679_v5 }
0x1567   :  { %v10949_v9 = vpop.f32.mrf.mxu0  ;;  %10982 = vmatprep.mubr.msk.f32.mxu1 %vm11755_vm0, %v11753_v0 }
0x1626   :  { %v2752_v10 = vpop.f32.mrf.mxu1 }
0x1627   :  { %v2756_v11 = vadd.f32 %v2752_v10, %v2516_v1  ;;  %v12330_v1 = vld [vmem:[%s12324_s11] ss:$0 sm:$0xff] }
0x1628   :  { %v10954_v12 = vpop.f32.mrf.mxu1 }
0x1629   :  { %v2763_v13 = vadd.f32 %v12281_v6, %v2756_v11  ;;  %v12385_v11 = vld [vmem:[%s12372_s12 + $0x28] sm:$0xff]  ;;  %v12390_v12 = vld [vmem:[%s12372_s12 + $0x20] sm:$0xff] }
0x162b   :  { %v2764_v14 = vadd.f32 %v2763_v13, %v12138_v58  ;;  %v12395_v13 = vld [vmem:[%s12372_s12 + $0x18] sm:$0xff] }
0x162d   :  { %v2765_v16 = vsel %vm223_vm5, %v2764_v14, 0.0 }
0x162e   :  { %2766 = vadd.xlane.f32.xlu1 %v2765_v16  ;;  %v12410_v16 = vld [vmem:[%s12372_s12] sm:$0xff] }
0x1632   :  { %417 = vadd.xlane.f32.xlu1 %v416_v17  ;;  %v12420_v17 = vld [vmem:[%s12417_s28] ss:$0 sm:$0xff] }
0x16b7   :  { %v2767_v53 = vpop.xlane.xlu1 %2766 }
0x16b8   :  { %v2768_v18 = vmul.f32 0.03125, %v2767_v53 }
0x16ba   :  { %v2769_v19 = vsub.f32 %v2764_v14, %v2768_v18  ;;  %v12400_v14 = vld [vmem:[%s12372_s12 + $0x10] sm:$0xff] }
0x16bb   :  { %v418_v20 = vpop.xlane.xlu1 %417 }
0x16bc   :  { %v419_v21 = vmul.f32 0.03125, %v418_v20  ;;  %v2770_v23 = vmul.f32 %v2769_v19, %v2769_v19 }
0x16be   :  { %v420_v24 = vsub.f32 %v413_v61, %v419_v21  ;;  %v2771_v30 = vsel %vm223_vm5, %v2770_v23, 0.0  ;;  %v12405_v61 = vld [vmem:[%s12372_s12 + $0x8] sm:$0xff] }
0x16bf   :  { %2772 = vadd.xlane.f32.xlu1 %v2771_v30 }
0x16c0   :  { %v421_v58 = vmul.f32 %v420_v24, %v420_v24 }
0x16c2   :  { %v422_v33 = vsel %vm223_vm5, %v421_v58, 0.0 }
0x16c3   :  { %423 = vadd.xlane.f32.xlu1 %v422_v33 }
0x1748   :  { %v2773_v36 = vpop.xlane.xlu1 %2772 }
0x1749   :  { %v2774_v38 = vmul.f32 0.03125, %v2773_v36 }
0x174b   :  { %v2775_v39 = vadd.f32 1e-12, %v2774_v38 }
0x174c   :  { %v424_v41 = vpop.xlane.xlu1 %423 }
0x174d   :  { %11614 = vrsqrt.f32 %v2775_v39  ;;  %v425_v42 = vmul.f32 0.03125, %v424_v41  ;;  %v11746_v39 = vld [vmem:[%s11946_s19] ss:$0 sm:$0xff] }
0x174f   :  { %v426_v51 = vadd.f32 1e-12, %v425_v42 }
0x1751   :  { %11616 = vrsqrt.f32 %v426_v51 }
0x175a   :  { %v11615_v52 = vpop.eup %11614 }
0x175b   :  { %v2777_v57 = vmul.f32 %v11615_v52, %v2769_v19 }
0x175d   :  { %v2784_v60 = vmul.f32 %v12327_v8, %v2777_v57 }
0x175e   :  { %v11617_v63 = vpop.eup %11616 }
0x175f   :  { %v428_v3 = vmul.f32 %v11617_v63, %v420_v24  ;;  %v12334_v4 = vadd.f32 %v12330_v1, %v2784_v60 }
0x1761   :  { %10964 = vmatmul.mubr.msk.f32.vlgmr.msra.gmra.mxu0 %vm567_vm6, %v12334_v4  ;;  %v429_v5 = vmul.f32 %v11928_v37, %v428_v3  ;;  %v10197_v37 = vld [vmem:[%s11889_s3 + $0x8] sm:$0x3f] }
0x1762   :  { %10986 = vmatpush3.msra.mxu0 %v11894_v25  ;;  %10993 = vmatprep.mubr.msk.f32.mxu0 %vm11755_vm0, %v11753_v0  ;;  %v11742_v25 = vld [vmem:[%s11864_s25 + $0x18] sm:$0xff] }
0x1763   :  { %10987 = vmatprep.subr.mxu0 %v11753_v0  ;;  %v430_v9 = vadd.f32 %v11931_v40, %v429_v5  ;;  %v12375_v40 = vld [vmem:[%s12372_s12 + $0x38] sm:$0xff] }
0x1764   :  { %10988 = vmatpush3.msra.mxu0 %v11902_v29  ;;  %v11743_v29 = vld [vmem:[%s11864_s25 + $0x10] sm:$0xff]  ;;  %10967 = vmatpush3.msra.mxu1 %v12375_v40 }
0x1765   :  { %10989 = vmatprep.subr.mxu0 %v11753_v0  ;;  %v12347_v10 = vadd.f32 %v11948_v49, %v430_v9  ;;  %10968 = vmatprep.subr.mxu1 %v11753_v0  ;;  %v12380_v49 = vld [vmem:[%s12372_s12 + $0x30] sm:$0xff]  ;;  %v12453_v9 = vld [vmem:[%s11983_s30 + $0x1] ss:$0 sm:$0xff]  ;;  %s13487_s12 = smov 104  }
0x1766   :  { %10990 = vmatpush3.msra.mxu0 %v11908_v31  ;;  %v11744_v31 = vld [vmem:[%s11864_s25 + $0x8] sm:$0xff]  ;;  %10969 = vmatpush3.msra.mxu1 %v12380_v49 }
0x1767   :  { %10991 = vmatprep.subr.mxu0 %v11753_v0  ;;  %10970 = vmatprep.subr.mxu1 %v11753_v0 }
0x1768   :  { %10992 = vmatpush3.msra.mxu0 %v11915_v32  ;;  %v11745_v32 = vld [vmem:[%s11864_s25] sm:$0xff]  ;;  %10971 = vmatpush3.msra.mxu1 %v12385_v11 }
0x1769   :  { %10994 = vmatmul.mubr.msk.f32.vlgmr.msra.gmra.mxu0 %vm567_vm6, %v12347_v10  ;;  %10996 = vmatprep.subr.mxu0 %v11753_v0 }
0x176a   :  { %10997 = vmatpush3.msra.mxu0 %v11742_v25  ;;  %11004 = vmatprep.mubr.msk.f32.mxu0 %vm11755_vm0, %v11753_v0 }
0x176b   :  { %10998 = vmatprep.subr.mxu0 %v11753_v0  ;;  %10972 = vmatprep.subr.mxu1 %v11753_v0 }
0x176c   :  { %10999 = vmatpush3.msra.mxu0 %v11743_v29  ;;  %10973 = vmatpush3.msra.mxu1 %v12390_v12 }
0x176d   :  { %11000 = vmatprep.subr.mxu0 %v11753_v0  ;;  %10974 = vmatprep.subr.mxu1 %v11753_v0 }
0x176e   :  { %11001 = vmatpush3.msra.mxu0 %v11744_v31  ;;  %10975 = vmatpush3.msra.mxu1 %v12395_v13 }
0x176f   :  { %11002 = vmatprep.subr.mxu0 %v11753_v0  ;;  %10976 = vmatprep.subr.mxu1 %v11753_v0 }
0x1770   :  { %11003 = vmatpush3.msra.mxu0 %v11745_v32  ;;  %10977 = vmatpush3.msra.mxu1 %v12400_v14 }
0x1771   :  { %11005 = vmatmul.mubr.msk.f32.vlgmr.msra.gmra.mxu0 %vm567_vm6, %v10197_v37  ;;  %11017 = vmatprep.subr.mxu0 %v11753_v0 }
0x1772   :  { %11019 = vmatprep.mubr.msk.f32.mxu0 %vm11755_vm0, %v11753_v0  ;;  %10978 = vmatprep.subr.mxu1 %v11753_v0 }
0x1773   :  { %10979 = vmatpush3.msra.mxu1 %v12405_v61 }
0x1774   :  { %10980 = vmatprep.subr.mxu1 %v11753_v0 }
0x1775   :  { %10981 = vmatpush3.msra.mxu1 %v12410_v16 }
0x1776   :  { %11007 = vmatprep.subr.mxu1 %v11753_v0 }
0x1821   :  { %v2867_v53 = vpop.f32.mrf.mxu0 }
0x1822   :  { %v2868_v18 = vadd.f32 %v12420_v17, %v2867_v53 }
0x1823   :  { %v10965_v19 = vpop.f32.mrf.mxu0 }
0x1824   :  { %v2871_v20 = vmul.f32 %v2868_v18, %v2868_v18 }
0x1826   :  { %v2872_v21 = vmul.f32 %v2871_v20, %v2868_v18 }
0x1828   :  { %v2873_v23 = vmul.f32 0.044715, %v2872_v21 }
0x1829   :  { %v3057_v24 = vpop.f32.mrf.mxu0 }
0x182a   :  { %v2874_v30 = vadd.f32 %v2873_v23, %v2868_v18  ;;  %v12424_v58 = vadd.f32 %v11966_v56, %v3057_v24 }
0x182b   :  { %v10995_v33 = vpop.f32.mrf.mxu0 }
0x182c   :  { %v2875_v36 = vmul.f32 0.7978846, %v2874_v30  ;;  %3304 = vrot.lane.b32.xlu1 %v12424_v58, %s13466_s20 }
0x182e   :  { %11618 = vtanh.f32 %v2875_v36 }
0x1831   :  { %v3130_v38 = vpop.f32.mrf.mxu0 }
0x1832   :  { %v12429_v41 = vadd.f32 %v11746_v39, %v3130_v38 }
0x1833   :  { %v11006_v42 = vpop.f32.mrf.mxu0 }
0x1834   :  { %3306 = vrot.lane.b32.xlu0 %v12429_v41, %s13466_s20 }
0x183b   :  { %v11619_v51 = vpop.eup %11618 }
0x183c   :  { %v2877_v52 = vadd.f32 1.0, %v11619_v51 }
0x183e   :  { %v2878_v57 = vmul.f32 0.5, %v2877_v52 }
0x1840   :  { %v2879_v56 = vmul.f32 %v2878_v57, %v2868_v18 }
0x1842   :  { %10983 = vmatmul.mubr.msk.f32.vlgmr.msra.gmra.mxu1 %vm2886_vm11, %v2879_v56 }
0x1843   :  { %11008 = vmatpush3.xpose.msk.msra.mxu1 %vm726_vm7, %v12429_v41  ;;  %11009 = vmatprep.mubr.msk.f32.mxu1 %vm11755_vm0, %v11753_v0 }
0x1844   :  { %11012 = vmatprep.subr.mxu1 %v11753_v0 }
0x1846   :  { %11010 = vmatmul.mubr.msk.f32.vlgmr.msra.gmra.mxu1 %vm726_vm7, %v12424_v58 }
0x1847   :  { %11014 = vmatprep.mubr.msk.f32.mxu1 %vm11755_vm0, %v11753_v0 }
0x189e   :  { %v3305_v63 = vpop.permute.xlu1 %3304 }
0x18a6   :  { %v3307_v60 = vpop.permute.xlu0 %3306 }
0x18a7   :  { %11018 = vmatpush3.xpose.msk.msra.mxu0 %vm726_vm7, %v3307_v60 }
0x18a8   :  { %11027 = vmatprep.subr.mxu0 %v11753_v0 }
0x18aa   :  { %11020 = vmatmul.mubr.msk.f32.vlgmr.msra.gmra.mxu0 %vm726_vm7, %v3305_v63 }
0x18ab   :  { %11028 = vmatpush3.msra.mxu0 %v12013_v22  ;;  %11029 = vmatprep.mubr.msk.f32.mxu0 %vm11755_vm0, %v11753_v0 }
0x18ac   :  { %11037 = vmatprep.subr.mxu0 %v11753_v0 }
0x1902   :  { %v12450_v3 = vpop.f32.mrf.mxu1 }
0x1904   :  { %v10984_v5 = vpop.f32.mrf.mxu1 }
0x1906   :  { %v3212_v25 = vpop.f32.mrf.mxu1 }
0x1907   :  { %v3213_v29 = vadd.f32 %v12453_v9, %v3212_v25 }
0x1908   :  { %v11011_v31 = vpop.f32.mrf.mxu1 }
0x1909   :  { %v3216_v37 = vsel %vm803_vm8, %v3213_v29, -inf }
0x190a   :  { %3217 = vmax.xlane.f32.xlu0 %v3216_v37 }
0x196a   :  { %v3378_v32 = vpop.f32.mrf.mxu0 }
0x196b   :  { %v3379_v22 = vadd.f32 %v12453_v9, %v3378_v32 }
0x196c   :  { %v11021_v53 = vpop.f32.mrf.mxu0 }
0x196d   :  { %v3382_v18 = vsel %vm803_vm8, %v3379_v22, -inf }
0x196e   :  { %3383 = vmax.xlane.f32.xlu1 %v3382_v18 }
0x197f   :  { %3393 = vrot.lane.b32.xlu1 %v12429_v41, %s13464_s4 }
0x1993   :  { %v3218_v19 = vpop.xlane.xlu0 %3217 }
0x1994   :  { %v3219_v20 = vsub.f32 %v3213_v29, %v3218_v19 }
0x1996   :  { %v3220_v21 = vmul.f32 1.442695, %v3219_v20 }
0x1998   :  { %11620 = vpow2.f32 %v3220_v21 }
0x19a5   :  { %v11621_v23 = vpop.eup %11620 }
0x19a6   :  { %v3222_v24 = vsel %vm803_vm8, %v11621_v23, 0.0 }
0x19a7   :  { %3223 = vadd.xlane.f32.xlu0 %v3222_v24 }
0x19f7   :  { %v3384_v30 = vpop.xlane.xlu1 %3383 }
0x19f8   :  { %v3385_v33 = vsub.f32 %v3379_v22, %v3384_v30 }
0x19fa   :  { %v3386_v36 = vmul.f32 1.442695, %v3385_v33 }
0x19fb   :  { %v3394_v60 = vpop.permute.xlu1 %3393 }
0x19fc   :  { %11622 = vpow2.f32 %v3386_v36 }
0x1a09   :  { %v11623_v38 = vpop.eup %11622 }
0x1a0a   :  { %v3388_v39 = vsel %vm803_vm8, %v11623_v38, 0.0 }
0x1a0b   :  { %3389 = vadd.xlane.f32.xlu0 %v3388_v39 }
0x1a21   :  { %3227 = vrot.lane.b32.xlu0 %v12429_v41, %s13460_s1 }
0x1a25   :  { %3618 = vrot.lane.b32.xlu0 %v12429_v41, %s13462_s2 }
0x1a29   :  { %3616 = vrot.lane.b32.xlu0 %v12424_v58, %s13462_s2 }
0x1a30   :  { %v3224_v42 = vpop.xlane.xlu0 %3223 }
0x1a31   :  { %11624 = vrcp.f32 %v3224_v42 }
0x1a3e   :  { %v11625_v52 = vpop.eup %11624 }
0x1a3f   :  { %v3226_v56 = vmul.f32 %v11625_v52, %v11621_v23 }
0x1a94   :  { %v3390_v51 = vpop.xlane.xlu0 %3389 }
0x1a95   :  { %11626 = vrcp.f32 %v3390_v51 }
0x1a98   :  { %v3228_v57 = vpop.permute.xlu0 %3227 }
0x1a99   :  { %11013 = vmatpush3.msk.msra.mxu1 %vm821_vm9, %v3228_v57 }
0x1a9a   :  { %11015 = vmatmul.mubr.msk.f32.vlgmr.msra.gmra.mxu1 %vm817_vm10, %v3226_v56  ;;  %11022 = vmatprep.subr.mxu1 %v11753_v0 }
0x1a9b   :  { %11023 = vmatpush3.msk.msra.mxu1 %vm821_vm9, %v3394_v60  ;;  %11024 = vmatprep.mubr.msk.f32.mxu1 %vm11755_vm0, %v11753_v0 }
0x1a9c   :  { %11032 = vmatprep.subr.mxu1 %v11753_v0  ;;  %v3619_v31 = vpop.permute.xlu0 %3618 }
0x1aa2   :  { %v11627_v63 = vpop.eup %11626 }
0x1aa3   :  { %v3392_v5 = vmul.f32 %v11627_v63, %v11623_v38 }
0x1aa5   :  { %11025 = vmatmul.mubr.msk.f32.vlgmr.msra.gmra.mxu1 %vm817_vm10, %v3392_v5 }
0x1aa6   :  { %11033 = vmatpush3.msra.mxu1 %v12020_v28  ;;  %11034 = vmatprep.mubr.msk.f32.mxu1 %vm11755_vm0, %v11753_v0  ;;  %v3617_v28 = vpop.permute.xlu0 %3616 }
0x1aa7   :  { %11042 = vmatprep.subr.mxu1 %v11753_v0 }
0x1b5a   :  { %v3300_v25 = vpop.f32.mrf.mxu1 }
0x1b5b   :  { %11035 = vmatmul.mubr.msk.f32.vlgmr.msra.gmra.mxu1 %vm726_vm7, %v3300_v25 }
0x1b5c   :  { %v11016_v29 = vpop.f32.mrf.mxu1  ;;  %11044 = vmatprep.mubr.msk.f32.mxu1 %vm11755_vm0, %v11753_v0 }
0x1b65   :  { %v3466_v37 = vpop.f32.mrf.mxu1 }
0x1b66   :  { %11030 = vmatmul.mubr.msk.f32.vlgmr.msra.gmra.mxu0 %vm726_vm7, %v3466_v37 }
0x1b67   :  { %11038 = vmatpush3.xpose.msk.msra.mxu0 %vm726_vm7, %v3619_v31  ;;  %v11026_v32 = vpop.f32.mrf.mxu1  ;;  %11039 = vmatprep.mubr.msk.f32.mxu0 %vm11755_vm0, %v11753_v0 }
0x1b68   :  { %11047 = vmatprep.subr.mxu0 %v11753_v0 }
0x1b6a   :  { %11040 = vmatmul.mubr.msk.f32.vlgmr.msra.gmra.mxu0 %vm726_vm7, %v3617_v28 }
0x1b6b   :  { %11048 = vmatpush3.msra.mxu0 %v12058_v2  ;;  %11049 = vmatprep.mubr.msk.f32.mxu0 %vm11755_vm0, %v11753_v0 }
0x1b6c   :  { %11057 = vmatprep.subr.mxu0 %v11753_v0 }
0x1c1b   :  { %v3612_v22 = vpop.f32.mrf.mxu1 }
0x1c1d   :  { %v11036_v53 = vpop.f32.mrf.mxu1 }
0x1c26   :  { %v3539_v18 = vpop.f32.mrf.mxu0 }
0x1c27   :  { %v3613_v19 = vadd.f32 %v3612_v22, %v3539_v18 }
0x1c28   :  { %v11031_v20 = vpop.f32.mrf.mxu0 }
0x1c2a   :  { %v3690_v21 = vpop.f32.mrf.mxu0 }
0x1c2b   :  { %v3691_v23 = vadd.f32 %v12453_v9, %v3690_v21 }
0x1c2c   :  { %v11041_v24 = vpop.f32.mrf.mxu0 }
0x1c2d   :  { %v3694_v30 = vsel %vm803_vm8, %v3691_v23, -inf }
0x1c2e   :  { %3695 = vmax.xlane.f32.xlu1 %v3694_v30 }
0x1c3f   :  { %3858 = vrot.lane.b32.xlu1 %v12429_v41, %s13456_s10 }
0x1c43   :  { %3856 = vrot.lane.b32.xlu1 %v12424_v58, %s13456_s10 }
0x1cb7   :  { %v3696_v2 = vpop.xlane.xlu1 %3695 }
0x1cb8   :  { %v3697_v33 = vsub.f32 %v3691_v23, %v3696_v2 }
0x1cba   :  { %v3698_v36 = vmul.f32 1.442695, %v3697_v33 }
0x1cbb   :  { %v3859_v58 = vpop.permute.xlu1 %3858 }
0x1cbc   :  { %11628 = vpow2.f32 %v3698_v36 }
0x1cbf   :  { %v3857_v56 = vpop.permute.xlu1 %3856 }
0x1cc9   :  { %v11629_v38 = vpop.eup %11628 }
0x1cca   :  { %v3700_v39 = vsel %vm803_vm8, %v11629_v38, 0.0 }
0x1ccb   :  { %3701 = vadd.xlane.f32.xlu0 %v3700_v39 }
0x1ce1   :  { %3705 = vrot.lane.b32.xlu0 %v12429_v41, %s13458_s9 }
0x1d54   :  { %v3702_v42 = vpop.xlane.xlu0 %3701 }
0x1d55   :  { %11630 = vrcp.f32 %v3702_v42 }
0x1d58   :  { %v3706_v51 = vpop.permute.xlu0 %3705 }
0x1d59   :  { %11043 = vmatpush3.msk.msra.mxu1 %vm821_vm9, %v3706_v51 }
0x1d5a   :  { %11052 = vmatprep.subr.mxu1 %v11753_v0 }
0x1d62   :  { %v11631_v52 = vpop.eup %11630 }
0x1d63   :  { %v3704_v57 = vmul.f32 %v11631_v52, %v11629_v38 }
0x1d65   :  { %11045 = vmatmul.mubr.msk.f32.vlgmr.msra.gmra.mxu1 %vm817_vm10, %v3704_v57 }
0x1d66   :  { %11053 = vmatpush3.xpose.msk.msra.mxu1 %vm726_vm7, %v3859_v58  ;;  %11054 = vmatprep.mubr.msk.f32.mxu1 %vm11755_vm0, %v11753_v0 }
0x1d67   :  { %11062 = vmatprep.subr.mxu1 %v11753_v0 }
0x1d69   :  { %11055 = vmatmul.mubr.msk.f32.vlgmr.msra.gmra.mxu1 %vm726_vm7, %v3857_v56 }
0x1d6a   :  { %11063 = vmatpush3.msra.mxu1 %v12073_v15  ;;  %11064 = vmatprep.mubr.msk.f32.mxu1 %vm11755_vm0, %v11753_v0 }
0x1d6b   :  { %11078 = vmatprep.subr.mxu1 %v11753_v0 }
0x1e25   :  { %v3778_v60 = vpop.f32.mrf.mxu1 }
0x1e26   :  { %11050 = vmatmul.mubr.msk.f32.vlgmr.msra.gmra.mxu0 %vm726_vm7, %v3778_v60 }
0x1e27   :  { %v11046_v63 = vpop.f32.mrf.mxu1  ;;  %11059 = vmatprep.mubr.msk.f32.mxu0 %vm11755_vm0, %v11753_v0 }
0x1e29   :  { %v3930_v5 = vpop.f32.mrf.mxu1 }
0x1e2a   :  { %v3931_v25 = vadd.f32 %v12453_v9, %v3930_v5 }
0x1e2b   :  { %v11056_v29 = vpop.f32.mrf.mxu1 }
0x1e2c   :  { %v3934_v31 = vsel %vm803_vm8, %v3931_v25, -inf }
0x1e2d   :  { %3935 = vmax.xlane.f32.xlu0 %v3934_v31 }
0x1e43   :  { %3945 = vrot.lane.b32.xlu0 %v12429_v41, %s13476_s14 }
0x1eb6   :  { %v3936_v15 = vpop.xlane.xlu0 %3935 }
0x1eb7   :  { %v3937_v37 = vsub.f32 %v3931_v25, %v3936_v15  ;;  %v12574_v25 = vld [vmem:[%s12175_s23 + $0x8] sm:$0x3f] }
0x1eb9   :  { %v3938_v32 = vmul.f32 1.442695, %v3937_v37 }
0x1eba   :  { %v3946_v28 = vpop.permute.xlu0 %3945 }
0x1ebb   :  { %11632 = vpow2.f32 %v3938_v32  ;;  %11058 = vmatpush3.msk.msra.mxu0 %vm821_vm9, %v3946_v28 }
0x1ebc   :  { %11067 = vmatprep.subr.mxu0 %v11753_v0 }
0x1ec8   :  { %v11633_v22 = vpop.eup %11632 }
0x1ec9   :  { %v3940_v53 = vsel %vm803_vm8, %v11633_v22, 0.0 }
0x1eca   :  { %3941 = vadd.xlane.f32.xlu1 %v3940_v53 }
0x1ee6   :  { %v3851_v9 = vpop.f32.mrf.mxu0 }
0x1ee7   :  { %v3855_v18 = vadd.f32 %v3851_v9, %v3613_v19 }
0x1ee8   :  { %v11051_v20 = vpop.f32.mrf.mxu0 }
0x1f53   :  { %v3942_v21 = vpop.xlane.xlu1 %3941 }
0x1f54   :  { %11634 = vrcp.f32 %v3942_v21 }
0x1f61   :  { %v11635_v23 = vpop.eup %11634 }
0x1f62   :  { %v3944_v41 = vmul.f32 %v11635_v23, %v11633_v22 }
0x1f64   :  { %11060 = vmatmul.mubr.msk.f32.vlgmr.msra.gmra.mxu0 %vm817_vm10, %v3944_v41 }
0x1f65   :  { %11068 = vmatpush3.msra.mxu0 %v12101_v44  ;;  %11075 = vmatprep.mubr.msk.f32.mxu0 %vm11755_vm0, %v11753_v0 }
0x1f66   :  { %11069 = vmatprep.subr.mxu0 %v11753_v0 }
0x1f67   :  { %11070 = vmatpush3.msra.mxu0 %v12104_v46 }
0x1f68   :  { %11071 = vmatprep.subr.mxu0 %v11753_v0 }
0x1f69   :  { %11072 = vmatpush3.msra.mxu0 %v12109_v47 }
0x1f6a   :  { %11073 = vmatprep.subr.mxu0 %v11753_v0 }
0x1f6b   :  { %11074 = vmatpush3.msra.mxu0 %v12114_v48 }
0x1f6c   :  { %11088 = vmatprep.subr.mxu0 %v11753_v0 }
0x2024   :  { %v4018_v19 = vpop.f32.mrf.mxu0 }
0x2025   :  { %11065 = vmatmul.mubr.msk.f32.vlgmr.msra.gmra.mxu1 %vm726_vm7, %v4018_v19 }
0x2026   :  { %v11061_v44 = vpop.f32.mrf.mxu0  ;;  %11080 = vmatprep.mubr.msk.f32.mxu1 %vm11755_vm0, %v11753_v0 }
0x20e5   :  { %v4091_v24 = vpop.f32.mrf.mxu1 }
0x20e6   :  { %v4095_v30 = vadd.f32 %v4091_v24, %v3855_v18 }
0x20e7   :  { %v11066_v46 = vpop.f32.mrf.mxu1 }
0x20e8   :  { %v4096_v2 = vadd.f32 %v12089_v26, %v4095_v30 }
0x20ea   :  { %v4097_v47 = vadd.f32 %v4096_v2, %v12347_v10 }
0x20ec   :  { %v4098_v33 = vsel %vm223_vm5, %v4097_v47, 0.0 }
0x20ed   :  { %4099 = vadd.xlane.f32.xlu1 %v4098_v33 }
0x2176   :  { %v4100_v48 = vpop.xlane.xlu1 %4099 }
0x2177   :  { %v4101_v36 = vmul.f32 0.03125, %v4100_v48 }
0x2179   :  { %v4102_v38 = vsub.f32 %v4097_v47, %v4101_v36 }
0x217b   :  { %v4103_v39 = vmul.f32 %v4102_v38, %v4102_v38 }
0x217d   :  { %v4104_v42 = vsel %vm223_vm5, %v4103_v39, 0.0 }
0x217e   :  { %4105 = vadd.xlane.f32.xlu1 %v4104_v42 }
0x2207   :  { %v4106_v51 = vpop.xlane.xlu1 %4105 }
0x2208   :  { %v4107_v52 = vmul.f32 0.03125, %v4106_v51 }
0x220a   :  { %v4108_v58 = vadd.f32 1e-12, %v4107_v52 }
0x220c   :  { %11636 = vrsqrt.f32 %v4108_v58 }
0x2219   :  { %v11637_v57 = vpop.eup %11636 }
0x221a   :  { %v4110_v56 = vmul.f32 %v11637_v57, %v4102_v38 }
0x221c   :  { %v4111_v26 = vmul.f32 %v12131_v55, %v4110_v56 }
0x221e   :  { %v12545_v10 = vadd.f32 %v12134_v59, %v4111_v26 }
0x2220   :  { %11076 = vmatmul.mubr.msk.f32.vlgmr.msra.gmra.mxu0 %vm567_vm6, %v12545_v10 }
0x2221   :  { %11090 = vmatprep.mubr.msk.f32.mxu0 %vm11755_vm0, %v11753_v0 }
0x22e0   :  { %v4182_v60 = vpop.f32.mrf.mxu0 }
0x22e1   :  { %v12552_v63 = vadd.f32 %v12150_v62, %v4182_v60 }
0x22e2   :  { %v11077_v5 = vpop.f32.mrf.mxu0 }
0x22e3   :  { %4353 = vrot.lane.b32.xlu0 %v12552_v63, %s13464_s4  ;;  %4187 = vrot.lane.b32.xlu1 %v12552_v63, %s13460_s1  ;;  %s11794_s1 = smov 29  }
0x22e7   :  { %4351 = vrot.lane.b32.xlu0 %v12552_v63, %s13466_s20  ;;  %s12696_s20 = sld [smem:[%s13445_s0 + %s11794_s1]]  }
0x2355   :  { %v4354_v55 = vpop.permute.xlu0 %4353  ;;  %v4188_v59 = vpop.permute.xlu1 %4187 }
0x2356   :  { %11079 = vmatpush3.xpose.msk.msra.mxu1 %vm726_vm7, %v4188_v59  ;;  %11089 = vmatpush3.xpose.msk.msra.mxu0 %vm726_vm7, %v4354_v55 }
0x2357   :  { %11083 = vmatprep.subr.mxu1 %v11753_v0  ;;  %11098 = vmatprep.subr.mxu0 %v11753_v0 }
0x2359   :  { %v4352_v62 = vpop.permute.xlu0 %4351  ;;  %11081 = vmatmul.mubr.msk.f32.vlgmr.msra.gmra.mxu1 %vm726_vm7, %v12552_v63 }
0x235a   :  { %11091 = vmatmul.mubr.msk.f32.vlgmr.msra.gmra.mxu0 %vm726_vm7, %v4352_v62  ;;  %11085 = vmatprep.mubr.msk.f32.mxu1 %vm11755_vm0, %v11753_v0 }
0x235b   :  { %11099 = vmatpush3.msra.mxu0 %v12214_v50  ;;  %11100 = vmatprep.mubr.msk.f32.mxu0 %vm11755_vm0, %v11753_v0 }
0x235c   :  { %11108 = vmatprep.subr.mxu0 %v11753_v0 }
0x2419   :  { %v4259_v29 = vpop.f32.mrf.mxu1 }
0x241a   :  { %v4260_v31 = vadd.f32 %v12574_v25, %v4259_v29  ;;  %v4425_v15 = vpop.f32.mrf.mxu0 }
0x241b   :  { %v4426_v37 = vadd.f32 %v12574_v25, %v4425_v15  ;;  %v11082_v32 = vpop.f32.mrf.mxu1 }
0x241c   :  { %v11092_v28 = vpop.f32.mrf.mxu0  ;;  %v4263_v22 = vsel %vm803_vm8, %v4260_v31, -inf }
0x241d   :  { %4264 = vmax.xlane.f32.xlu0 %v4263_v22  ;;  %v4429_v50 = vsel %vm803_vm8, %v4426_v37, -inf }
0x241e   :  { %4430 = vmax.xlane.f32.xlu1 %v4429_v50 }
0x242f   :  { %4440 = vrot.lane.b32.xlu1 %v12552_v63, %s13477_s18 }
0x2433   :  { %4665 = vrot.lane.b32.xlu1 %v12552_v63, %s13458_s9  ;;  %s11793_s9 = smov 28  }
0x2434   :  { %s12679_s4 = sld [smem:[%s13445_s0 + %s11793_s9]]  }
0x2437   :  { %4663 = vrot.lane.b32.xlu1 %v12552_v63, %s13462_s2 }
0x243a   :  { %13481 = sst [smem:[#allocation5_spill]] %s12679_s4 }
0x24a6   :  { %v4265_v53 = vpop.xlane.xlu0 %4264 }
0x24a7   :  { %v4266_v9 = vsub.f32 %v4260_v31, %v4265_v53  ;;  %v4431_v18 = vpop.xlane.xlu1 %4430 }
0x24a8   :  { %v4432_v20 = vsub.f32 %v4426_v37, %v4431_v18 }
0x24a9   :  { %v4267_v21 = vmul.f32 1.442695, %v4266_v9 }
0x24aa   :  { %v4433_v23 = vmul.f32 1.442695, %v4432_v20 }
0x24ab   :  { %11638 = vpow2.f32 %v4267_v21  ;;  %v4441_v48 = vpop.permute.xlu1 %4440 }
0x24ac   :  { %11640 = vpow2.f32 %v4433_v23 }
0x24af   :  { %v4666_v42 = vpop.permute.xlu1 %4665 }
0x24b8   :  { %v11639_v41 = vpop.eup %11638 }
0x24b9   :  { %v4269_v19 = vsel %vm803_vm8, %v11639_v41, 0.0  ;;  %v11641_v44 = vpop.eup %11640 }
0x24ba   :  { %4270 = vadd.xlane.f32.xlu0 %v4269_v19  ;;  %v4435_v24 = vsel %vm803_vm8, %v11641_v44, 0.0 }
0x24be   :  { %4436 = vadd.xlane.f32.xlu0 %v4435_v24 }
0x24d4   :  { %4274 = vrot.lane.b32.xlu0 %v12552_v63, %s13478_s22 }
0x2543   :  { %v4271_v30 = vpop.xlane.xlu0 %4270 }
0x2544   :  { %11642 = vrcp.f32 %v4271_v30 }
0x2547   :  { %v4437_v46 = vpop.xlane.xlu0 %4436 }
0x2548   :  { %11644 = vrcp.f32 %v4437_v46 }
0x254b   :  { %v4275_v2 = vpop.permute.xlu0 %4274 }
0x254c   :  { %11084 = vmatpush3.msk.msra.mxu1 %vm821_vm9, %v4275_v2 }
0x254d   :  { %11093 = vmatprep.subr.mxu1 %v11753_v0 }
0x2551   :  { %v11643_v47 = vpop.eup %11642 }
0x2552   :  { %v4273_v33 = vmul.f32 %v11643_v47, %v11639_v41 }
0x2554   :  { %11086 = vmatmul.mubr.msk.f32.vlgmr.msra.gmra.mxu1 %vm817_vm10, %v4273_v33 }
0x2555   :  { %v11645_v36 = vpop.eup %11644  ;;  %11094 = vmatpush3.msk.msra.mxu1 %vm821_vm9, %v4441_v48  ;;  %11095 = vmatprep.mubr.msk.f32.mxu1 %vm11755_vm0, %v11753_v0 }
0x2556   :  { %v4439_v38 = vmul.f32 %v11645_v36, %v11641_v44  ;;  %11103 = vmatprep.subr.mxu1 %v11753_v0 }
0x2558   :  { %11096 = vmatmul.mubr.msk.f32.vlgmr.msra.gmra.mxu1 %vm817_vm10, %v4439_v38 }
0x2559   :  { %11104 = vmatpush3.msra.mxu1 %v12210_v43  ;;  %11105 = vmatprep.mubr.msk.f32.mxu1 %vm11755_vm0, %v11753_v0  ;;  %v4664_v43 = vpop.permute.xlu1 %4663 }
0x255a   :  { %11113 = vmatprep.subr.mxu1 %v11753_v0 }
0x2614   :  { %v4347_v39 = vpop.f32.mrf.mxu1 }
0x2615   :  { %11106 = vmatmul.mubr.msk.f32.vlgmr.msra.gmra.mxu1 %vm726_vm7, %v4347_v39 }
0x2616   :  { %v11087_v51 = vpop.f32.mrf.mxu1  ;;  %11115 = vmatprep.mubr.msk.f32.mxu1 %vm11755_vm0, %v11753_v0 }
0x2618   :  { %v4513_v52 = vpop.f32.mrf.mxu1 }
0x2619   :  { %11101 = vmatmul.mubr.msk.f32.vlgmr.msra.gmra.mxu0 %vm726_vm7, %v4513_v52 }
0x261a   :  { %11109 = vmatpush3.xpose.msk.msra.mxu0 %vm726_vm7, %v4666_v42  ;;  %v11097_v58 = vpop.f32.mrf.mxu1  ;;  %11110 = vmatprep.mubr.msk.f32.mxu0 %vm11755_vm0, %v11753_v0 }
0x261b   :  { %11118 = vmatprep.subr.mxu0 %v11753_v0 }
0x261d   :  { %11111 = vmatmul.mubr.msk.f32.vlgmr.msra.gmra.mxu0 %vm726_vm7, %v4664_v43 }
0x261e   :  { %11119 = vmatpush3.msra.mxu0 %v12250_v27  ;;  %11120 = vmatprep.mubr.msk.f32.mxu0 %vm11755_vm0, %v11753_v0 }
0x261f   :  { %11128 = vmatprep.subr.mxu0 %v11753_v0 }
0x26d5   :  { %v4659_v57 = vpop.f32.mrf.mxu1 }
0x26d7   :  { %v11107_v56 = vpop.f32.mrf.mxu1 }
0x26d9   :  { %v4586_v26 = vpop.f32.mrf.mxu0 }
0x26da   :  { %v4660_v60 = vadd.f32 %v4659_v57, %v4586_v26 }
0x26db   :  { %v11102_v5 = vpop.f32.mrf.mxu0 }
0x26dd   :  { %v4737_v55 = vpop.f32.mrf.mxu0 }
0x26de   :  { %v4738_v59 = vadd.f32 %v12574_v25, %v4737_v55 }
0x26df   :  { %v11112_v62 = vpop.f32.mrf.mxu0 }
0x26e0   :  { %v4741_v29 = vsel %vm803_vm8, %v4738_v59, -inf }
0x26e1   :  { %4742 = vmax.xlane.f32.xlu0 %v4741_v29 }
0x26f7   :  { %4752 = vrot.lane.b32.xlu0 %v12552_v63, %s13479_s26 }
0x26fb   :  { %4903 = vrot.lane.b32.xlu0 %v12552_v63, %s13456_s10  ;;  %s13480_s10 = smov 40  }
0x276a   :  { %v4743_v27 = vpop.xlane.xlu0 %4742 }
0x276b   :  { %v4744_v31 = vsub.f32 %v4738_v59, %v4743_v27 }
0x276d   :  { %v4745_v15 = vmul.f32 1.442695, %v4744_v31 }
0x276e   :  { %v4753_v37 = vpop.permute.xlu0 %4752 }
0x276f   :  { %11646 = vpow2.f32 %v4745_v15  ;;  %11114 = vmatpush3.msk.msra.mxu1 %vm821_vm9, %v4753_v37  ;;  %v12708_v37 = vld [vmem:[%s11880_s29 + $0x38] sm:$0xff] }
0x2770   :  { %11123 = vmatprep.subr.mxu1 %v11753_v0 }
0x2772   :  { %v4904_v18 = vpop.permute.xlu0 %4903 }
0x277c   :  { %v11647_v32 = vpop.eup %11646 }
0x277d   :  { %v4747_v28 = vsel %vm803_vm8, %v11647_v32, 0.0 }
0x277e   :  { %4748 = vadd.xlane.f32.xlu1 %v4747_v28  ;;  %v12716_v28 = vld [vmem:[%s11880_s29 + $0x30] sm:$0xff] }
0x278f   :  { %4905 = vrot.lane.b32.xlu1 %v12552_v63, %s13476_s14 }
0x2807   :  { %v4749_v22 = vpop.xlane.xlu1 %4748 }
0x2808   :  { %11648 = vrcp.f32 %v4749_v22 }
0x280b   :  { %v4906_v9 = vpop.permute.xlu1 %4905 }
0x2815   :  { %v11649_v50 = vpop.eup %11648 }
0x2816   :  { %v4751_v53 = vmul.f32 %v11649_v50, %v11647_v32  ;;  %v12711_v32 = vld [vmem:[%s12696_s20] ss:$0 sm:$0xff] }
0x2817   :  { %v12732_v50 = vld [vmem:[%s11880_s29 + $0x20] sm:$0xff] }
0x2818   :  { %11116 = vmatmul.mubr.msk.f32.vlgmr.msra.gmra.mxu1 %vm817_vm10, %v4751_v53 }
0x2819   :  { %11124 = vmatpush3.xpose.msk.msra.mxu1 %vm726_vm7, %v4906_v9  ;;  %11125 = vmatprep.mubr.msk.f32.mxu1 %vm11755_vm0, %v11753_v0  ;;  %v12740_v9 = vld [vmem:[%s11864_s25 + $0x38] sm:$0xff] }
0x281a   :  { %11133 = vmatprep.subr.mxu1 %v11753_v0 }
0x281c   :  { %11126 = vmatmul.mubr.msk.f32.vlgmr.msra.gmra.mxu1 %vm726_vm7, %v4904_v18  ;;  %v12747_v18 = vld [vmem:[%s11864_s25 + $0x30] sm:$0xff] }
0x281d   :  { %11134 = vmatpush3.msra.mxu1 %v12265_v54  ;;  %11135 = vmatprep.mubr.msk.f32.mxu1 %vm11755_vm0, %v11753_v0 }
0x281e   :  { %11149 = vmatprep.subr.mxu1 %v11753_v0 }
0x28d8   :  { %v4825_v20 = vpop.f32.mrf.mxu1 }
0x28d9   :  { %11121 = vmatmul.mubr.msk.f32.vlgmr.msra.gmra.mxu0 %vm726_vm7, %v4825_v20  ;;  %v12754_v20 = vld [vmem:[%s11864_s25 + $0x28] sm:$0xff] }
0x28da   :  { %v11117_v21 = vpop.f32.mrf.mxu1  ;;  %11130 = vmatprep.mubr.msk.f32.mxu0 %vm11755_vm0, %v11753_v0 }
0x28db   :  { %v12759_v21 = vld [vmem:[%s11864_s25 + $0x20] sm:$0xff]  ;;  %s13482_s25 = smov 120  }
0x28dc   :  { %v4977_v23 = vpop.f32.mrf.mxu1 }
0x28dd   :  { %v4978_v41 = vadd.f32 %v12574_v25, %v4977_v23  ;;  %v11747_v23 = vld [vmem:[%s11889_s3] sm:$0x3f] }
0x28de   :  { %v11127_v19 = vpop.f32.mrf.mxu1 }
0x28df   :  { %v4981_v44 = vsel %vm803_vm8, %v4978_v41, -inf }
0x28e0   :  { %4982 = vmax.xlane.f32.xlu1 %v4981_v44 }
0x2969   :  { %v4983_v54 = vpop.xlane.xlu1 %4982 }
0x296a   :  { %v4984_v24 = vsub.f32 %v4978_v41, %v4983_v54 }
0x296c   :  { %v4985_v30 = vmul.f32 1.442695, %v4984_v24 }
0x296e   :  { %11650 = vpow2.f32 %v4985_v30  ;;  %v12771_v30 = vld [vmem:[%s11963_s24 + $0x1] ss:$0 sm:$0xff]  ;;  %s13485_s24 = smov 96  }
0x297b   :  { %v11651_v46 = vpop.eup %11650 }
0x297c   :  { %v4987_v2 = vsel %vm803_vm8, %v11651_v46, 0.0 }
0x297d   :  { %4988 = vadd.xlane.f32.xlu0 %v4987_v2 }
0x2993   :  { %4992 = vrot.lane.b32.xlu0 %v12552_v63, %s13480_s10 }
0x2999   :  { %v4898_v47 = vpop.f32.mrf.mxu0 }
0x299a   :  { %v4902_v33 = vadd.f32 %v4898_v47, %v4660_v60 }
0x299b   :  { %v11122_v48 = vpop.f32.mrf.mxu0 }
0x2a06   :  { %v4989_v36 = vpop.xlane.xlu0 %4988 }
0x2a07   :  { %11652 = vrcp.f32 %v4989_v36 }
0x2a0a   :  { %v4993_v25 = vpop.permute.xlu0 %4992 }
0x2a0b   :  { %11129 = vmatpush3.msk.msra.mxu0 %vm821_vm9, %v4993_v25  ;;  %v12779_v25 = vld [vmem:[%s11946_s19 + $0x1] ss:$0 sm:$0xff]  ;;  %s13484_s19 = smov 112  }
0x2a0c   :  { %11138 = vmatprep.subr.mxu0 %v11753_v0 }
0x2a14   :  { %v11653_v38 = vpop.eup %11652 }
0x2a15   :  { %v4991_v39 = vmul.f32 %v11653_v38, %v11651_v46 }
0x2a17   :  { %11131 = vmatmul.mubr.msk.f32.vlgmr.msra.gmra.mxu0 %vm817_vm10, %v4991_v39 }
0x2a18   :  { %11139 = vmatpush3.msra.mxu0 %v12297_v7  ;;  %11146 = vmatprep.mubr.msk.f32.mxu0 %vm11755_vm0, %v11753_v0 }
0x2a19   :  { %11140 = vmatprep.subr.mxu0 %v11753_v0 }
0x2a1a   :  { %11141 = vmatpush3.msra.mxu0 %v12302_v45  ;;  %v12682_v45 = vld [vmem:[%s12679_s4] ss:$0 sm:$0xff]  ;;  %s11795_s4 = smov 30  }
0x2a1b   :  { %11142 = vmatprep.subr.mxu0 %v11753_v0  ;;  %s12701_s11 = sld [smem:[%s13445_s0 + %s11795_s4]]   ;;  %s13486_s4 = smov 80  }
0x2a1c   :  { %11143 = vmatpush3.msra.mxu0 %v12307_v34 }
0x2a1d   :  { %11144 = vmatprep.subr.mxu0 %v11753_v0 }
0x2a1e   :  { %11145 = vmatpush3.msra.mxu0 %v12312_v35 }
0x2a1f   :  { %11168 = vmatprep.subr.mxu0 %v11753_v0 }
0x2a21   :  { %v12728_v22 = vld [vmem:[%s12701_s11] ss:$0 sm:$0xff] }
0x2ad7   :  { %v5065_v63 = vpop.f32.mrf.mxu0 }
0x2ad8   :  { %11136 = vmatmul.mubr.msk.f32.vlgmr.msra.gmra.mxu1 %vm726_vm7, %v5065_v63 }
0x2ad9   :  { %v11132_v7 = vpop.f32.mrf.mxu0  ;;  %11150 = vmatpush3.msra.mxu1 %v12375_v40  ;;  %11165 = vmatprep.mubr.msk.f32.mxu1 %vm11755_vm0, %v11753_v0 }
0x2ada   :  { %11151 = vmatprep.subr.mxu1 %v11753_v0 }
0x2adb   :  { %11152 = vmatpush3.msra.mxu1 %v12380_v49  ;;  %v2957_v49 = vadd.f32 %v12682_v45, %v12450_v3 }
0x2adc   :  { %11153 = vmatprep.subr.mxu1 %v11753_v0 }
0x2add   :  { %11154 = vmatpush3.msra.mxu1 %v12385_v11 }
0x2ade   :  { %11155 = vmatprep.subr.mxu1 %v11753_v0 }
0x2adf   :  { %11156 = vmatpush3.msra.mxu1 %v12390_v12 }
0x2ae0   :  { %11157 = vmatprep.subr.mxu1 %v11753_v0 }
0x2ae1   :  { %11158 = vmatpush3.msra.mxu1 %v12395_v13 }
0x2ae2   :  { %11159 = vmatprep.subr.mxu1 %v11753_v0 }
0x2ae3   :  { %11160 = vmatpush3.msra.mxu1 %v12400_v14  ;;  %v2960_v14 = vadd.f32 %v2957_v49, %v12334_v4 }
0x2ae4   :  { %11161 = vmatprep.subr.mxu1 %v11753_v0 }
0x2ae5   :  { %11162 = vmatpush3.msra.mxu1 %v12405_v61  ;;  %v2961_v61 = vsel %vm223_vm5, %v2960_v14, 0.0 }
0x2ae6   :  { %11163 = vmatprep.subr.mxu1 %v11753_v0 }
0x2ae7   :  { %11164 = vmatpush3.msra.mxu1 %v12410_v16 }
0x2ae8   :  { %11190 = vmatprep.subr.mxu1 %v11753_v0 }
0x2b98   :  { %v5138_v34 = vpop.f32.mrf.mxu1 }
0x2b99   :  { %v5142_v35 = vadd.f32 %v5138_v34, %v4902_v33 }
0x2b9a   :  { %v11137_v40 = vpop.f32.mrf.mxu1 }
0x2b9b   :  { %v5143_v11 = vadd.f32 %v12281_v6, %v5142_v35 }
0x2b9d   :  { %v5144_v12 = vadd.f32 %v5143_v11, %v12545_v10 }
0x2b9f   :  { %v5145_v13 = vsel %vm223_vm5, %v5144_v12, 0.0 }
0x2ba0   :  { %5146 = vadd.xlane.f32.xlu1 %v5145_v13 }
0x2ba4   :  { %2962 = vadd.xlane.f32.xlu1 %v2961_v61 }
0x2c29   :  { %v5147_v16 = vpop.xlane.xlu1 %5146 }
0x2c2a   :  { %v5148_v42 = vmul.f32 0.03125, %v5147_v16 }
0x2c2c   :  { %v5149_v51 = vsub.f32 %v5144_v12, %v5148_v42 }
0x2c2d   :  { %v2963_v52 = vpop.xlane.xlu1 %2962 }
0x2c2e   :  { %v2964_v58 = vmul.f32 0.03125, %v2963_v52  ;;  %v5150_v43 = vmul.f32 %v5149_v51, %v5149_v51 }
0x2c30   :  { %v2965_v57 = vsub.f32 %v2960_v14, %v2964_v58  ;;  %v5151_v3 = vsel %vm223_vm5, %v5150_v43, 0.0  ;;  %v12804_v14 = vld [vmem:[%s11983_s30] ss:$0 sm:$0xff] }
0x2c31   :  { %5152 = vadd.xlane.f32.xlu1 %v5151_v3 }
0x2c32   :  { %v2966_v6 = vmul.f32 %v2965_v57, %v2965_v57 }
0x2c34   :  { %v2967_v10 = vsel %vm223_vm5, %v2966_v6, 0.0 }
0x2c35   :  { %2968 = vadd.xlane.f32.xlu1 %v2967_v10 }
0x2cba   :  { %v5153_v56 = vpop.xlane.xlu1 %5152 }
0x2cbb   :  { %v5154_v4 = vmul.f32 0.03125, %v5153_v56 }
0x2cbd   :  { %v5155_v26 = vadd.f32 1e-12, %v5154_v4 }
0x2cbe   :  { %v2969_v60 = vpop.xlane.xlu1 %2968 }
0x2cbf   :  { %11654 = vrsqrt.f32 %v5155_v26  ;;  %v2970_v5 = vmul.f32 0.03125, %v2969_v60 }
0x2cc1   :  { %v2971_v55 = vadd.f32 1e-12, %v2970_v5 }
0x2cc3   :  { %11656 = vrsqrt.f32 %v2971_v55 }
0x2ccc   :  { %v11655_v59 = vpop.eup %11654 }
0x2ccd   :  { %v5157_v62 = vmul.f32 %v11655_v59, %v5149_v51 }
0x2ccf   :  { %v5158_v29 = vmul.f32 %v12327_v8, %v5157_v62  ;;  %v12723_v8 = vld [vmem:[%s11880_s29 + $0x28] sm:$0xff]  ;;  %s13483_s29 = smov 88  }
0x2cd0   :  { %v11657_v27 = vpop.eup %11656 }
0x2cd1   :  { %v2973_v31 = vmul.f32 %v11657_v27, %v2965_v57  ;;  %v12705_v15 = vadd.f32 %v12330_v1, %v5158_v29 }
0x2cd3   :  { %11147 = vmatmul.mubr.msk.f32.vlgmr.msra.gmra.mxu0 %vm567_vm6, %v12705_v15  ;;  %v2980_v1 = vmul.f32 %v12711_v32, %v2973_v31 }
0x2cd4   :  { %11169 = vmatpush3.msra.mxu0 %v12708_v37  ;;  %11176 = vmatprep.mubr.msk.f32.mxu0 %vm11755_vm0, %v11753_v0 }
0x2cd5   :  { %11170 = vmatprep.subr.mxu0 %v11753_v0  ;;  %v12737_v53 = vadd.f32 %v12728_v22, %v2980_v1 }
0x2cd6   :  { %11171 = vmatpush3.msra.mxu0 %v12716_v28 }
0x2cd7   :  { %11172 = vmatprep.subr.mxu0 %v11753_v0 }
0x2cd8   :  { %11173 = vmatpush3.msra.mxu0 %v12723_v8 }
0x2cd9   :  { %11174 = vmatprep.subr.mxu0 %v11753_v0 }
0x2cda   :  { %11175 = vmatpush3.msra.mxu0 %v12732_v50 }
0x2cdb   :  { %11177 = vmatmul.mubr.msk.f32.vlgmr.msra.gmra.mxu0 %vm567_vm6, %v12737_v53  ;;  %11179 = vmatprep.subr.mxu0 %v11753_v0 }
0x2cdc   :  { %11180 = vmatpush3.msra.mxu0 %v12740_v9  ;;  %11187 = vmatprep.mubr.msk.f32.mxu0 %vm11755_vm0, %v11753_v0 }
0x2cdd   :  { %11181 = vmatprep.subr.mxu0 %v11753_v0 }
0x2cde   :  { %11182 = vmatpush3.msra.mxu0 %v12747_v18 }
0x2cdf   :  { %11183 = vmatprep.subr.mxu0 %v11753_v0 }
0x2ce0   :  { %11184 = vmatpush3.msra.mxu0 %v12754_v20 }
0x2ce1   :  { %11185 = vmatprep.subr.mxu0 %v11753_v0 }
0x2ce2   :  { %11186 = vmatpush3.msra.mxu0 %v12759_v21 }
0x2ce3   :  { %11188 = vmatmul.mubr.msk.f32.vlgmr.msra.gmra.mxu0 %vm567_vm6, %v11747_v23  ;;  %11200 = vmatprep.subr.mxu0 %v11753_v0 }
0x2ce4   :  { %11202 = vmatprep.mubr.msk.f32.mxu0 %vm11755_vm0, %v11753_v0 }
0x2d93   :  { %v5229_v41 = vpop.f32.mrf.mxu0 }
0x2d94   :  { %v5230_v19 = vadd.f32 %v12420_v17, %v5229_v41 }
0x2d95   :  { %v11148_v44 = vpop.f32.mrf.mxu0 }
0x2d96   :  { %v5233_v54 = vmul.f32 %v5230_v19, %v5230_v19  ;;  %v12836_v44 = vld [vmem:[%s12010_s8 + $0x28] sm:$0xff] }
0x2d98   :  { %v5234_v24 = vmul.f32 %v5233_v54, %v5230_v19 }
0x2d9a   :  { %v5235_v46 = vmul.f32 0.044715, %v5234_v24 }
0x2d9b   :  { %v5471_v2 = vpop.f32.mrf.mxu0 }
0x2d9c   :  { %v5236_v47 = vadd.f32 %v5235_v46, %v5230_v19  ;;  %v12774_v33 = vadd.f32 %v12771_v30, %v5471_v2 }
0x2d9d   :  { %v11178_v48 = vpop.f32.mrf.mxu0 }
0x2d9e   :  { %v5237_v36 = vmul.f32 0.7978846, %v5236_v47  ;;  %5715 = vrot.lane.b32.xlu0 %v12774_v33, %s13482_s25 }
0x2da0   :  { %11658 = vtanh.f32 %v5237_v36 }
0x2da3   :  { %v5547_v17 = vpop.f32.mrf.mxu0 }
0x2da4   :  { %v12782_v38 = vadd.f32 %v12779_v25, %v5547_v17 }
0x2da5   :  { %v11189_v39 = vpop.f32.mrf.mxu0 }
0x2da6   :  { %5717 = vrot.lane.b32.xlu1 %v12782_v38, %s13482_s25 }
0x2dad   :  { %v11659_v63 = vpop.eup %11658 }
0x2dae   :  { %v5239_v7 = vadd.f32 1.0, %v11659_v63 }
0x2db0   :  { %v5240_v34 = vmul.f32 0.5, %v5239_v7 }
0x2db2   :  { %v5241_v35 = vmul.f32 %v5240_v34, %v5230_v19  ;;  %v12831_v19 = vld [vmem:[%s12010_s8 + $0x20] sm:$0xff] }
0x2db4   :  { %11166 = vmatmul.mubr.msk.f32.vlgmr.msra.gmra.mxu1 %vm2886_vm11, %v5241_v35 }
0x2db5   :  { %11191 = vmatpush3.xpose.msk.msra.mxu1 %vm726_vm7, %v12782_v38  ;;  %11192 = vmatprep.mubr.msk.f32.mxu1 %vm11755_vm0, %v11753_v0 }
0x2db6   :  { %11195 = vmatprep.subr.mxu1 %v11753_v0 }
0x2db8   :  { %11193 = vmatmul.mubr.msk.f32.vlgmr.msra.gmra.mxu1 %vm726_vm7, %v12774_v33 }
0x2db9   :  { %11197 = vmatprep.mubr.msk.f32.mxu1 %vm11755_vm0, %v11753_v0 }
0x2e10   :  { %v5716_v49 = vpop.permute.xlu0 %5715 }
0x2e18   :  { %v5718_v40 = vpop.permute.xlu1 %5717 }
0x2e19   :  { %11201 = vmatpush3.xpose.msk.msra.mxu0 %vm726_vm7, %v5718_v40 }
0x2e1a   :  { %11210 = vmatprep.subr.mxu0 %v11753_v0 }
0x2e1c   :  { %11203 = vmatmul.mubr.msk.f32.vlgmr.msra.gmra.mxu0 %vm726_vm7, %v5716_v49 }
0x2e1d   :  { %11212 = vmatprep.mubr.msk.f32.mxu0 %vm11755_vm0, %v11753_v0  ;;  %11211 = vmatpush3.msra.mxu0 %v12836_v44 }
0x2e1e   :  { %11220 = vmatprep.subr.mxu0 %v11753_v0 }
0x2e74   :  { %v12801_v11 = vpop.f32.mrf.mxu1 }
0x2e76   :  { %v11167_v12 = vpop.f32.mrf.mxu1 }
0x2e78   :  { %v5623_v13 = vpop.f32.mrf.mxu1 }
0x2e79   :  { %v5624_v61 = vadd.f32 %v12804_v14, %v5623_v13 }
0x2e7a   :  { %v11194_v16 = vpop.f32.mrf.mxu1 }
0x2e7b   :  { %v5627_v42 = vsel %vm803_vm8, %v5624_v61, -inf }
0x2e7c   :  { %5628 = vmax.xlane.f32.xlu0 %v5627_v42 }
0x2edc   :  { %v5789_v51 = vpop.f32.mrf.mxu0 }
0x2edd   :  { %v5790_v52 = vadd.f32 %v12804_v14, %v5789_v51 }
0x2ede   :  { %v11204_v58 = vpop.f32.mrf.mxu0 }
0x2edf   :  { %v5793_v43 = vsel %vm803_vm8, %v5790_v52, -inf }
0x2ee0   :  { %5794 = vmax.xlane.f32.xlu1 %v5793_v43 }
0x2ef1   :  { %5804 = vrot.lane.b32.xlu1 %v12782_v38, %s13483_s29 }
0x2ef5   :  { %6027 = vrot.lane.b32.xlu1 %v12774_v33, %s13484_s19 }
0x2f05   :  { %v5629_v57 = vpop.xlane.xlu0 %5628 }
0x2f06   :  { %v5630_v3 = vsub.f32 %v5624_v61, %v5629_v57 }
0x2f08   :  { %v5631_v6 = vmul.f32 1.442695, %v5630_v3  ;;  %v12871_v3 = vld [vmem:[%s12010_s8 + $0x30] sm:$0xff] }
0x2f0a   :  { %11660 = vpow2.f32 %v5631_v6 }
0x2f17   :  { %v11661_v10 = vpop.eup %11660 }
0x2f18   :  { %v5633_v56 = vsel %vm803_vm8, %v11661_v10, 0.0 }
0x2f19   :  { %5634 = vadd.xlane.f32.xlu0 %v5633_v56 }
0x2f69   :  { %v5795_v4 = vpop.xlane.xlu1 %5794 }
0x2f6a   :  { %v5796_v26 = vsub.f32 %v5790_v52, %v5795_v4 }
0x2f6c   :  { %v5797_v60 = vmul.f32 1.442695, %v5796_v26 }
0x2f6d   :  { %v5805_v1 = vpop.permute.xlu1 %5804 }
0x2f6e   :  { %11662 = vpow2.f32 %v5797_v60 }
0x2f71   :  { %v6028_v48 = vpop.permute.xlu1 %6027 }
0x2f7b   :  { %v11663_v5 = vpop.eup %11662 }
0x2f7c   :  { %v5799_v55 = vsel %vm803_vm8, %v11663_v5, 0.0 }
0x2f7d   :  { %5800 = vadd.xlane.f32.xlu0 %v5799_v55 }
0x2f93   :  { %5638 = vrot.lane.b32.xlu0 %v12782_v38, %s13485_s24 }
0x2f97   :  { %6029 = vrot.lane.b32.xlu0 %v12782_v38, %s13484_s19 }
0x2fa2   :  { %v5635_v59 = vpop.xlane.xlu0 %5634 }
0x2fa3   :  { %11664 = vrcp.f32 %v5635_v59 }
0x2fb0   :  { %v11665_v29 = vpop.eup %11664 }
0x2fb1   :  { %v5637_v31 = vmul.f32 %v11665_v29, %v11661_v10 }
0x3006   :  { %v5801_v62 = vpop.xlane.xlu0 %5800 }
0x3007   :  { %11666 = vrcp.f32 %v5801_v62 }
0x300a   :  { %v5639_v27 = vpop.permute.xlu0 %5638 }
0x300b   :  { %11196 = vmatpush3.msk.msra.mxu1 %vm821_vm9, %v5639_v27  ;;  %v12884_v27 = vld [vmem:[%s12010_s8 + $0x38] sm:$0xff]  ;;  %s13488_s8 = sld [smem:[#allocation2_spill]] }
0x300c   :  { %11198 = vmatmul.mubr.msk.f32.vlgmr.msra.gmra.mxu1 %vm817_vm10, %v5637_v31  ;;  %11205 = vmatprep.subr.mxu1 %v11753_v0 }
0x300d   :  { %11206 = vmatpush3.msk.msra.mxu1 %vm821_vm9, %v5805_v1  ;;  %11207 = vmatprep.mubr.msk.f32.mxu1 %vm11755_vm0, %v11753_v0 }
0x300e   :  { %11215 = vmatprep.subr.mxu1 %v11753_v0  ;;  %v6030_v2 = vpop.permute.xlu0 %6029 }
0x3014   :  { %v11667_v23 = vpop.eup %11666 }
0x3015   :  { %v5803_v41 = vmul.f32 %v11667_v23, %v11663_v5 }
0x3017   :  { %11208 = vmatmul.mubr.msk.f32.vlgmr.msra.gmra.mxu1 %vm817_vm10, %v5803_v41 }
0x3018   :  { %11217 = vmatprep.mubr.msk.f32.mxu1 %vm11755_vm0, %v11753_v0  ;;  %11216 = vmatpush3.msra.mxu1 %v12831_v19 }
0x3019   :  { %11225 = vmatprep.subr.mxu1 %v11753_v0 }
0x30cc   :  { %v5711_v54 = vpop.f32.mrf.mxu1 }
0x30cd   :  { %11218 = vmatmul.mubr.msk.f32.vlgmr.msra.gmra.mxu1 %vm726_vm7, %v5711_v54 }
0x30ce   :  { %v11199_v24 = vpop.f32.mrf.mxu1  ;;  %11227 = vmatprep.mubr.msk.f32.mxu1 %vm11755_vm0, %v11753_v0 }
0x30d7   :  { %v5877_v46 = vpop.f32.mrf.mxu1 }
0x30d8   :  { %11213 = vmatmul.mubr.msk.f32.vlgmr.msra.gmra.mxu0 %vm726_vm7, %v5877_v46 }
0x30d9   :  { %11221 = vmatpush3.xpose.msk.msra.mxu0 %vm726_vm7, %v6030_v2  ;;  %v11209_v47 = vpop.f32.mrf.mxu1  ;;  %11222 = vmatprep.mubr.msk.f32.mxu0 %vm11755_vm0, %v11753_v0  ;;  %v12897_v2 = vld [vmem:[%s12086_s15 + $0x1] ss:$0 sm:$0xff]  ;;  %s13489_s15 = sld [smem:[#allocation3_spill]] }
0x30da   :  { %11230 = vmatprep.subr.mxu0 %v11753_v0 }
0x30dc   :  { %11223 = vmatmul.mubr.msk.f32.vlgmr.msra.gmra.mxu0 %vm726_vm7, %v6028_v48 }
0x30dd   :  { %11232 = vmatprep.mubr.msk.f32.mxu0 %vm11755_vm0, %v11753_v0  ;;  %11231 = vmatpush3.msra.mxu0 %v12871_v3 }
0x30de   :  { %11240 = vmatprep.subr.mxu0 %v11753_v0 }
0x318d   :  { %v6023_v36 = vpop.f32.mrf.mxu1 }
0x318f   :  { %v11219_v17 = vpop.f32.mrf.mxu1 }
0x3198   :  { %v5950_v39 = vpop.f32.mrf.mxu0 }
0x3199   :  { %v6024_v63 = vadd.f32 %v6023_v36, %v5950_v39 }
0x319a   :  { %v11214_v7 = vpop.f32.mrf.mxu0 }
0x319c   :  { %v6101_v34 = vpop.f32.mrf.mxu0 }
0x319d   :  { %v6102_v35 = vadd.f32 %v12804_v14, %v6101_v34 }
0x319e   :  { %v11224_v40 = vpop.f32.mrf.mxu0 }
0x319f   :  { %v6105_v49 = vsel %vm803_vm8, %v6102_v35, -inf }
0x31a0   :  { %6106 = vmax.xlane.f32.xlu0 %v6105_v49 }
0x31b6   :  { %6116 = vrot.lane.b32.xlu0 %v12782_v38, %s13486_s4 }
0x31ba   :  { %6267 = vrot.lane.b32.xlu0 %v12774_v33, %s13487_s12 }
0x3229   :  { %v6107_v12 = vpop.xlane.xlu0 %6106 }
0x322a   :  { %v6108_v13 = vsub.f32 %v6102_v35, %v6107_v12  ;;  %v12904_v12 = vld [vmem:[%s12098_s21 + $0x38] sm:$0xff] }
0x322c   :  { %v6109_v61 = vmul.f32 1.442695, %v6108_v13  ;;  %v12908_v13 = vld [vmem:[%s12098_s21 + $0x30] sm:$0xff] }
0x322d   :  { %v6117_v16 = vpop.permute.xlu0 %6116 }
0x322e   :  { %11668 = vpow2.f32 %v6109_v61  ;;  %11226 = vmatpush3.msk.msra.mxu1 %vm821_vm9, %v6117_v16  ;;  %v12917_v61 = vld [vmem:[%s12098_s21 + $0x20] sm:$0xff] }
0x322f   :  { %11235 = vmatprep.subr.mxu1 %v11753_v0 }
0x3231   :  { %v6268_v57 = vpop.permute.xlu0 %6267 }
0x323b   :  { %v11669_v42 = vpop.eup %11668 }
0x323c   :  { %v6111_v51 = vsel %vm803_vm8, %v11669_v42, 0.0 }
0x323d   :  { %6112 = vadd.xlane.f32.xlu1 %v6111_v51 }
0x324e   :  { %6269 = vrot.lane.b32.xlu1 %v12782_v38, %s13487_s12 }
0x32c6   :  { %v6113_v52 = vpop.xlane.xlu1 %6112 }
0x32c7   :  { %11670 = vrcp.f32 %v6113_v52 }
0x32ca   :  { %v6270_v43 = vpop.permute.xlu1 %6269 }
0x32d4   :  { %v11671_v33 = vpop.eup %11670 }
0x32d5   :  { %v6115_v58 = vmul.f32 %v11671_v33, %v11669_v42  ;;  %v12924_v33 = vld [vmem:[%s12123_s27 + $0x1] ss:$0 sm:$0xff] }
0x32d7   :  { %11228 = vmatmul.mubr.msk.f32.vlgmr.msra.gmra.mxu1 %vm817_vm10, %v6115_v58 }
0x32d8   :  { %11236 = vmatpush3.xpose.msk.msra.mxu1 %vm726_vm7, %v6270_v43  ;;  %11237 = vmatprep.mubr.msk.f32.mxu1 %vm11755_vm0, %v11753_v0  ;;  %v12927_v43 = vld [vmem:[%s12128_s7 + $0x1] ss:$0 sm:$0xff] }
0x32d9   :  { %11245 = vmatprep.subr.mxu1 %v11753_v0 }
0x32db   :  { %11238 = vmatmul.mubr.msk.f32.vlgmr.msra.gmra.mxu1 %vm726_vm7, %v6268_v57 }
0x32dc   :  { %11247 = vmatprep.mubr.msk.f32.mxu1 %vm11755_vm0, %v11753_v0  ;;  %11246 = vmatpush3.msra.mxu1 %v12884_v27 }
0x32dd   :  { %11261 = vmatprep.subr.mxu1 %v11753_v0 }
0x3397   :  { %v6189_v6 = vpop.f32.mrf.mxu1 }
0x3398   :  { %11233 = vmatmul.mubr.msk.f32.vlgmr.msra.gmra.mxu0 %vm726_vm7, %v6189_v6 }
0x3399   :  { %v11229_v10 = vpop.f32.mrf.mxu1  ;;  %11242 = vmatprep.mubr.msk.f32.mxu0 %vm11755_vm0, %v11753_v0 }
0x339a   :  { %v12938_v10 = vld [vmem:[%s12147_s16 + $0x1] ss:$0 sm:$0xff] }
0x339b   :  { %v6341_v56 = vpop.f32.mrf.mxu1 }
0x339c   :  { %v6342_v4 = vadd.f32 %v12804_v14, %v6341_v56 }
0x339d   :  { %v11239_v26 = vpop.f32.mrf.mxu1 }
0x339e   :  { %v6345_v60 = vsel %vm803_vm8, %v6342_v4, -inf }
0x339f   :  { %6346 = vmax.xlane.f32.xlu1 %v6345_v60 }
0x3428   :  { %v6347_v5 = vpop.xlane.xlu1 %6346 }
0x3429   :  { %v6348_v55 = vsub.f32 %v6342_v4, %v6347_v5 }
0x342b   :  { %v6349_v59 = vmul.f32 1.442695, %v6348_v55 }
0x342d   :  { %11672 = vpow2.f32 %v6349_v59 }
0x343a   :  { %v11673_v62 = vpop.eup %11672 }
0x343b   :  { %v6351_v29 = vsel %vm803_vm8, %v11673_v62, 0.0 }
0x343c   :  { %6352 = vadd.xlane.f32.xlu0 %v6351_v29 }
0x3452   :  { %6356 = vrot.lane.b32.xlu0 %v12782_v38, %s13476_s14 }
0x3458   :  { %v6262_v14 = vpop.f32.mrf.mxu0 }
0x3459   :  { %v6266_v31 = vadd.f32 %v6262_v14, %v6024_v63 }
0x345a   :  { %v11234_v1 = vpop.f32.mrf.mxu0 }
0x34c5   :  { %v6353_v23 = vpop.xlane.xlu0 %6352 }
0x34c6   :  { %11674 = vrcp.f32 %v6353_v23 }
0x34c9   :  { %v6357_v41 = vpop.permute.xlu0 %6356 }
0x34ca   :  { %11241 = vmatpush3.msk.msra.mxu0 %vm821_vm9, %v6357_v41 }
0x34cb   :  { %11250 = vmatprep.subr.mxu0 %v11753_v0 }
0x34d3   :  { %v11675_v54 = vpop.eup %11674 }
0x34d4   :  { %v6355_v24 = vmul.f32 %v11675_v54, %v11673_v62  ;;  %v12961_v62 = vld [vmem:[%s12175_s23] sm:$0x3f] }
0x34d6   :  { %11243 = vmatmul.mubr.msk.f32.vlgmr.msra.gmra.mxu0 %vm817_vm10, %v6355_v24 }
0x34d7   :  { %11258 = vmatprep.mubr.msk.f32.mxu0 %vm11755_vm0, %v11753_v0  ;;  %11251 = vmatpush3.msra.mxu0 %v12904_v12 }
0x34d8   :  { %11252 = vmatprep.subr.mxu0 %v11753_v0 }
0x34d9   :  { %11253 = vmatpush3.msra.mxu0 %v12908_v13 }
0x34da   :  { %11254 = vmatprep.subr.mxu0 %v11753_v0 }
0x3596   :  { %v6429_v38 = vpop.f32.mrf.mxu0 }
0x3597   :  { %11248 = vmatmul.mubr.msk.f32.vlgmr.msra.gmra.mxu1 %vm726_vm7, %v6429_v38 }
0x3598   :  { %v11244_v46 = vpop.f32.mrf.mxu0  ;;  %11263 = vmatprep.mubr.msk.f32.mxu1 %vm11755_vm0, %v11753_v0 }
0x3657   :  { %v6502_v47 = vpop.f32.mrf.mxu1 }
0x3658   :  { %v6506_v48 = vadd.f32 %v6502_v47, %v6266_v31 }
0x3659   :  { %v11249_v36 = vpop.f32.mrf.mxu1 }
0x365a   :  { %v6513_v17 = vadd.f32 %v12897_v2, %v6506_v48 }
0x365c   :  { %v6514_v39 = vadd.f32 %v6513_v17, %v12737_v53  ;;  %v12912_v53 = vld [vmem:[%s12098_s21 + $0x28] sm:$0xff] }
0x365d   :  { %11255 = vmatpush3.msra.mxu0 %v12912_v53 }
0x365e   :  { %v6515_v63 = vsel %vm223_vm5, %v6514_v39, 0.0  ;;  %11256 = vmatprep.subr.mxu0 %v11753_v0 }
0x365f   :  { %6516 = vadd.xlane.f32.xlu1 %v6515_v63  ;;  %11257 = vmatpush3.msra.mxu0 %v12917_v61 }
0x3660   :  { %11271 = vmatprep.subr.mxu0 %v11753_v0 }
0x36e8   :  { %v6517_v7 = vpop.xlane.xlu1 %6516 }
0x36e9   :  { %v6518_v34 = vmul.f32 0.03125, %v6517_v7 }
0x36eb   :  { %v6519_v35 = vsub.f32 %v6514_v39, %v6518_v34 }
0x36ed   :  { %v6520_v40 = vmul.f32 %v6519_v35, %v6519_v35 }
0x36ef   :  { %v6521_v49 = vsel %vm223_vm5, %v6520_v40, 0.0 }
0x36f0   :  { %6522 = vadd.xlane.f32.xlu1 %v6521_v49 }
0x3779   :  { %v6523_v16 = vpop.xlane.xlu1 %6522 }
0x377a   :  { %v6524_v42 = vmul.f32 0.03125, %v6523_v16 }
0x377c   :  { %v6525_v51 = vadd.f32 1e-12, %v6524_v42 }
0x377e   :  { %11676 = vrsqrt.f32 %v6525_v51 }
0x378b   :  { %v11677_v52 = vpop.eup %11676 }
0x378c   :  { %v6527_v58 = vmul.f32 %v11677_v52, %v6519_v35 }
0x378e   :  { %v6534_v57 = vmul.f32 %v12924_v33, %v6527_v58  ;;  %v12988_v58 = vld [vmem:[%s12207_s13 + $0x20] sm:$0xff] }
0x3790   :  { %v12931_v6 = vadd.f32 %v12927_v43, %v6534_v57  ;;  %v12992_v57 = vld [vmem:[%s12207_s13 + $0x28] sm:$0xff] }
0x3792   :  { %11259 = vmatmul.mubr.msk.f32.vlgmr.msra.gmra.mxu0 %vm567_vm6, %v12931_v6 }
0x3793   :  { %11273 = vmatprep.mubr.msk.f32.mxu0 %vm11755_vm0, %v11753_v0 }
0x3852   :  { %v6617_v56 = vpop.f32.mrf.mxu0 }
0x3853   :  { %v12941_v4 = vadd.f32 %v12938_v10, %v6617_v56 }
0x3854   :  { %v11260_v26 = vpop.f32.mrf.mxu0 }
0x3855   :  { %6788 = vrot.lane.b32.xlu0 %v12941_v4, %s13483_s29  ;;  %6622 = vrot.lane.b32.xlu1 %v12941_v4, %s13485_s24 }
0x3859   :  { %6786 = vrot.lane.b32.xlu0 %v12941_v4, %s13482_s25 }
0x38c7   :  { %v6789_v60 = vpop.permute.xlu0 %6788  ;;  %v6623_v5 = vpop.permute.xlu1 %6622 }
0x38c8   :  { %11262 = vmatpush3.xpose.msk.msra.mxu1 %vm726_vm7, %v6623_v5  ;;  %11272 = vmatpush3.xpose.msk.msra.mxu0 %vm726_vm7, %v6789_v60 }
0x38c9   :  { %11266 = vmatprep.subr.mxu1 %v11753_v0  ;;  %11281 = vmatprep.subr.mxu0 %v11753_v0 }
0x38cb   :  { %v6787_v55 = vpop.permute.xlu0 %6786  ;;  %11264 = vmatmul.mubr.msk.f32.vlgmr.msra.gmra.mxu1 %vm726_vm7, %v12941_v4 }
0x38cc   :  { %11274 = vmatmul.mubr.msk.f32.vlgmr.msra.gmra.mxu0 %vm726_vm7, %v6787_v55  ;;  %11268 = vmatprep.mubr.msk.f32.mxu1 %vm11755_vm0, %v11753_v0 }
0x38cd   :  { %11283 = vmatprep.mubr.msk.f32.mxu0 %vm11755_vm0, %v11753_v0  ;;  %11282 = vmatpush3.msra.mxu0 %v12992_v57 }
0x38ce   :  { %11291 = vmatprep.subr.mxu0 %v11753_v0 }
0x398b   :  { %v6694_v59 = vpop.f32.mrf.mxu1 }
0x398c   :  { %v6695_v29 = vadd.f32 %v12961_v62, %v6694_v59  ;;  %v6860_v14 = vpop.f32.mrf.mxu0 }
0x398d   :  { %v6861_v31 = vadd.f32 %v12961_v62, %v6860_v14  ;;  %v11265_v1 = vpop.f32.mrf.mxu1 }
0x398e   :  { %v11275_v23 = vpop.f32.mrf.mxu0  ;;  %v6698_v41 = vsel %vm803_vm8, %v6695_v29, -inf }
0x398f   :  { %6699 = vmax.xlane.f32.xlu1 %v6698_v41  ;;  %v6864_v54 = vsel %vm803_vm8, %v6861_v31, -inf }
0x3990   :  { %6865 = vmax.xlane.f32.xlu0 %v6864_v54 }
0x39a0   :  { %6709 = vrot.lane.b32.xlu1 %v12941_v4, %s13478_s22 }
0x39a4   :  { %7100 = vrot.lane.b32.xlu1 %v12941_v4, %s13486_s4 }
0x39a8   :  { %7098 = vrot.lane.b32.xlu1 %v12941_v4, %s13484_s19 }
0x3a18   :  { %v6700_v24 = vpop.xlane.xlu1 %6699 }
0x3a19   :  { %v6701_v38 = vsub.f32 %v6695_v29, %v6700_v24  ;;  %v6866_v46 = vpop.xlane.xlu0 %6865 }
0x3a1a   :  { %v6867_v47 = vsub.f32 %v6861_v31, %v6866_v46 }
0x3a1b   :  { %v6702_v48 = vmul.f32 1.442695, %v6701_v38 }
0x3a1c   :  { %v6868_v36 = vmul.f32 1.442695, %v6867_v47  ;;  %v6710_v17 = vpop.permute.xlu1 %6709 }
0x3a1d   :  { %11678 = vpow2.f32 %v6702_v48  ;;  %11267 = vmatpush3.msk.msra.mxu1 %vm821_vm9, %v6710_v17 }
0x3a1e   :  { %11276 = vmatprep.subr.mxu1 %v11753_v0  ;;  %11680 = vpow2.f32 %v6868_v36 }
0x3a20   :  { %v7101_v26 = vpop.permute.xlu1 %7100 }
0x3a24   :  { %v7099_v59 = vpop.permute.xlu1 %7098 }
0x3a2a   :  { %v11679_v39 = vpop.eup %11678 }
0x3a2b   :  { %v6704_v63 = vsel %vm803_vm8, %v11679_v39, 0.0  ;;  %v11681_v7 = vpop.eup %11680 }
0x3a2c   :  { %6705 = vadd.xlane.f32.xlu0 %v6704_v63  ;;  %v6870_v34 = vsel %vm803_vm8, %v11681_v7, 0.0 }
0x3a30   :  { %6871 = vadd.xlane.f32.xlu0 %v6870_v34 }
0x3a46   :  { %6875 = vrot.lane.b32.xlu0 %v12941_v4, %s13477_s18 }
0x3ab5   :  { %v6706_v35 = vpop.xlane.xlu0 %6705 }
0x3ab6   :  { %11682 = vrcp.f32 %v6706_v35 }
0x3ab9   :  { %v6872_v40 = vpop.xlane.xlu0 %6871 }
0x3aba   :  { %11684 = vrcp.f32 %v6872_v40 }
0x3abd   :  { %v6876_v42 = vpop.permute.xlu0 %6875 }
0x3ac3   :  { %v11683_v49 = vpop.eup %11682 }
0x3ac4   :  { %v6708_v16 = vmul.f32 %v11683_v49, %v11679_v39  ;;  %v13028_v49 = vld [vmem:[%s12207_s13 + $0x30] sm:$0xff] }
0x3ac6   :  { %11269 = vmatmul.mubr.msk.f32.vlgmr.msra.gmra.mxu1 %vm817_vm10, %v6708_v16 }
0x3ac7   :  { %v11685_v51 = vpop.eup %11684  ;;  %11277 = vmatpush3.msk.msra.mxu1 %vm821_vm9, %v6876_v42  ;;  %11278 = vmatprep.mubr.msk.f32.mxu1 %vm11755_vm0, %v11753_v0 }
0x3ac8   :  { %v6874_v52 = vmul.f32 %v11685_v51, %v11681_v7  ;;  %11286 = vmatprep.subr.mxu1 %v11753_v0 }
0x3aca   :  { %11279 = vmatmul.mubr.msk.f32.vlgmr.msra.gmra.mxu1 %vm817_vm10, %v6874_v52 }
0x3acb   :  { %11288 = vmatprep.mubr.msk.f32.mxu1 %vm11755_vm0, %v11753_v0  ;;  %11287 = vmatpush3.msra.mxu1 %v12988_v58 }
0x3acc   :  { %11296 = vmatprep.subr.mxu1 %v11753_v0 }
0x3b86   :  { %v6782_v56 = vpop.f32.mrf.mxu1 }
0x3b87   :  { %11289 = vmatmul.mubr.msk.f32.vlgmr.msra.gmra.mxu1 %vm726_vm7, %v6782_v56 }
0x3b88   :  { %v11270_v60 = vpop.f32.mrf.mxu1  ;;  %11298 = vmatprep.mubr.msk.f32.mxu1 %vm11755_vm0, %v11753_v0 }
0x3b8a   :  { %v6948_v5 = vpop.f32.mrf.mxu1 }
0x3b8b   :  { %11284 = vmatmul.mubr.msk.f32.vlgmr.msra.gmra.mxu0 %vm726_vm7, %v6948_v5 }
0x3b8c   :  { %11292 = vmatpush3.xpose.msk.msra.mxu0 %vm726_vm7, %v7101_v26  ;;  %v11280_v55 = vpop.f32.mrf.mxu1  ;;  %11293 = vmatprep.mubr.msk.f32.mxu0 %vm11755_vm0, %v11753_v0 }
0x3b8d   :  { %11301 = vmatprep.subr.mxu0 %v11753_v0 }
0x3b8f   :  { %11294 = vmatmul.mubr.msk.f32.vlgmr.msra.gmra.mxu0 %vm726_vm7, %v7099_v59 }
0x3b90   :  { %11303 = vmatprep.mubr.msk.f32.mxu0 %vm11755_vm0, %v11753_v0  ;;  %11302 = vmatpush3.msra.mxu0 %v13028_v49 }
0x3b91   :  { %11311 = vmatprep.subr.mxu0 %v11753_v0 }
0x3c47   :  { %v7094_v29 = vpop.f32.mrf.mxu1 }
0x3c49   :  { %v11290_v14 = vpop.f32.mrf.mxu1 }
0x3c4b   :  { %v7021_v31 = vpop.f32.mrf.mxu0 }
0x3c4c   :  { %v7095_v1 = vadd.f32 %v7094_v29, %v7021_v31 }
0x3c4d   :  { %v11285_v23 = vpop.f32.mrf.mxu0 }
0x3c4f   :  { %v7172_v41 = vpop.f32.mrf.mxu0 }
0x3c50   :  { %v7173_v54 = vadd.f32 %v12961_v62, %v7172_v41 }
0x3c51   :  { %v11295_v24 = vpop.f32.mrf.mxu0 }
0x3c52   :  { %v7176_v38 = vsel %vm803_vm8, %v7173_v54, -inf }
0x3c53   :  { %7177 = vmax.xlane.f32.xlu1 %v7176_v38 }
0x3c64   :  { %7340 = vrot.lane.b32.xlu1 %v12941_v4, %s13476_s14 }
0x3c68   :  { %7338 = vrot.lane.b32.xlu1 %v12941_v4, %s13487_s12 }
0x3cdc   :  { %v7178_v46 = vpop.xlane.xlu1 %7177 }
0x3cdd   :  { %v7179_v47 = vsub.f32 %v7173_v54, %v7178_v46 }
0x3cdf   :  { %v7180_v48 = vmul.f32 1.442695, %v7179_v47  ;;  %v13054_v47 = vld [vmem:[%s12278_s6 + $0x1] ss:$0 sm:$0xff] }
0x3ce0   :  { %v7341_v34 = vpop.permute.xlu1 %7340 }
0x3ce1   :  { %11686 = vpow2.f32 %v7180_v48 }
0x3ce4   :  { %v7339_v40 = vpop.permute.xlu1 %7338 }
0x3cee   :  { %v11687_v36 = vpop.eup %11686 }
0x3cef   :  { %v7182_v17 = vsel %vm803_vm8, %v11687_v36, 0.0 }
0x3cf0   :  { %7183 = vadd.xlane.f32.xlu0 %v7182_v17  ;;  %v5312_v17 = vadd.f32 %v12682_v45, %v12801_v11 }
0x3d06   :  { %7187 = vrot.lane.b32.xlu0 %v12941_v4, %s13479_s26 }
0x3d79   :  { %v7184_v39 = vpop.xlane.xlu0 %7183 }
0x3d7a   :  { %11688 = vrcp.f32 %v7184_v39 }
0x3d7d   :  { %v7188_v63 = vpop.permute.xlu0 %7187 }
0x3d7e   :  { %11297 = vmatpush3.msk.msra.mxu1 %vm821_vm9, %v7188_v63 }
0x3d7f   :  { %11306 = vmatprep.subr.mxu1 %v11753_v0 }
0x3d87   :  { %v11689_v7 = vpop.eup %11688 }
0x3d88   :  { %v7186_v35 = vmul.f32 %v11689_v7, %v11687_v36  ;;  %v5315_v7 = vadd.f32 %v5312_v17, %v12705_v15 }
0x3d8a   :  { %11299 = vmatmul.mubr.msk.f32.vlgmr.msra.gmra.mxu1 %vm817_vm10, %v7186_v35  ;;  %v5316_v35 = vsel %vm223_vm5, %v5315_v7, 0.0 }
0x3d8b   :  { %11307 = vmatpush3.xpose.msk.msra.mxu1 %vm726_vm7, %v7341_v34  ;;  %11308 = vmatprep.mubr.msk.f32.mxu1 %vm11755_vm0, %v11753_v0 }
0x3d8c   :  { %11316 = vmatprep.subr.mxu1 %v11753_v0 }
0x3d8e   :  { %11309 = vmatmul.mubr.msk.f32.vlgmr.msra.gmra.mxu1 %vm726_vm7, %v7339_v40 }
0x3d8f   :  { %11318 = vmatprep.mubr.msk.f32.mxu1 %vm11755_vm0, %v11753_v0 }
0x3e4a   :  { %v7260_v16 = vpop.f32.mrf.mxu1 }
0x3e4b   :  { %11304 = vmatmul.mubr.msk.f32.vlgmr.msra.gmra.mxu0 %vm726_vm7, %v7260_v16 }
0x3e4c   :  { %v11300_v42 = vpop.f32.mrf.mxu1  ;;  %11313 = vmatprep.mubr.msk.f32.mxu0 %vm11755_vm0, %v11753_v0 }
0x3e4e   :  { %v7412_v51 = vpop.f32.mrf.mxu1 }
0x3e4f   :  { %v7413_v52 = vadd.f32 %v12961_v62, %v7412_v51  ;;  %v13043_v62 = vld [vmem:[%s12207_s13 + $0x38] sm:$0xff] }
0x3e50   :  { %v11310_v56 = vpop.f32.mrf.mxu1  ;;  %11317 = vmatpush3.msra.mxu1 %v13043_v62 }
0x3e51   :  { %v7416_v26 = vsel %vm803_vm8, %v7413_v52, -inf  ;;  %11332 = vmatprep.subr.mxu1 %v11753_v0 }
0x3e52   :  { %7417 = vmax.xlane.f32.xlu0 %v7416_v26  ;;  %v13066_v26 = vld [vmem:[%s12294_s5 + $0x38] sm:$0xff] }
0x3e68   :  { %7427 = vrot.lane.b32.xlu0 %v12941_v4, %s13480_s10 }
0x3edb   :  { %v7418_v60 = vpop.xlane.xlu0 %7417 }
0x3edc   :  { %v7419_v5 = vsub.f32 %v7413_v52, %v7418_v60  ;;  %v13071_v60 = vld [vmem:[%s12294_s5 + $0x30] sm:$0xff] }
0x3ede   :  { %v7420_v55 = vmul.f32 1.442695, %v7419_v5  ;;  %v13076_v5 = vld [vmem:[%s12294_s5 + $0x28] sm:$0xff] }
0x3edf   :  { %v7428_v59 = vpop.permute.xlu0 %7427 }
0x3ee0   :  { %11690 = vpow2.f32 %v7420_v55  ;;  %11312 = vmatpush3.msk.msra.mxu0 %vm821_vm9, %v7428_v59  ;;  %v13081_v55 = vld [vmem:[%s12294_s5 + $0x20] sm:$0xff] }
0x3ee1   :  { %11321 = vmatprep.subr.mxu0 %v11753_v0 }
0x3eed   :  { %v11691_v29 = vpop.eup %11690 }
0x3eee   :  { %v7422_v14 = vsel %vm803_vm8, %v11691_v29, 0.0 }
0x3eef   :  { %7423 = vadd.xlane.f32.xlu1 %v7422_v14 }
0x3f0b   :  { %v7333_v31 = vpop.f32.mrf.mxu0 }
0x3f0c   :  { %v7337_v4 = vadd.f32 %v7333_v31, %v7095_v1 }
0x3f0d   :  { %v11305_v23 = vpop.f32.mrf.mxu0 }
0x3f78   :  { %v7424_v41 = vpop.xlane.xlu1 %7423 }
0x3f79   :  { %11692 = vrcp.f32 %v7424_v41 }
0x3f86   :  { %v11693_v54 = vpop.eup %11692 }
0x3f87   :  { %v7426_v24 = vmul.f32 %v11693_v54, %v11691_v29  ;;  %v13086_v54 = vld [vmem:[%s12319_s17 + $0x1] ss:$0 sm:$0xff] }
0x3f89   :  { %11314 = vmatmul.mubr.msk.f32.vlgmr.msra.gmra.mxu0 %vm817_vm10, %v7426_v24 }
0x3f8a   :  { %11329 = vmatprep.mubr.msk.f32.mxu0 %vm11755_vm0, %v11753_v0  ;;  %11322 = vmatpush3.msra.mxu0 %v13066_v26 }
0x3f8b   :  { %11323 = vmatprep.subr.mxu0 %v11753_v0 }
0x3f8c   :  { %11324 = vmatpush3.msra.mxu0 %v13071_v60 }
0x3f8d   :  { %11325 = vmatprep.subr.mxu0 %v11753_v0 }
0x3f8e   :  { %11326 = vmatpush3.msra.mxu0 %v13076_v5 }
0x3f8f   :  { %11327 = vmatprep.subr.mxu0 %v11753_v0 }
0x3f90   :  { %11328 = vmatpush3.msra.mxu0 %v13081_v55 }
0x3f91   :  { %11351 = vmatprep.subr.mxu0 %v11753_v0 }
0x4049   :  { %v7500_v38 = vpop.f32.mrf.mxu0 }
0x404a   :  { %11319 = vmatmul.mubr.msk.f32.vlgmr.msra.gmra.mxu1 %vm726_vm7, %v7500_v38  ;;  %v13089_v38 = vld [vmem:[%s13488_s8 + $0x1] ss:$0 sm:$0xff] }
0x404b   :  { %v11315_v46 = vpop.f32.mrf.mxu0  ;;  %11348 = vmatprep.mubr.msk.f32.mxu1 %vm11755_vm0, %v11753_v0 }
0x410a   :  { %v7573_v1 = vpop.f32.mrf.mxu1 }
0x410b   :  { %v7577_v48 = vadd.f32 %v7573_v1, %v7337_v4 }
0x410c   :  { %v11320_v36 = vpop.f32.mrf.mxu1 }
0x410d   :  { %v7584_v39 = vadd.f32 %v13054_v47, %v7577_v48 }
0x410f   :  { %v7585_v63 = vadd.f32 %v7584_v39, %v12931_v6 }
0x4111   :  { %v7586_v34 = vsel %vm223_vm5, %v7585_v63, 0.0 }
0x4112   :  { %7587 = vadd.xlane.f32.xlu1 %v7586_v34 }
0x4116   :  { %5317 = vadd.xlane.f32.xlu1 %v5316_v35 }
0x419b   :  { %v7588_v40 = vpop.xlane.xlu1 %7587 }
0x419c   :  { %v7589_v16 = vmul.f32 0.03125, %v7588_v40 }
0x419e   :  { %v7590_v42 = vsub.f32 %v7585_v63, %v7589_v16 }
0x419f   :  { %v5318_v51 = vpop.xlane.xlu1 %5317 }
0x41a0   :  { %v5319_v45 = vmul.f32 0.03125, %v5318_v51  ;;  %v7591_v11 = vmul.f32 %v7590_v42, %v7590_v42 }
0x41a2   :  { %v5320_v52 = vsub.f32 %v5315_v7, %v5319_v45  ;;  %v7592_v6 = vsel %vm223_vm5, %v7591_v11, 0.0 }
0x41a3   :  { %7593 = vadd.xlane.f32.xlu1 %v7592_v6 }
0x41a4   :  { %v5321_v15 = vmul.f32 %v5320_v52, %v5320_v52 }
0x41a6   :  { %v5322_v56 = vsel %vm223_vm5, %v5321_v15, 0.0 }
0x41a7   :  { %5323 = vadd.xlane.f32.xlu1 %v5322_v56 }
0x422c   :  { %v7594_v59 = vpop.xlane.xlu1 %7593 }
0x422d   :  { %v7595_v29 = vmul.f32 0.03125, %v7594_v59 }
0x422f   :  { %v7596_v14 = vadd.f32 1e-12, %v7595_v29 }
0x4230   :  { %v5324_v31 = vpop.xlane.xlu1 %5323 }
0x4231   :  { %11694 = vrsqrt.f32 %v7596_v14  ;;  %v5325_v4 = vmul.f32 0.03125, %v5324_v31 }
0x4233   :  { %v5326_v23 = vadd.f32 1e-12, %v5325_v4 }
0x4235   :  { %11696 = vrsqrt.f32 %v5326_v23 }
0x423e   :  { %v11695_v41 = vpop.eup %11694 }
0x423f   :  { %v7598_v24 = vmul.f32 %v11695_v41, %v7590_v42 }
0x4241   :  { %v7605_v46 = vmul.f32 %v13086_v54, %v7598_v24  ;;  %v13201_v24 = vld [vmem:[%s11983_s30 + $0x1] ss:$0 sm:$0xff]  ;;  %s13491_s30 = sld [smem:[#allocation5_spill]] }
0x4242   :  { %v11697_v1 = vpop.eup %11696 }
0x4243   :  { %v5328_v48 = vmul.f32 %v11697_v1, %v5320_v52  ;;  %v13093_v36 = vadd.f32 %v13089_v38, %v7605_v46 }
0x4245   :  { %11330 = vmatmul.mubr.msk.f32.vlgmr.msra.gmra.mxu0 %vm567_vm6, %v13093_v36  ;;  %v5329_v17 = vmul.f32 %v12711_v32, %v5328_v48  ;;  %v13128_v32 = vld [vmem:[%s13489_s15 + $0x78] sm:$0xff] }
0x4246   :  { %11352 = vmatpush3.msra.mxu0 %v12708_v37  ;;  %11359 = vmatprep.mubr.msk.f32.mxu0 %vm11755_vm0, %v11753_v0  ;;  %v11750_v37 = vld [vmem:[%s11889_s3 + $0x8] sm:$0x3f]  ;;  %s13490_s3 = sld [smem:[#allocation4_spill]] }
0x4247   :  { %11353 = vmatprep.subr.mxu0 %v11753_v0  ;;  %v13107_v39 = vadd.f32 %v12728_v22, %v5329_v17  ;;  %11333 = vmatpush3.msra.mxu1 %v13128_v32  ;;  %v13143_v22 = vld [vmem:[%s13489_s15 + $0x60] sm:$0xff] }
0x4248   :  { %11354 = vmatpush3.msra.mxu0 %v12716_v28  ;;  %11334 = vmatprep.subr.mxu1 %v11753_v0  ;;  %v13133_v28 = vld [vmem:[%s13489_s15 + $0x70] sm:$0xff] }
0x4249   :  { %11355 = vmatprep.subr.mxu0 %v11753_v0  ;;  %11335 = vmatpush3.msra.mxu1 %v13133_v28 }
0x424a   :  { %11356 = vmatpush3.msra.mxu0 %v12723_v8  ;;  %11336 = vmatprep.subr.mxu1 %v11753_v0  ;;  %v13138_v8 = vld [vmem:[%s13489_s15 + $0x68] sm:$0xff] }
0x424b   :  { %11357 = vmatprep.subr.mxu0 %v11753_v0  ;;  %11337 = vmatpush3.msra.mxu1 %v13138_v8 }
0x424c   :  { %11358 = vmatpush3.msra.mxu0 %v12732_v50  ;;  %11338 = vmatprep.subr.mxu1 %v11753_v0  ;;  %v13148_v50 = vld [vmem:[%s13489_s15 + $0x58] sm:$0xff] }
0x424d   :  { %11360 = vmatmul.mubr.msk.f32.vlgmr.msra.gmra.mxu0 %vm567_vm6, %v13107_v39  ;;  %11362 = vmatprep.subr.mxu0 %v11753_v0 }
0x424e   :  { %11363 = vmatpush3.msra.mxu0 %v12740_v9  ;;  %11370 = vmatprep.mubr.msk.f32.mxu0 %vm11755_vm0, %v11753_v0  ;;  %v13153_v9 = vld [vmem:[%s13489_s15 + $0x50] sm:$0xff] }
0x424f   :  { %11364 = vmatprep.subr.mxu0 %v11753_v0  ;;  %11339 = vmatpush3.msra.mxu1 %v13143_v22 }
0x4250   :  { %11365 = vmatpush3.msra.mxu0 %v12747_v18  ;;  %11340 = vmatprep.subr.mxu1 %v11753_v0  ;;  %v13158_v18 = vld [vmem:[%s13489_s15 + $0x48] sm:$0xff] }
0x4251   :  { %11366 = vmatprep.subr.mxu0 %v11753_v0  ;;  %11341 = vmatpush3.msra.mxu1 %v13148_v50 }
0x4252   :  { %11367 = vmatpush3.msra.mxu0 %v12754_v20  ;;  %11342 = vmatprep.subr.mxu1 %v11753_v0  ;;  %v13163_v20 = vld [vmem:[%s13489_s15 + $0x40] sm:$0xff] }
0x4253   :  { %11368 = vmatprep.subr.mxu0 %v11753_v0  ;;  %11343 = vmatpush3.msra.mxu1 %v13153_v9 }
0x4254   :  { %11369 = vmatpush3.msra.mxu0 %v12759_v21  ;;  %11344 = vmatprep.subr.mxu1 %v11753_v0  ;;  %v13168_v21 = vld [vmem:[%s13490_s3 + $0x1] ss:$0 sm:$0xff] }
0x4255   :  { %11371 = vmatmul.mubr.msk.f32.vlgmr.msra.gmra.mxu0 %vm567_vm6, %v11750_v37  ;;  %11383 = vmatprep.subr.mxu0 %v11753_v0 }
0x4256   :  { %11385 = vmatprep.mubr.msk.f32.mxu0 %vm11755_vm0, %v11753_v0  ;;  %11345 = vmatpush3.msra.mxu1 %v13158_v18 }
0x4257   :  { %11346 = vmatprep.subr.mxu1 %v11753_v0 }
0x4258   :  { %11347 = vmatpush3.msra.mxu1 %v13163_v20 }
0x4259   :  { %11373 = vmatprep.subr.mxu1 %v11753_v0 }
0x4305   :  { %v7688_v63 = vpop.f32.mrf.mxu0 }
0x4306   :  { %v7689_v7 = vadd.f32 %v13168_v21, %v7688_v63 }
0x4307   :  { %v11331_v34 = vpop.f32.mrf.mxu0 }
0x4308   :  { %v7692_v35 = vmul.f32 %v7689_v7, %v7689_v7 }
0x430a   :  { %v7693_v40 = vmul.f32 %v7692_v35, %v7689_v7 }
0x430c   :  { %v7694_v16 = vmul.f32 0.044715, %v7693_v40 }
0x430d   :  { %v7877_v42 = vpop.f32.mrf.mxu0 }
0x430e   :  { %v7695_v51 = vadd.f32 %v7694_v16, %v7689_v7  ;;  %v13172_v45 = vadd.f32 %v12771_v30, %v7877_v42 }
0x430f   :  { %v11361_v11 = vpop.f32.mrf.mxu0 }
0x4310   :  { %v7696_v52 = vmul.f32 0.7978846, %v7695_v51  ;;  %8115 = vrot.lane.b32.xlu1 %v13172_v45, %s13482_s25 }
0x4312   :  { %11698 = vtanh.f32 %v7696_v52 }
0x4315   :  { %v7947_v6 = vpop.f32.mrf.mxu0 }
0x4316   :  { %v13177_v15 = vadd.f32 %v12779_v25, %v7947_v6 }
0x4317   :  { %v11372_v56 = vpop.f32.mrf.mxu0 }
0x4318   :  { %8117 = vrot.lane.b32.xlu0 %v13177_v15, %s13482_s25 }
0x431f   :  { %v11699_v59 = vpop.eup %11698 }
0x4320   :  { %v7698_v29 = vadd.f32 1.0, %v11699_v59 }
0x4322   :  { %v7699_v14 = vmul.f32 0.5, %v7698_v29 }
0x4324   :  { %v7700_v31 = vmul.f32 %v7699_v14, %v7689_v7 }
0x4326   :  { %11349 = vmatmul.mubr.msk.f32.vlgmr.msra.gmra.mxu1 %vm2886_vm11, %v7700_v31 }
0x4327   :  { %11374 = vmatpush3.xpose.msk.msra.mxu1 %vm726_vm7, %v13177_v15  ;;  %11375 = vmatprep.mubr.msk.f32.mxu1 %vm11755_vm0, %v11753_v0 }
0x4328   :  { %11378 = vmatprep.subr.mxu1 %v11753_v0 }
0x432a   :  { %11376 = vmatmul.mubr.msk.f32.vlgmr.msra.gmra.mxu1 %vm726_vm7, %v13172_v45 }
0x432b   :  { %11380 = vmatprep.mubr.msk.f32.mxu1 %vm11755_vm0, %v11753_v0 }
0x4382   :  { %v8116_v25 = vpop.permute.xlu1 %8115 }
0x438a   :  { %v8118_v30 = vpop.permute.xlu0 %8117 }
0x438b   :  { %11384 = vmatpush3.xpose.msk.msra.mxu0 %vm726_vm7, %v8118_v30 }
0x438c   :  { %11393 = vmatprep.subr.mxu0 %v11753_v0 }
0x438e   :  { %11386 = vmatmul.mubr.msk.f32.vlgmr.msra.gmra.mxu0 %vm726_vm7, %v8116_v25 }
0x438f   :  { %11394 = vmatpush3.msra.mxu0 %v12836_v44  ;;  %11395 = vmatprep.mubr.msk.f32.mxu0 %vm11755_vm0, %v11753_v0 }
0x4390   :  { %11403 = vmatprep.subr.mxu0 %v11753_v0 }
0x43e6   :  { %v13198_v4 = vpop.f32.mrf.mxu1 }
0x43e8   :  { %v11350_v23 = vpop.f32.mrf.mxu1 }
0x43ea   :  { %v8023_v41 = vpop.f32.mrf.mxu1 }
0x43eb   :  { %v8024_v46 = vadd.f32 %v13201_v24, %v8023_v41 }
0x43ec   :  { %v11377_v1 = vpop.f32.mrf.mxu1 }
0x43ed   :  { %v8027_v48 = vsel %vm803_vm8, %v8024_v46, -inf }
0x43ee   :  { %8028 = vmax.xlane.f32.xlu0 %v8027_v48 }
0x444e   :  { %v8189_v17 = vpop.f32.mrf.mxu0 }
0x444f   :  { %v8190_v44 = vadd.f32 %v13201_v24, %v8189_v17 }
0x4450   :  { %v11387_v37 = vpop.f32.mrf.mxu0 }
0x4451   :  { %v8193_v63 = vsel %vm803_vm8, %v8190_v44, -inf }
0x4452   :  { %8194 = vmax.xlane.f32.xlu1 %v8193_v63 }
0x4463   :  { %8204 = vrot.lane.b32.xlu1 %v13177_v15, %s13483_s29 }
0x4477   :  { %v8029_v7 = vpop.xlane.xlu0 %8028 }
0x4478   :  { %v8030_v34 = vsub.f32 %v8024_v46, %v8029_v7 }
0x447a   :  { %v8031_v35 = vmul.f32 1.442695, %v8030_v34 }
0x447c   :  { %11700 = vpow2.f32 %v8031_v35 }
0x4489   :  { %v11701_v40 = vpop.eup %11700 }
0x448a   :  { %v8033_v16 = vsel %vm803_vm8, %v11701_v40, 0.0 }
0x448b   :  { %8034 = vadd.xlane.f32.xlu0 %v8033_v16 }
0x44db   :  { %v8195_v42 = vpop.xlane.xlu1 %8194 }
0x44dc   :  { %v8196_v51 = vsub.f32 %v8190_v44, %v8195_v42 }
0x44de   :  { %v8197_v11 = vmul.f32 1.442695, %v8196_v51 }
0x44df   :  { %v8205_v30 = vpop.permute.xlu1 %8204 }
0x44e0   :  { %11702 = vpow2.f32 %v8197_v11 }
0x44ed   :  { %v11703_v52 = vpop.eup %11702 }
0x44ee   :  { %v8199_v6 = vsel %vm803_vm8, %v11703_v52, 0.0 }
0x44ef   :  { %8200 = vadd.xlane.f32.xlu0 %v8199_v6 }
0x4505   :  { %8038 = vrot.lane.b32.xlu0 %v13177_v15, %s13485_s24 }
0x4509   :  { %8429 = vrot.lane.b32.xlu0 %v13177_v15, %s13484_s19 }
0x450d   :  { %8427 = vrot.lane.b32.xlu0 %v13172_v45, %s13484_s19 }
0x4514   :  { %v8035_v56 = vpop.xlane.xlu0 %8034 }
0x4515   :  { %11704 = vrcp.f32 %v8035_v56 }
0x4522   :  { %v11705_v29 = vpop.eup %11704 }
0x4523   :  { %v8037_v31 = vmul.f32 %v11705_v29, %v11701_v40 }
0x4578   :  { %v8201_v59 = vpop.xlane.xlu0 %8200 }
0x4579   :  { %11706 = vrcp.f32 %v8201_v59 }
0x457c   :  { %v8039_v14 = vpop.permute.xlu0 %8038 }
0x457d   :  { %11379 = vmatpush3.msk.msra.mxu1 %vm821_vm9, %v8039_v14 }
0x457e   :  { %11381 = vmatmul.mubr.msk.f32.vlgmr.msra.gmra.mxu1 %vm817_vm10, %v8037_v31  ;;  %11388 = vmatprep.subr.mxu1 %v11753_v0 }
0x457f   :  { %11389 = vmatpush3.msk.msra.mxu1 %vm821_vm9, %v8205_v30  ;;  %11390 = vmatprep.mubr.msk.f32.mxu1 %vm11755_vm0, %v11753_v0 }
0x4580   :  { %11398 = vmatprep.subr.mxu1 %v11753_v0  ;;  %v8430_v1 = vpop.permute.xlu0 %8429 }
0x4586   :  { %v11707_v25 = vpop.eup %11706 }
0x4587   :  { %v8203_v23 = vmul.f32 %v11707_v25, %v11703_v52 }
0x4589   :  { %11391 = vmatmul.mubr.msk.f32.vlgmr.msra.gmra.mxu1 %vm817_vm10, %v8203_v23 }
0x458a   :  { %11399 = vmatpush3.msra.mxu1 %v12831_v19  ;;  %11400 = vmatprep.mubr.msk.f32.mxu1 %vm11755_vm0, %v11753_v0  ;;  %v8428_v19 = vpop.permute.xlu0 %8427 }
0x458b   :  { %11408 = vmatprep.subr.mxu1 %v11753_v0 }
0x463e   :  { %v8111_v41 = vpop.f32.mrf.mxu1 }
0x463f   :  { %11401 = vmatmul.mubr.msk.f32.vlgmr.msra.gmra.mxu1 %vm726_vm7, %v8111_v41 }
0x4640   :  { %v11382_v46 = vpop.f32.mrf.mxu1  ;;  %11410 = vmatprep.mubr.msk.f32.mxu1 %vm11755_vm0, %v11753_v0 }
0x4649   :  { %v8277_v48 = vpop.f32.mrf.mxu1 }
0x464a   :  { %11396 = vmatmul.mubr.msk.f32.vlgmr.msra.gmra.mxu0 %vm726_vm7, %v8277_v48 }
0x464b   :  { %11404 = vmatpush3.xpose.msk.msra.mxu0 %vm726_vm7, %v8430_v1  ;;  %v11392_v17 = vpop.f32.mrf.mxu1  ;;  %11405 = vmatprep.mubr.msk.f32.mxu0 %vm11755_vm0, %v11753_v0 }
0x464c   :  { %11413 = vmatprep.subr.mxu0 %v11753_v0 }
0x464e   :  { %11406 = vmatmul.mubr.msk.f32.vlgmr.msra.gmra.mxu0 %vm726_vm7, %v8428_v19 }
0x464f   :  { %11414 = vmatpush3.msra.mxu0 %v12871_v3  ;;  %11415 = vmatprep.mubr.msk.f32.mxu0 %vm11755_vm0, %v11753_v0 }
0x4650   :  { %11423 = vmatprep.subr.mxu0 %v11753_v0 }
0x46ff   :  { %v8423_v44 = vpop.f32.mrf.mxu1 }
0x4701   :  { %v11402_v37 = vpop.f32.mrf.mxu1 }
0x470a   :  { %v8350_v63 = vpop.f32.mrf.mxu0 }
0x470b   :  { %v8424_v7 = vadd.f32 %v8423_v44, %v8350_v63 }
0x470c   :  { %v11397_v34 = vpop.f32.mrf.mxu0 }
0x470e   :  { %v8501_v35 = vpop.f32.mrf.mxu0 }
0x470f   :  { %v8502_v40 = vadd.f32 %v13201_v24, %v8501_v35 }
0x4710   :  { %v11407_v16 = vpop.f32.mrf.mxu0 }
0x4711   :  { %v8505_v42 = vsel %vm803_vm8, %v8502_v40, -inf }
0x4712   :  { %8506 = vmax.xlane.f32.xlu1 %v8505_v42 }
0x4723   :  { %8669 = vrot.lane.b32.xlu1 %v13177_v15, %s13487_s12 }
0x4727   :  { %8667 = vrot.lane.b32.xlu1 %v13172_v45, %s13487_s12 }
0x479b   :  { %v8507_v3 = vpop.xlane.xlu1 %8506 }
0x479c   :  { %v8508_v51 = vsub.f32 %v8502_v40, %v8507_v3 }
0x479e   :  { %v8509_v11 = vmul.f32 1.442695, %v8508_v51 }
0x479f   :  { %v8670_v45 = vpop.permute.xlu1 %8669 }
0x47a0   :  { %11708 = vpow2.f32 %v8509_v11 }
0x47a3   :  { %v8668_v31 = vpop.permute.xlu1 %8667 }
0x47ad   :  { %v11709_v52 = vpop.eup %11708 }
0x47ae   :  { %v8511_v6 = vsel %vm803_vm8, %v11709_v52, 0.0 }
0x47af   :  { %8512 = vadd.xlane.f32.xlu0 %v8511_v6 }
0x47c5   :  { %8516 = vrot.lane.b32.xlu0 %v13177_v15, %s13486_s4 }
0x4838   :  { %v8513_v56 = vpop.xlane.xlu0 %8512 }
0x4839   :  { %11710 = vrcp.f32 %v8513_v56 }
0x483c   :  { %v8517_v59 = vpop.permute.xlu0 %8516 }
0x483d   :  { %11409 = vmatpush3.msk.msra.mxu1 %vm821_vm9, %v8517_v59 }
0x483e   :  { %11418 = vmatprep.subr.mxu1 %v11753_v0 }
0x4846   :  { %v11711_v29 = vpop.eup %11710 }
0x4847   :  { %v8515_v14 = vmul.f32 %v11711_v29, %v11709_v52 }
0x4849   :  { %11411 = vmatmul.mubr.msk.f32.vlgmr.msra.gmra.mxu1 %vm817_vm10, %v8515_v14 }
0x484a   :  { %11419 = vmatpush3.xpose.msk.msra.mxu1 %vm726_vm7, %v8670_v45  ;;  %11420 = vmatprep.mubr.msk.f32.mxu1 %vm11755_vm0, %v11753_v0 }
0x484b   :  { %11428 = vmatprep.subr.mxu1 %v11753_v0 }
0x484d   :  { %11421 = vmatmul.mubr.msk.f32.vlgmr.msra.gmra.mxu1 %vm726_vm7, %v8668_v31 }
0x484e   :  { %11429 = vmatpush3.msra.mxu1 %v12884_v27  ;;  %11430 = vmatprep.mubr.msk.f32.mxu1 %vm11755_vm0, %v11753_v0 }
0x484f   :  { %11444 = vmatprep.subr.mxu1 %v11753_v0 }
0x4909   :  { %v8589_v30 = vpop.f32.mrf.mxu1 }
0x490a   :  { %11416 = vmatmul.mubr.msk.f32.vlgmr.msra.gmra.mxu0 %vm726_vm7, %v8589_v30 }
0x490b   :  { %v11412_v25 = vpop.f32.mrf.mxu1  ;;  %11425 = vmatprep.mubr.msk.f32.mxu0 %vm11755_vm0, %v11753_v0 }
0x490d   :  { %v8741_v23 = vpop.f32.mrf.mxu1 }
0x490e   :  { %v8742_v41 = vadd.f32 %v13201_v24, %v8741_v23 }
0x490f   :  { %v11422_v46 = vpop.f32.mrf.mxu1 }
0x4910   :  { %v8745_v1 = vsel %vm803_vm8, %v8742_v41, -inf  ;;  %v13322_v46 = vld [vmem:[%s12175_s23 + $0x8] sm:$0x3f] }
0x4911   :  { %8746 = vmax.xlane.f32.xlu0 %v8745_v1 }
0x4927   :  { %8756 = vrot.lane.b32.xlu0 %v13177_v15, %s13476_s14 }
0x499a   :  { %v8747_v27 = vpop.xlane.xlu0 %8746 }
0x499b   :  { %v8748_v48 = vsub.f32 %v8742_v41, %v8747_v27 }
0x499d   :  { %v8749_v17 = vmul.f32 1.442695, %v8748_v48 }
0x499e   :  { %v8757_v19 = vpop.permute.xlu0 %8756 }
0x499f   :  { %11712 = vpow2.f32 %v8749_v17  ;;  %11424 = vmatpush3.msk.msra.mxu0 %vm821_vm9, %v8757_v19 }
0x49a0   :  { %11433 = vmatprep.subr.mxu0 %v11753_v0 }
0x49ac   :  { %v11713_v44 = vpop.eup %11712 }
0x49ad   :  { %v8751_v37 = vsel %vm803_vm8, %v11713_v44, 0.0 }
0x49ae   :  { %8752 = vadd.xlane.f32.xlu1 %v8751_v37 }
0x49ca   :  { %v8662_v24 = vpop.f32.mrf.mxu0 }
0x49cb   :  { %v8666_v63 = vadd.f32 %v8662_v24, %v8424_v7 }
0x49cc   :  { %v11417_v34 = vpop.f32.mrf.mxu0 }
0x4a37   :  { %v8753_v35 = vpop.xlane.xlu1 %8752 }
0x4a38   :  { %11714 = vrcp.f32 %v8753_v35 }
0x4a45   :  { %v11715_v40 = vpop.eup %11714 }
0x4a46   :  { %v8755_v15 = vmul.f32 %v11715_v40, %v11713_v44 }
0x4a48   :  { %11426 = vmatmul.mubr.msk.f32.vlgmr.msra.gmra.mxu0 %vm817_vm10, %v8755_v15 }
0x4a49   :  { %11434 = vmatpush3.msra.mxu0 %v12904_v12  ;;  %11441 = vmatprep.mubr.msk.f32.mxu0 %vm11755_vm0, %v11753_v0 }
0x4a4a   :  { %11435 = vmatprep.subr.mxu0 %v11753_v0 }
0x4a4b   :  { %11436 = vmatpush3.msra.mxu0 %v12908_v13 }
0x4a4c   :  { %11437 = vmatprep.subr.mxu0 %v11753_v0 }
0x4a4d   :  { %11438 = vmatpush3.msra.mxu0 %v12912_v53 }
0x4a4e   :  { %11439 = vmatprep.subr.mxu0 %v11753_v0 }
0x4a4f   :  { %11440 = vmatpush3.msra.mxu0 %v12917_v61 }
0x4a50   :  { %11454 = vmatprep.subr.mxu0 %v11753_v0 }
0x4b08   :  { %v8829_v7 = vpop.f32.mrf.mxu0 }
0x4b09   :  { %11431 = vmatmul.mubr.msk.f32.vlgmr.msra.gmra.mxu1 %vm726_vm7, %v8829_v7 }
0x4b0a   :  { %v11427_v12 = vpop.f32.mrf.mxu0  ;;  %11446 = vmatprep.mubr.msk.f32.mxu1 %vm11755_vm0, %v11753_v0 }
0x4bc9   :  { %v8902_v16 = vpop.f32.mrf.mxu1 }
0x4bca   :  { %v8906_v42 = vadd.f32 %v8902_v16, %v8666_v63 }
0x4bcb   :  { %v11432_v13 = vpop.f32.mrf.mxu1 }
0x4bcc   :  { %v8907_v3 = vadd.f32 %v12897_v2, %v8906_v42 }
0x4bce   :  { %v8908_v53 = vadd.f32 %v8907_v3, %v13107_v39 }
0x4bd0   :  { %v8909_v51 = vsel %vm223_vm5, %v8908_v53, 0.0 }
0x4bd1   :  { %8910 = vadd.xlane.f32.xlu1 %v8909_v51 }
0x4c5a   :  { %v8911_v61 = vpop.xlane.xlu1 %8910 }
0x4c5b   :  { %v8912_v11 = vmul.f32 0.03125, %v8911_v61 }
0x4c5d   :  { %v8913_v52 = vsub.f32 %v8908_v53, %v8912_v11 }
0x4c5f   :  { %v8914_v6 = vmul.f32 %v8913_v52, %v8913_v52 }
0x4c61   :  { %v8915_v56 = vsel %vm223_vm5, %v8914_v6, 0.0 }
0x4c62   :  { %8916 = vadd.xlane.f32.xlu1 %v8915_v56 }
0x4ceb   :  { %v8917_v59 = vpop.xlane.xlu1 %8916 }
0x4cec   :  { %v8918_v29 = vmul.f32 0.03125, %v8917_v59 }
0x4cee   :  { %v8919_v45 = vadd.f32 1e-12, %v8918_v29 }
0x4cf0   :  { %11716 = vrsqrt.f32 %v8919_v45 }
0x4cfd   :  { %v11717_v14 = vpop.eup %11716 }
0x4cfe   :  { %v8921_v31 = vmul.f32 %v11717_v14, %v8913_v52 }
0x4d00   :  { %v8922_v2 = vmul.f32 %v12924_v33, %v8921_v31 }
0x4d02   :  { %v13293_v39 = vadd.f32 %v12927_v43, %v8922_v2 }
0x4d04   :  { %11442 = vmatmul.mubr.msk.f32.vlgmr.msra.gmra.mxu0 %vm567_vm6, %v13293_v39 }
0x4d05   :  { %11456 = vmatprep.mubr.msk.f32.mxu0 %vm11755_vm0, %v11753_v0 }
0x4dc4   :  { %v8993_v30 = vpop.f32.mrf.mxu0 }
0x4dc5   :  { %v13300_v25 = vadd.f32 %v12938_v10, %v8993_v30 }
0x4dc6   :  { %v11443_v23 = vpop.f32.mrf.mxu0 }
0x4dc7   :  { %9164 = vrot.lane.b32.xlu0 %v13300_v25, %s13483_s29  ;;  %8998 = vrot.lane.b32.xlu1 %v13300_v25, %s13485_s24 }
0x4dcb   :  { %9162 = vrot.lane.b32.xlu0 %v13300_v25, %s13482_s25 }
0x4e39   :  { %v9165_v33 = vpop.permute.xlu0 %9164  ;;  %v8999_v43 = vpop.permute.xlu1 %8998 }
0x4e3a   :  { %11445 = vmatpush3.xpose.msk.msra.mxu1 %vm726_vm7, %v8999_v43  ;;  %11455 = vmatpush3.xpose.msk.msra.mxu0 %vm726_vm7, %v9165_v33 }
0x4e3b   :  { %11449 = vmatprep.subr.mxu1 %v11753_v0  ;;  %11464 = vmatprep.subr.mxu0 %v11753_v0 }
0x4e3d   :  { %v9163_v10 = vpop.permute.xlu0 %9162  ;;  %11447 = vmatmul.mubr.msk.f32.vlgmr.msra.gmra.mxu1 %vm726_vm7, %v13300_v25 }
0x4e3e   :  { %11457 = vmatmul.mubr.msk.f32.vlgmr.msra.gmra.mxu0 %vm726_vm7, %v9163_v10  ;;  %11451 = vmatprep.mubr.msk.f32.mxu1 %vm11755_vm0, %v11753_v0 }
0x4e3f   :  { %11465 = vmatpush3.msra.mxu0 %v12992_v57  ;;  %11466 = vmatprep.mubr.msk.f32.mxu0 %vm11755_vm0, %v11753_v0 }
0x4e40   :  { %11474 = vmatprep.subr.mxu0 %v11753_v0 }
0x4efd   :  { %v9070_v41 = vpop.f32.mrf.mxu1 }
0x4efe   :  { %v9071_v1 = vadd.f32 %v13322_v46, %v9070_v41  ;;  %v9236_v27 = vpop.f32.mrf.mxu0 }
0x4eff   :  { %v9237_v48 = vadd.f32 %v13322_v46, %v9236_v27  ;;  %v11448_v17 = vpop.f32.mrf.mxu1 }
0x4f00   :  { %v11458_v19 = vpop.f32.mrf.mxu0  ;;  %v9074_v44 = vsel %vm803_vm8, %v9071_v1, -inf }
0x4f01   :  { %9075 = vmax.xlane.f32.xlu0 %v9074_v44  ;;  %v9240_v57 = vsel %vm803_vm8, %v9237_v48, -inf }
0x4f02   :  { %9241 = vmax.xlane.f32.xlu1 %v9240_v57 }
0x4f13   :  { %9251 = vrot.lane.b32.xlu1 %v13300_v25, %s13477_s18 }
0x4f17   :  { %9476 = vrot.lane.b32.xlu1 %v13300_v25, %s13486_s4 }
0x4f1b   :  { %9474 = vrot.lane.b32.xlu1 %v13300_v25, %s13484_s19 }
0x4f8a   :  { %v9076_v37 = vpop.xlane.xlu0 %9075 }
0x4f8b   :  { %v9077_v24 = vsub.f32 %v9071_v1, %v9076_v37  ;;  %v9242_v63 = vpop.xlane.xlu1 %9241 }
0x4f8c   :  { %v9243_v34 = vsub.f32 %v9237_v48, %v9242_v63 }
0x4f8d   :  { %v9078_v35 = vmul.f32 1.442695, %v9077_v24 }
0x4f8e   :  { %v9244_v40 = vmul.f32 1.442695, %v9243_v34 }
0x4f8f   :  { %11718 = vpow2.f32 %v9078_v35  ;;  %v9252_v61 = vpop.permute.xlu1 %9251 }
0x4f90   :  { %11720 = vpow2.f32 %v9244_v40 }
0x4f93   :  { %v9477_v56 = vpop.permute.xlu1 %9476 }
0x4f9c   :  { %v11719_v15 = vpop.eup %11718 }
0x4f9d   :  { %v9080_v7 = vsel %vm803_vm8, %v11719_v15, 0.0  ;;  %v11721_v12 = vpop.eup %11720 }
0x4f9e   :  { %9081 = vadd.xlane.f32.xlu0 %v9080_v7  ;;  %v9246_v16 = vsel %vm803_vm8, %v11721_v12, 0.0 }
0x4fa2   :  { %9247 = vadd.xlane.f32.xlu0 %v9246_v16 }
0x4fb8   :  { %9085 = vrot.lane.b32.xlu0 %v13300_v25, %s13478_s22 }
0x5027   :  { %v9082_v42 = vpop.xlane.xlu0 %9081 }
0x5028   :  { %11722 = vrcp.f32 %v9082_v42 }
0x502b   :  { %v9248_v13 = vpop.xlane.xlu0 %9247 }
0x502c   :  { %11724 = vrcp.f32 %v9248_v13 }
0x502f   :  { %v9086_v3 = vpop.permute.xlu0 %9085 }
0x5030   :  { %11450 = vmatpush3.msk.msra.mxu1 %vm821_vm9, %v9086_v3 }
0x5031   :  { %11459 = vmatprep.subr.mxu1 %v11753_v0 }
0x5035   :  { %v11723_v53 = vpop.eup %11722 }
0x5036   :  { %v9084_v51 = vmul.f32 %v11723_v53, %v11719_v15 }
0x5038   :  { %11452 = vmatmul.mubr.msk.f32.vlgmr.msra.gmra.mxu1 %vm817_vm10, %v9084_v51 }
0x5039   :  { %v11725_v11 = vpop.eup %11724  ;;  %11460 = vmatpush3.msk.msra.mxu1 %vm821_vm9, %v9252_v61  ;;  %11461 = vmatprep.mubr.msk.f32.mxu1 %vm11755_vm0, %v11753_v0 }
0x503a   :  { %v9250_v52 = vmul.f32 %v11725_v11, %v11721_v12  ;;  %11469 = vmatprep.subr.mxu1 %v11753_v0 }
0x503c   :  { %11462 = vmatmul.mubr.msk.f32.vlgmr.msra.gmra.mxu1 %vm817_vm10, %v9250_v52 }
0x503d   :  { %11470 = vmatpush3.msra.mxu1 %v12988_v58  ;;  %11471 = vmatprep.mubr.msk.f32.mxu1 %vm11755_vm0, %v11753_v0  ;;  %v9475_v58 = vpop.permute.xlu1 %9474 }
0x503e   :  { %11479 = vmatprep.subr.mxu1 %v11753_v0 }
0x50f8   :  { %v9158_v6 = vpop.f32.mrf.mxu1 }
0x50f9   :  { %11472 = vmatmul.mubr.msk.f32.vlgmr.msra.gmra.mxu1 %vm726_vm7, %v9158_v6 }
0x50fa   :  { %v11453_v59 = vpop.f32.mrf.mxu1  ;;  %11481 = vmatprep.mubr.msk.f32.mxu1 %vm11755_vm0, %v11753_v0 }
0x50fc   :  { %v9324_v29 = vpop.f32.mrf.mxu1 }
0x50fd   :  { %11467 = vmatmul.mubr.msk.f32.vlgmr.msra.gmra.mxu0 %vm726_vm7, %v9324_v29 }
0x50fe   :  { %11475 = vmatpush3.xpose.msk.msra.mxu0 %vm726_vm7, %v9477_v56  ;;  %v11463_v45 = vpop.f32.mrf.mxu1  ;;  %11476 = vmatprep.mubr.msk.f32.mxu0 %vm11755_vm0, %v11753_v0 }
0x50ff   :  { %11484 = vmatprep.subr.mxu0 %v11753_v0 }
0x5101   :  { %11477 = vmatmul.mubr.msk.f32.vlgmr.msra.gmra.mxu0 %vm726_vm7, %v9475_v58 }
0x5102   :  { %11485 = vmatpush3.msra.mxu0 %v13028_v49  ;;  %11486 = vmatprep.mubr.msk.f32.mxu0 %vm11755_vm0, %v11753_v0 }
0x5103   :  { %11494 = vmatprep.subr.mxu0 %v11753_v0 }
0x51b9   :  { %v9470_v14 = vpop.f32.mrf.mxu1 }
0x51bb   :  { %v11473_v31 = vpop.f32.mrf.mxu1 }
0x51bd   :  { %v9397_v2 = vpop.f32.mrf.mxu0 }
0x51be   :  { %v9471_v30 = vadd.f32 %v9470_v14, %v9397_v2 }
0x51bf   :  { %v11468_v23 = vpop.f32.mrf.mxu0 }
0x51c1   :  { %v9548_v33 = vpop.f32.mrf.mxu0 }
0x51c2   :  { %v9549_v43 = vadd.f32 %v13322_v46, %v9548_v33 }
0x51c3   :  { %v11478_v10 = vpop.f32.mrf.mxu0 }
0x51c4   :  { %v9552_v41 = vsel %vm803_vm8, %v9549_v43, -inf }
0x51c5   :  { %9553 = vmax.xlane.f32.xlu0 %v9552_v41 }
0x51db   :  { %9563 = vrot.lane.b32.xlu0 %v13300_v25, %s13479_s26 }
0x51df   :  { %9714 = vrot.lane.b32.xlu0 %v13300_v25, %s13487_s12 }
0x524e   :  { %v9554_v49 = vpop.xlane.xlu0 %9553 }
0x524f   :  { %v9555_v1 = vsub.f32 %v9549_v43, %v9554_v49 }
0x5251   :  { %v9556_v27 = vmul.f32 1.442695, %v9555_v1 }
0x5252   :  { %v9564_v48 = vpop.permute.xlu0 %9563 }
0x5253   :  { %11726 = vpow2.f32 %v9556_v27  ;;  %11480 = vmatpush3.msk.msra.mxu1 %vm821_vm9, %v9564_v48 }
0x5254   :  { %11489 = vmatprep.subr.mxu1 %v11753_v0 }
0x5256   :  { %v9715_v63 = vpop.permute.xlu0 %9714 }
0x5260   :  { %v11727_v17 = vpop.eup %11726 }
0x5261   :  { %v9558_v19 = vsel %vm803_vm8, %v11727_v17, 0.0 }
0x5262   :  { %9559 = vadd.xlane.f32.xlu1 %v9558_v19 }
0x5273   :  { %9716 = vrot.lane.b32.xlu1 %v13300_v25, %s13476_s14 }
0x52eb   :  { %v9560_v44 = vpop.xlane.xlu1 %9559 }
0x52ec   :  { %11728 = vrcp.f32 %v9560_v44 }
0x52ef   :  { %v9717_v24 = vpop.permute.xlu1 %9716 }
0x52f9   :  { %v11729_v57 = vpop.eup %11728 }
0x52fa   :  { %v9562_v37 = vmul.f32 %v11729_v57, %v11727_v17 }
0x52fc   :  { %11482 = vmatmul.mubr.msk.f32.vlgmr.msra.gmra.mxu1 %vm817_vm10, %v9562_v37 }
0x52fd   :  { %11490 = vmatpush3.xpose.msk.msra.mxu1 %vm726_vm7, %v9717_v24  ;;  %11491 = vmatprep.mubr.msk.f32.mxu1 %vm11755_vm0, %v11753_v0 }
0x52fe   :  { %11499 = vmatprep.subr.mxu1 %v11753_v0 }
0x5300   :  { %11492 = vmatmul.mubr.msk.f32.vlgmr.msra.gmra.mxu1 %vm726_vm7, %v9715_v63 }
0x5301   :  { %11500 = vmatpush3.msra.mxu1 %v13043_v62  ;;  %11501 = vmatprep.mubr.msk.f32.mxu1 %vm11755_vm0, %v11753_v0 }
0x5302   :  { %11515 = vmatprep.subr.mxu1 %v11753_v0 }
0x53bc   :  { %v9636_v34 = vpop.f32.mrf.mxu1 }
0x53bd   :  { %11487 = vmatmul.mubr.msk.f32.vlgmr.msra.gmra.mxu0 %vm726_vm7, %v9636_v34 }
0x53be   :  { %v11483_v35 = vpop.f32.mrf.mxu1  ;;  %11496 = vmatprep.mubr.msk.f32.mxu0 %vm11755_vm0, %v11753_v0 }
0x53c0   :  { %v9788_v40 = vpop.f32.mrf.mxu1 }
0x53c1   :  { %v9789_v15 = vadd.f32 %v13322_v46, %v9788_v40 }
0x53c2   :  { %v11493_v7 = vpop.f32.mrf.mxu1 }
0x53c3   :  { %v9792_v12 = vsel %vm803_vm8, %v9789_v15, -inf }
0x53c4   :  { %9793 = vmax.xlane.f32.xlu1 %v9792_v12 }
0x544d   :  { %v9794_v62 = vpop.xlane.xlu1 %9793 }
0x544e   :  { %v9795_v16 = vsub.f32 %v9789_v15, %v9794_v62 }
0x5450   :  { %v9796_v42 = vmul.f32 1.442695, %v9795_v16 }
0x5452   :  { %11730 = vpow2.f32 %v9796_v42 }
0x545f   :  { %v11731_v13 = vpop.eup %11730 }
0x5460   :  { %v9798_v3 = vsel %vm803_vm8, %v11731_v13, 0.0 }
0x5461   :  { %9799 = vadd.xlane.f32.xlu0 %v9798_v3 }
0x5477   :  { %9803 = vrot.lane.b32.xlu0 %v13300_v25, %s13480_s10  ;;  %s11796_s10 = smov 31  }
0x5478   :  { %s10179_s7 = sld [smem:[%s13445_s0 + %s11796_s10]]  }
0x547d   :  { %v9709_v53 = vpop.f32.mrf.mxu0 }
0x547e   :  { %v9713_v51 = vadd.f32 %v9709_v53, %v9471_v30  ;;  %v10407_v53 = vld [vmem:[%s12701_s11 + $0x1] ss:$0 sm:$0xff] }
0x547f   :  { %v11488_v61 = vpop.f32.mrf.mxu0 }
0x54ea   :  { %v9800_v11 = vpop.xlane.xlu0 %9799 }
0x54eb   :  { %11732 = vrcp.f32 %v9800_v11 }
0x54ee   :  { %v9804_v46 = vpop.permute.xlu0 %9803 }
0x54ef   :  { %11495 = vmatpush3.msk.msra.mxu0 %vm821_vm9, %v9804_v46 }
0x54f0   :  { %11504 = vmatprep.subr.mxu0 %v11753_v0 }
0x54f8   :  { %v11733_v52 = vpop.eup %11732 }
0x54f9   :  { %v9802_v6 = vmul.f32 %v11733_v52, %v11731_v13  ;;  %v10406_v13 = vld [vmem:[%s12696_s20 + $0x1] ss:$0 sm:$0xff] }
0x54fb   :  { %11497 = vmatmul.mubr.msk.f32.vlgmr.msra.gmra.mxu0 %vm817_vm10, %v9802_v6 }
0x54fc   :  { %11505 = vmatpush3.msra.mxu0 %v13066_v26  ;;  %11512 = vmatprep.mubr.msk.f32.mxu0 %vm11755_vm0, %v11753_v0 }
0x54fd   :  { %11506 = vmatprep.subr.mxu0 %v11753_v0 }
0x54fe   :  { %11507 = vmatpush3.msra.mxu0 %v13071_v60 }
0x54ff   :  { %11508 = vmatprep.subr.mxu0 %v11753_v0 }
0x5500   :  { %11509 = vmatpush3.msra.mxu0 %v13076_v5 }
0x5501   :  { %11510 = vmatprep.subr.mxu0 %v11753_v0 }
0x5502   :  { %11511 = vmatpush3.msra.mxu0 %v13081_v55 }
0x55bb   :  { %v9876_v25 = vpop.f32.mrf.mxu0 }
0x55bc   :  { %11502 = vmatmul.mubr.msk.f32.vlgmr.msra.gmra.mxu1 %vm726_vm7, %v9876_v25 }
0x55bd   :  { %v11498_v56 = vpop.f32.mrf.mxu0  ;;  %11516 = vmatpush3.msra.mxu1 %v13128_v32  ;;  %11531 = vmatprep.mubr.msk.f32.mxu1 %vm11755_vm0, %v11753_v0 }
0x55be   :  { %11517 = vmatprep.subr.mxu1 %v11753_v0 }
0x55bf   :  { %11518 = vmatpush3.msra.mxu1 %v13133_v28 }
0x55c0   :  { %11519 = vmatprep.subr.mxu1 %v11753_v0 }
0x55c1   :  { %11520 = vmatpush3.msra.mxu1 %v13138_v8  ;;  %v10404_v8 = vld [vmem:[%s13491_s30 + $0x1] ss:$0 sm:$0xff] }
0x55c2   :  { %11521 = vmatprep.subr.mxu1 %v11753_v0 }
0x55c3   :  { %11522 = vmatpush3.msra.mxu1 %v13143_v22 }
0x55c4   :  { %11523 = vmatprep.subr.mxu1 %v11753_v0 }
0x55c5   :  { %11524 = vmatpush3.msra.mxu1 %v13148_v50 }
0x55c6   :  { %11525 = vmatprep.subr.mxu1 %v11753_v0 }
0x55c7   :  { %11526 = vmatpush3.msra.mxu1 %v13153_v9  ;;  %v7777_v9 = vadd.f32 %v10404_v8, %v13198_v4 }
0x55c8   :  { %11527 = vmatprep.subr.mxu1 %v11753_v0 }
0x55c9   :  { %11528 = vmatpush3.msra.mxu1 %v13158_v18 }
0x55ca   :  { %11529 = vmatprep.subr.mxu1 %v11753_v0  ;;  %v7780_v0 = vadd.f32 %v7777_v9, %v13093_v36 }
0x55cb   :  { %11530 = vmatpush3.msra.mxu1 %v13163_v20 }
0x55cc   :  { %v7781_v29 = vsel %vm223_vm5, %v7780_v0, 0.0 }
0x567c   :  { %v9949_v26 = vpop.f32.mrf.mxu1 }
0x567d   :  { %v9953_v60 = vadd.f32 %v9949_v26, %v9713_v51 }
0x567e   :  { %v11503_v5 = vpop.f32.mrf.mxu1 }
0x567f   :  { %v9954_v55 = vadd.f32 %v13054_v47, %v9953_v60 }
0x5681   :  { %v9955_v32 = vadd.f32 %v9954_v55, %v13293_v39 }
0x5683   :  { %v9956_v28 = vsel %vm223_vm5, %v9955_v32, 0.0 }
0x5684   :  { %9957 = vadd.xlane.f32.xlu1 %v9956_v28 }
0x570d   :  { %v9958_v22 = vpop.xlane.xlu1 %9957 }
0x570e   :  { %v9959_v50 = vmul.f32 0.03125, %v9958_v22 }
0x5710   :  { %v9960_v18 = vsub.f32 %v9955_v32, %v9959_v50 }
0x5712   :  { %v9961_v59 = vmul.f32 %v9960_v18, %v9960_v18 }
0x5714   :  { %v9962_v20 = vsel %vm223_vm5, %v9961_v59, 0.0 }
0x5715   :  { %9963 = vadd.xlane.f32.xlu1 %v9962_v20 }
0x5719   :  { %7782 = vadd.xlane.f32.xlu1 %v7781_v29 }
0x579e   :  { %v9964_v47 = vpop.xlane.xlu1 %9963 }
0x579f   :  { %v9965_v39 = vmul.f32 0.03125, %v9964_v47 }
0x57a1   :  { %v9966_v45 = vadd.f32 1e-12, %v9965_v39 }
0x57a3   :  { %11734 = vrsqrt.f32 %v9966_v45 }
0x57b0   :  { %v11735_v58 = vpop.eup %11734 }
0x57b1   :  { %v9968_v14 = vmul.f32 %v11735_v58, %v9960_v18 }
0x57b3   :  { %v9969_v31 = vmul.f32 %v13086_v54, %v9968_v14  ;;  %v7783_v54 = vpop.xlane.xlu1 %7782 }
0x57b5   :  { %v9970_v4 = vadd.f32 %v13089_v38, %v9969_v31  ;;  %v7784_v38 = vmul.f32 0.03125, %v7783_v54 }
0x57b7   :  { %11513 = vmatmul.mubr.msk.f32.vlgmr.msra.gmra.mxu0 %vm567_vm6, %v9970_v4  ;;  %v7785_v19 = vsub.f32 %v7780_v0, %v7784_v38 }
0x57b9   :  { %v7786_v24 = vmul.f32 %v7785_v19, %v7785_v19 }
0x57bb   :  { %v7787_v63 = vsel %vm223_vm5, %v7786_v24, 0.0 }
0x5877   :  { %v10040_v2 = vpop.f32.mrf.mxu0 }
0x5878   :  { %v10041_v36 = vadd.f32 %v13168_v21, %v10040_v2 }
0x5879   :  { %v11514_v30 = vpop.f32.mrf.mxu0 }
0x587a   :  { %v10044_v23 = vmul.f32 %v10041_v36, %v10041_v36 }
0x587c   :  { %v10045_v33 = vmul.f32 %v10044_v23, %v10041_v36 }
0x587e   :  { %v10046_v43 = vmul.f32 0.044715, %v10045_v33 }
0x5880   :  { %v10047_v10 = vadd.f32 %v10046_v43, %v10041_v36 }
0x5882   :  { %v10048_v41 = vmul.f32 0.7978846, %v10047_v10 }
0x5884   :  { %11736 = vtanh.f32 %v10048_v41 }
0x5891   :  { %v11737_v49 = vpop.eup %11736 }
0x5892   :  { %v10050_v1 = vadd.f32 1.0, %v11737_v49 }
0x5894   :  { %v10051_v27 = vmul.f32 0.5, %v10050_v1 }
0x5896   :  { %v10052_v48 = vmul.f32 %v10051_v27, %v10041_v36 }
0x5898   :  { %11532 = vmatmul.mubr.msk.f32.vlgmr.msra.gmra.mxu1 %vm2886_vm11, %v10052_v48 }
0x5958   :  { %v10122_v17 = vpop.f32.mrf.mxu1 }
0x5959   :  { %v10123_v44 = vadd.f32 %v10404_v8, %v10122_v17 }
0x595a   :  { %v11533_v57 = vpop.f32.mrf.mxu1 }
0x595b   :  { %v10126_v21 = vadd.f32 %v10123_v44, %v9970_v4 }
0x595d   :  { %v10127_v37 = vsel %vm223_vm5, %v10126_v21, 0.0 }
0x595e   :  { %10128 = vadd.xlane.f32.xlu1 %v10127_v37 }
0x5962   :  { %7788 = vadd.xlane.f32.xlu1 %v7787_v63 }
0x59e7   :  { %v10129_v34 = vpop.xlane.xlu1 %10128 }
0x59e8   :  { %v10130_v35 = vmul.f32 0.03125, %v10129_v34 }
0x59ea   :  { %v10131_v40 = vsub.f32 %v10126_v21, %v10130_v35 }
0x59eb   :  { %v7789_v15 = vpop.xlane.xlu1 %7788 }
0x59ec   :  { %v7790_v7 = vmul.f32 0.03125, %v7789_v15  ;;  %v10132_v12 = vmul.f32 %v10131_v40, %v10131_v40 }
0x59ee   :  { %v7791_v62 = vadd.f32 1e-12, %v7790_v7  ;;  %v10133_v16 = vsel %vm223_vm5, %v10132_v12, 0.0 }
0x59ef   :  { %10134 = vadd.xlane.f32.xlu0 %v10133_v16 }
0x59f0   :  { %11738 = vrsqrt.f32 %v7791_v62 }
0x59fd   :  { %v11739_v42 = vpop.eup %11738 }
0x59fe   :  { %v7793_v3 = vmul.f32 %v11739_v42, %v7785_v19 }
0x5a00   :  { %v7800_v51 = vmul.f32 %v10406_v13, %v7793_v3 }
0x5a02   :  { %v7807_v61 = vadd.f32 %v10407_v53, %v7800_v51 }
0x5a04   :  { %10142 = vst.msk [vmem:[%s10179_s7] sm:$0x3f] %vm223_vm5, %v7807_v61 }
0x5a78   :  { %v10135_v11 = vpop.xlane.xlu0 %10134 }
0x5a79   :  { %v10136_v46 = vmul.f32 0.03125, %v10135_v11 }
0x5a7b   :  { %v10137_v52 = vadd.f32 1e-12, %v10136_v46 }
0x5a7d   :  { %11740 = vrsqrt.f32 %v10137_v52 }
0x5a8a   :  { %v11741_v6 = vpop.eup %11740 }
0x5a8b   :  { %v10139_v25 = vmul.f32 %v11741_v6, %v10131_v40 }
0x5a8d   :  { %v10140_v56 = vmul.f32 %v10406_v13, %v10139_v25 }
0x5a8f   :  { %v10141_v26 = vadd.f32 %v10407_v53, %v10140_v56 }
0x5a91   :  { %10453 = vst.msk [vmem:[%s10179_s7 + $0x8] sm:$0x3f] %vm223_vm5, %v10141_v26 }

</bundles_post_ra>
